<compile_context>
chip_gen: v7x
topology: tpu7x:2x2x1
jax: 0.10.0
libtpu: 0.0.40
codegen_flags: <defaults>
</compile_context>

<pallas_src>
import functools

import jax
import jax.numpy as jnp
from jax import lax
from jax.experimental import pallas as pl
from jax.experimental.pallas import tpu as pltpu


# ----------------------------------------------------------------------------
# Fused Pallas kernel
# ----------------------------------------------------------------------------
def nmt_fused_kernel(TX, TY, B,
                     x_ref, y_ref,
                     wih_e0_ref, whh_e0_ref, be0_ref, wf_e1_ref, be1_ref,
                     wih_d0_ref, whh_d0_ref, bd0_ref, wf_d1_ref, bd1_ref,
                     wc_ref, bc_ref, w_ref, bw_ref,
                     out_ref,
                     xg_scr, yg_scr, ox_scr, oy_scr):
    """Fused MyAttNMT forward.

    x_ref   : (TX*B, K)  encoder embeddings, time-major rows (row = t*B + b)
    y_ref   : (TY*B, K)  decoder embeddings, time-major rows
    wih_*0  : (K, 4K)    layer-0 input weights   (gate order i, f, g, o)
    whh_*0  : (K, 4K)    layer-0 recurrent weights
    b*0     : (1, 4K)    layer-0 combined bias (b_ih + b_hh)
    wf_*1   : (2K, 4K)   layer-1 fused [Wih; Whh]
    b*1     : (1, 4K)    layer-1 combined bias
    wc_ref  : (2K, K)    Wc^T   ([ct, oy] ordering of the concat)
    bc_ref  : (1, K)
    w_ref   : (K, EVp)   W^T, lane-padded to a multiple of 128
    bw_ref  : (1, EVp)
    out_ref : (TY*B, EVp)
    """
    K = x_ref.shape[1]

    # --- layer-0 input projections for ALL timesteps: one dense MXU matmul ---
    xg_scr[...] = (jnp.dot(x_ref[...], wih_e0_ref[...],
                           preferred_element_type=jnp.float32) + be0_ref[...])
    yg_scr[...] = (jnp.dot(y_ref[...], wih_d0_ref[...],
                           preferred_element_type=jnp.float32) + bd0_ref[...])

    def gates(g, c):
        i = jax.nn.sigmoid(g[:, 0 * K:1 * K])
        f = jax.nn.sigmoid(g[:, 1 * K:2 * K])
        gg = jnp.tanh(g[:, 2 * K:3 * K])
        o = jax.nn.sigmoid(g[:, 3 * K:4 * K])
        cn = f * c + i * gg
        return o * jnp.tanh(cn), cn

    def run_lstm(T, xg_ref, whh0, wf1, b1, o_ref, init):
        def step(t, carry):
            h0, c0, h1, c1 = carry
            row = pl.multiple_of(t * B, B)
            # layer 0: precomputed input projection + single recurrent matmul
            g0 = xg_ref[pl.ds(row, B), :] + jnp.dot(
                h0, whh0, preferred_element_type=jnp.float32)
            h0n, c0n = gates(g0, c0)
            # layer 1: single fused matmul on concat([h0n, h1])
            g1 = jnp.dot(jnp.concatenate([h0n, h1], axis=-1), wf1,
                         preferred_element_type=jnp.float32) + b1
            h1n, c1n = gates(g1, c1)
            o_ref[pl.ds(row, B), :] = h1n
            return (h0n, c0n, h1n, c1n)
        return lax.fori_loop(0, T, step, init, unroll=True)

    zeros = jnp.zeros((B, K), jnp.float32)
    henc = run_lstm(TX, xg_scr, whh_e0_ref[...], wf_e1_ref[...], be1_ref[...],
                    ox_scr, (zeros, zeros, zeros, zeros))
    # decoder is initialized from the encoder's final (h, c) per layer
    run_lstm(TY, yg_scr, whh_d0_ref[...], wf_d1_ref[...], bd1_ref[...],
             oy_scr, henc)

    # --- attention + projections on flattened (T*B, K) slabs -----------------
    ox = ox_scr[...]                       # (TX*B, K)
    oy = oy_scr[...]                       # (TY*B, K)

    # Dense scores over all (row, col) pairs, then mask to matching batch index
    # (B is a power of two, so `& (B-1)` == `% B`).  Masked softmax over source
    # positions reproduces the per-batch bmm + softmax of the PyTorch model.
    s = jnp.dot(oy, ox.T, preferred_element_type=jnp.float32)   # (TY*B, TX*B)
    rb = lax.broadcasted_iota(jnp.int32, s.shape, 0) & (B - 1)
    cb = lax.broadcasted_iota(jnp.int32, s.shape, 1) & (B - 1)
    mask = rb == cb
    sm = jnp.where(mask, s, jnp.float32(-1e30))
    m = jnp.max(sm, axis=-1, keepdims=True)
    e = jnp.where(mask, jnp.exp(sm - m), jnp.float32(0.0))
    alpha = e * pl.reciprocal(jnp.sum(e, axis=-1, keepdims=True), approx=True)
    ct = jnp.dot(alpha, ox, preferred_element_type=jnp.float32)  # (TY*B, K)

    # oy2 = Wc([ct, oy]); out = W(oy2)  -- plain 2-D matmuls, lane-dense output
    oy2 = jnp.dot(jnp.concatenate([ct, oy], axis=-1), wc_ref[...],
                  preferred_element_type=jnp.float32) + bc_ref[...]
    out_ref[...] = jnp.dot(oy2, w_ref[...],
                           preferred_element_type=jnp.float32) + bw_ref[...]


# ----------------------------------------------------------------------------
# pallas_call wrapper
# ----------------------------------------------------------------------------
def nmt_forward(params, jline, eline):
    """(B, TX) int32, (B, TY) int32  ->  (B, TY, EV) float32."""
    B, TX = jline.shape
    TY = eline.shape[1]
    K = params['jemb'].shape[1]
    EV = params['w_w'].shape[0]

    BP = max(8, pl.next_power_of_2(B))     # sublane-pad batch (power of two)
    EVP = 128 * pl.cdiv(EV, 128)           # lane-pad the final projection

    # Time-major, batch-padded ids; padding ids are 0 == padding_idx -> zero rows.
    jl = jnp.zeros((TX, BP), jnp.int32).at[:, :B].set(jline.T)
    el = jnp.zeros((TY, BP), jnp.int32).at[:, :B].set(eline.T)
    x = jnp.take(params['jemb'], jl.reshape(TX * BP), axis=0)   # (TX*BP, K)
    y = jnp.take(params['eemb'], el.reshape(TY * BP), axis=0)   # (TY*BP, K)

    e0, e1 = params['lstm1']
    d0, d1 = params['lstm2']
    wf_e1 = jnp.concatenate([e1['wih_t'], e1['whh_t']], axis=0)   # (2K, 4K)
    wf_d1 = jnp.concatenate([d1['wih_t'], d1['whh_t']], axis=0)
    wc_t = params['wc_w'].T                                        # (2K, K)
    bc = params['wc_b'].reshape(1, K)
    w_t = jnp.zeros((K, EVP), jnp.float32).at[:, :EV].set(params['w_w'].T)
    bw = jnp.zeros((1, EVP), jnp.float32).at[:, :EV].set(params['w_b'])

    vmem = pl.BlockSpec(memory_space=pltpu.MemorySpace.VMEM)
    out_flat = pl.pallas_call(
        functools.partial(nmt_fused_kernel, TX, TY, BP),
        out_shape=jax.ShapeDtypeStruct((TY * BP, EVP), jnp.float32),
        in_specs=[vmem] * 16,
        out_specs=vmem,
        scratch_shapes=[
            pltpu.VMEM((TX * BP, 4 * K), jnp.float32),   # precomputed x @ Wih
            pltpu.VMEM((TY * BP, 4 * K), jnp.float32),   # precomputed y @ Wih
            pltpu.VMEM((TX * BP, K), jnp.float32),       # ox
            pltpu.VMEM((TY * BP, K), jnp.float32),       # oy
        ],
    )(x, y,
      e0['wih_t'], e0['whh_t'], e0['b'], wf_e1, e1['b'],
      d0['wih_t'], d0['whh_t'], d0['b'], wf_d1, d1['b'],
      wc_t, bc, w_t, bw)

    out = out_flat.reshape(TY, BP, EVP)[:, :B, :EV]
    return jnp.transpose(out, (1, 0, 2))


# ----------------------------------------------------------------------------
# Parameters (deterministic synthetic init mirroring the nn.Module shapes)
# ----------------------------------------------------------------------------
def init_params(key, jv, ev, k):
    keys = iter(jax.random.split(key, 24))

    def rnd(shape, scale=0.1):
        return jax.random.normal(next(keys), shape, jnp.float32) * scale

    # nn.Embedding(jv, k, padding_idx=0) / nn.Embedding(ev, k, padding_idx=0)
    jemb = rnd((jv, k)).at[0].set(0.0)
    eemb = rnd((ev, k)).at[0].set(0.0)

    # nn.LSTM(k, k, num_layers=2): per layer weight_ih (4k,k), weight_hh (4k,k),
    # bias_ih (4k,), bias_hh (4k,), gate order (i, f, g, o)
    def lstm_layer():
        wih = rnd((4 * k, k))
        whh = rnd((4 * k, k))
        bih = rnd((4 * k,))
        bhh = rnd((4 * k,))
        return dict(wih_t=wih.T, whh_t=whh.T, b=(bih + bhh).reshape(1, 4 * k))

    return dict(
        jemb=jemb, eemb=eemb,
        lstm1=(lstm_layer(), lstm_layer()),
        lstm2=(lstm_layer(), lstm_layer()),
        wc_w=rnd((k, 2 * k)), wc_b=rnd((k,)),      # nn.Linear(2k, k)
        w_w=rnd((ev, k)), w_b=rnd((ev,)),          # nn.Linear(k, ev)
    )


# ----------------------------------------------------------------------------
# Pure-JAX reference (unpadded) for a correctness check
# ----------------------------------------------------------------------------
def forward_ref(params, jline, eline):
    x = jnp.take(params['jemb'], jline, axis=0)   # (B, TX, K)
    y = jnp.take(params['eemb'], eline, axis=0)   # (B, TY, K)
    B, _, K = x.shape

    def cell(xt, h, c, l):
        g = xt @ l['wih_t'] + h @ l['whh_t'] + l['b']
        i = jax.nn.sigmoid(g[:, :K])
        f = jax.nn.sigmoid(g[:, K:2 * K])
        gg = jnp.tanh(g[:, 2 * K:3 * K])
        o = jax.nn.sigmoid(g[:, 3 * K:])
        cn = f * c + i * gg
        return o * jnp.tanh(cn), cn

    def run(inp, h0, c0, layers):
        def scan_fn(carry, xt):
            a, b, c_, d = carry
            h0n, c0n = cell(xt, a, b, layers[0])
            h1n, c1n = cell(h0n, c_, d, layers[1])
            return (h0n, c0n, h1n, c1n), h1n
        carry, ys = lax.scan(scan_fn, (h0[0], c0[0], h0[1], c0[1]),
                             jnp.transpose(inp, (1, 0, 2)))
        hn = jnp.stack([carry[0], carry[2]])
        cn = jnp.stack([carry[1], carry[3]])
        return jnp.transpose(ys, (1, 0, 2)), hn, cn

    zeros = jnp.zeros((2, B, K), jnp.float32)
    ox, hnx, cnx = run(x, zeros, zeros, params['lstm1'])
    oy, _, _ = run(y, hnx, cnx, params['lstm2'])

    sim = jnp.einsum('byk,bxk->byx', oy, ox)
    alpha = jax.nn.softmax(sim, axis=-1)
    ct = jnp.einsum('byx,bxk->byk', alpha, ox)
    oy2 = jnp.concatenate([ct, oy], axis=-1) @ params['wc_w'].T + params['wc_b']
    return oy2 @ params['w_w'].T + params['w_b']


# ----------------------------------------------------------------------------
if __name__ == "__main__":
    B, K = 2, 32          # batch, hidden/embedding size k
    TX, TY = 8, 8         # source / target sequence lengths
    JV, EV = 11, 13       # source / target vocab sizes

    root = jax.random.PRNGKey(0)
    kp, kj, ke = jax.random.split(root, 3)
    params = init_params(kp, JV, EV, K)
    jline = jax.random.randint(kj, (B, TX), 1, JV, dtype=jnp.int32)
    eline = jax.random.randint(ke, (B, TY), 1, EV, dtype=jnp.int32)

    out = jax.block_until_ready(nmt_forward(params, jline, eline))
    assert out.shape == (B, TY, EV), out.shape

    ref = forward_ref(params, jline, eline)
    if not bool(jnp.allclose(out, ref, atol=3e-2, rtol=3e-2)):
        raise SystemExit(
            f"mismatch: max abs diff {float(jnp.max(jnp.abs(out - ref)))}")

    print("KERNEL_OK")
</pallas_src>

<mosaic_0001>
module attributes {stable_mosaic.version = 11 : i64} {
  func.func @nmt_fused_kernel(%arg0: memref<64x32xf32, #tpu.memory_space<vmem>>, %arg1: memref<64x32xf32, #tpu.memory_space<vmem>>, %arg2: memref<32x128xf32, #tpu.memory_space<vmem>>, %arg3: memref<32x128xf32, #tpu.memory_space<vmem>>, %arg4: memref<1x128xf32, #tpu.memory_space<vmem>>, %arg5: memref<64x128xf32, #tpu.memory_space<vmem>>, %arg6: memref<1x128xf32, #tpu.memory_space<vmem>>, %arg7: memref<32x128xf32, #tpu.memory_space<vmem>>, %arg8: memref<32x128xf32, #tpu.memory_space<vmem>>, %arg9: memref<1x128xf32, #tpu.memory_space<vmem>>, %arg10: memref<64x128xf32, #tpu.memory_space<vmem>>, %arg11: memref<1x128xf32, #tpu.memory_space<vmem>>, %arg12: memref<64x32xf32, #tpu.memory_space<vmem>>, %arg13: memref<1x32xf32, #tpu.memory_space<vmem>>, %arg14: memref<32x128xf32, #tpu.memory_space<vmem>>, %arg15: memref<1x128xf32, #tpu.memory_space<vmem>>, %arg16: memref<64x128xf32, #tpu.memory_space<vmem>>, %arg17: memref<64x128xf32, #tpu.memory_space<vmem>>, %arg18: memref<64x128xf32, #tpu.memory_space<vmem>>, %arg19: memref<64x32xf32, #tpu.memory_space<vmem>>, %arg20: memref<64x32xf32, #tpu.memory_space<vmem>>) attributes {dimension_semantics = [], scalar_prefetch = 0 : i64, scratch_operands = 4 : i64, tpu.core_type = #tpu.core_type<tc>} {
    %c0 = arith.constant 0 : index
    %c0_0 = arith.constant 0 : index
    %0 = vector.load %arg0[%c0, %c0_0] : memref<64x32xf32, #tpu.memory_space<vmem>>, vector<64x32xf32>
    %c0_1 = arith.constant 0 : index
    %c0_2 = arith.constant 0 : index
    %1 = vector.load %arg2[%c0_1, %c0_2] : memref<32x128xf32, #tpu.memory_space<vmem>>, vector<32x128xf32>
    %cst = arith.constant dense<0.000000e+00> : vector<64x128xf32>
    %2 = tpu.matmul %0, %1, %cst {dimension_numbers = #tpu.dot_dimension_numbers<[1], [0], [0], [1], [0, 0, 1, 1], [], []>} : vector<64x32xf32>, vector<32x128xf32>, vector<64x128xf32> -> vector<64x128xf32>
    %c0_3 = arith.constant 0 : index
    %c0_4 = arith.constant 0 : index
    %3 = vector.load %arg4[%c0_3, %c0_4] : memref<1x128xf32, #tpu.memory_space<vmem>>, vector<1x128xf32>
    %4 = vector.broadcast %3 : vector<1x128xf32> to vector<64x128xf32>
    %5 = arith.addf %2, %4 : vector<64x128xf32>
    %c0_5 = arith.constant 0 : index
    %c0_6 = arith.constant 0 : index
    %6 = vector.load %arg17[%c0_5, %c0_6] : memref<64x128xf32, #tpu.memory_space<vmem>>, vector<64x128xf32>
    tpu.vector_store %arg17[%c0_5, %c0_6], %5 {strides = array<i32>} : memref<64x128xf32, #tpu.memory_space<vmem>>, vector<64x128xf32>,
    %c0_7 = arith.constant 0 : index
    %c0_8 = arith.constant 0 : index
    %7 = vector.load %arg1[%c0_7, %c0_8] : memref<64x32xf32, #tpu.memory_space<vmem>>, vector<64x32xf32>
    %c0_9 = arith.constant 0 : index
    %c0_10 = arith.constant 0 : index
    %8 = vector.load %arg7[%c0_9, %c0_10] : memref<32x128xf32, #tpu.memory_space<vmem>>, vector<32x128xf32>
    %cst_11 = arith.constant dense<0.000000e+00> : vector<64x128xf32>
    %9 = tpu.matmul %7, %8, %cst_11 {dimension_numbers = #tpu.dot_dimension_numbers<[1], [0], [0], [1], [0, 0, 1, 1], [], []>} : vector<64x32xf32>, vector<32x128xf32>, vector<64x128xf32> -> vector<64x128xf32>
    %c0_12 = arith.constant 0 : index
    %c0_13 = arith.constant 0 : index
    %10 = vector.load %arg9[%c0_12, %c0_13] : memref<1x128xf32, #tpu.memory_space<vmem>>, vector<1x128xf32>
    %11 = vector.broadcast %10 : vector<1x128xf32> to vector<64x128xf32>
    %12 = arith.addf %9, %11 : vector<64x128xf32>
    %c0_14 = arith.constant 0 : index
    %c0_15 = arith.constant 0 : index
    %13 = vector.load %arg18[%c0_14, %c0_15] : memref<64x128xf32, #tpu.memory_space<vmem>>, vector<64x128xf32>
    tpu.vector_store %arg18[%c0_14, %c0_15], %12 {strides = array<i32>} : memref<64x128xf32, #tpu.memory_space<vmem>>, vector<64x128xf32>,
    %cst_16 = arith.constant 0.000000e+00 : f32
    %14 = vector.broadcast %cst_16 : f32 to vector<8x32xf32>
    %c0_17 = arith.constant 0 : index
    %c0_18 = arith.constant 0 : index
    %15 = vector.load %arg3[%c0_17, %c0_18] : memref<32x128xf32, #tpu.memory_space<vmem>>, vector<32x128xf32>
    %c0_19 = arith.constant 0 : index
    %c0_20 = arith.constant 0 : index
    %16 = vector.load %arg5[%c0_19, %c0_20] : memref<64x128xf32, #tpu.memory_space<vmem>>, vector<64x128xf32>
    %c0_21 = arith.constant 0 : index
    %c0_22 = arith.constant 0 : index
    %17 = vector.load %arg6[%c0_21, %c0_22] : memref<1x128xf32, #tpu.memory_space<vmem>>, vector<1x128xf32>
    %c0_i32 = arith.constant 0 : i32
    %c8_i32 = arith.constant 8 : i32
    %18 = arith.muli %c0_i32, %c8_i32 : i32
    %19 = tpu.assume_multiple %18, 8 : i32
    %20 = arith.index_cast %19 : i32 to index
    %c0_23 = arith.constant 0 : index
    %21 = vector.load %arg17[%20, %c0_23] : memref<64x128xf32, #tpu.memory_space<vmem>>, vector<8x128xf32>
    %cst_24 = arith.constant dense<0.000000e+00> : vector<8x128xf32>
    %22 = tpu.matmul %14, %15, %cst_24 {dimension_numbers = #tpu.dot_dimension_numbers<[1], [0], [0], [1], [0, 0, 1, 1], [], []>} : vector<8x32xf32>, vector<32x128xf32>, vector<8x128xf32> -> vector<8x128xf32>
    %23 = arith.addf %21, %22 : vector<8x128xf32>
    %24 = vector.extract_strided_slice %23 {offsets = [0, 0], sizes = [8, 32], strides = [1, 1]} : vector<8x128xf32> to vector<8x32xf32>
    %25 = arith.negf %24 : vector<8x32xf32>
    %26 = math.exp %25 : vector<8x32xf32>
    %cst_25 = arith.constant 1.000000e+00 : f32
    %27 = vector.broadcast %cst_25 : f32 to vector<8x32xf32>
    %28 = arith.addf %27, %26 : vector<8x32xf32>
    %29 = arith.divf %27, %28 : vector<8x32xf32>
    %30 = vector.extract_strided_slice %23 {offsets = [0, 32], sizes = [8, 32], strides = [1, 1]} : vector<8x128xf32> to vector<8x32xf32>
    %31 = arith.negf %30 : vector<8x32xf32>
    %32 = math.exp %31 : vector<8x32xf32>
    %cst_26 = arith.constant 1.000000e+00 : f32
    %33 = vector.broadcast %cst_26 : f32 to vector<8x32xf32>
    %34 = arith.addf %33, %32 : vector<8x32xf32>
    %35 = arith.divf %33, %34 : vector<8x32xf32>
    %36 = vector.extract_strided_slice %23 {offsets = [0, 64], sizes = [8, 32], strides = [1, 1]} : vector<8x128xf32> to vector<8x32xf32>
    %37 = math.tanh %36 : vector<8x32xf32>
    %38 = vector.extract_strided_slice %23 {offsets = [0, 96], sizes = [8, 32], strides = [1, 1]} : vector<8x128xf32> to vector<8x32xf32>
    %39 = arith.negf %38 : vector<8x32xf32>
    %40 = math.exp %39 : vector<8x32xf32>
    %cst_27 = arith.constant 1.000000e+00 : f32
    %41 = vector.broadcast %cst_27 : f32 to vector<8x32xf32>
    %42 = arith.addf %41, %40 : vector<8x32xf32>
    %43 = arith.divf %41, %42 : vector<8x32xf32>
    %44 = arith.mulf %35, %14 : vector<8x32xf32>
    %45 = arith.mulf %29, %37 : vector<8x32xf32>
    %46 = arith.addf %44, %45 : vector<8x32xf32>
    %47 = math.tanh %46 : vector<8x32xf32>
    %48 = arith.mulf %43, %47 : vector<8x32xf32>
    %49 = tpu.concatenate %48, %14 in 1 : vector<8x32xf32>, vector<8x32xf32> -> vector<8x64xf32>
    %cst_28 = arith.constant dense<0.000000e+00> : vector<8x128xf32>
    %50 = tpu.matmul %49, %16, %cst_28 {dimension_numbers = #tpu.dot_dimension_numbers<[1], [0], [0], [1], [0, 0, 1, 1], [], []>} : vector<8x64xf32>, vector<64x128xf32>, vector<8x128xf32> -> vector<8x128xf32>
    %51 = vector.broadcast %17 : vector<1x128xf32> to vector<8x128xf32>
    %52 = arith.addf %50, %51 : vector<8x128xf32>
    %53 = vector.extract_strided_slice %52 {offsets = [0, 0], sizes = [8, 32], strides = [1, 1]} : vector<8x128xf32> to vector<8x32xf32>
    %54 = arith.negf %53 : vector<8x32xf32>
    %55 = math.exp %54 : vector<8x32xf32>
    %cst_29 = arith.constant 1.000000e+00 : f32
    %56 = vector.broadcast %cst_29 : f32 to vector<8x32xf32>
    %57 = arith.addf %56, %55 : vector<8x32xf32>
    %58 = arith.divf %56, %57 : vector<8x32xf32>
    %59 = vector.extract_strided_slice %52 {offsets = [0, 32], sizes = [8, 32], strides = [1, 1]} : vector<8x128xf32> to vector<8x32xf32>
    %60 = arith.negf %59 : vector<8x32xf32>
    %61 = math.exp %60 : vector<8x32xf32>
    %cst_30 = arith.constant 1.000000e+00 : f32
    %62 = vector.broadcast %cst_30 : f32 to vector<8x32xf32>
    %63 = arith.addf %62, %61 : vector<8x32xf32>
    %64 = arith.divf %62, %63 : vector<8x32xf32>
    %65 = vector.extract_strided_slice %52 {offsets = [0, 64], sizes = [8, 32], strides = [1, 1]} : vector<8x128xf32> to vector<8x32xf32>
    %66 = math.tanh %65 : vector<8x32xf32>
    %67 = vector.extract_strided_slice %52 {offsets = [0, 96], sizes = [8, 32], strides = [1, 1]} : vector<8x128xf32> to vector<8x32xf32>
    %68 = arith.negf %67 : vector<8x32xf32>
    %69 = math.exp %68 : vector<8x32xf32>
    %cst_31 = arith.constant 1.000000e+00 : f32
    %70 = vector.broadcast %cst_31 : f32 to vector<8x32xf32>
    %71 = arith.addf %70, %69 : vector<8x32xf32>
    %72 = arith.divf %70, %71 : vector<8x32xf32>
    %73 = arith.mulf %64, %14 : vector<8x32xf32>
    %74 = arith.mulf %58, %66 : vector<8x32xf32>
    %75 = arith.addf %73, %74 : vector<8x32xf32>
    %76 = math.tanh %75 : vector<8x32xf32>
    %77 = arith.mulf %72, %76 : vector<8x32xf32>
    %78 = arith.index_cast %19 : i32 to index
    %c0_32 = arith.constant 0 : index
    %79 = vector.load %arg19[%78, %c0_32] : memref<64x32xf32, #tpu.memory_space<vmem>>, vector<8x32xf32>
    tpu.vector_store %arg19[%78, %c0_32], %77 {strides = array<i32>} : memref<64x32xf32, #tpu.memory_space<vmem>>, vector<8x32xf32>,
    %c1_i32 = arith.constant 1 : i32
    %c8_i32_33 = arith.constant 8 : i32
    %80 = arith.muli %c1_i32, %c8_i32_33 : i32
    %81 = tpu.assume_multiple %80, 8 : i32
    %82 = arith.index_cast %81 : i32 to index
    %c0_34 = arith.constant 0 : index
    %83 = vector.load %arg17[%82, %c0_34] : memref<64x128xf32, #tpu.memory_space<vmem>>, vector<8x128xf32>
    %cst_35 = arith.constant dense<0.000000e+00> : vector<8x128xf32>
    %84 = tpu.matmul %48, %15, %cst_35 {dimension_numbers = #tpu.dot_dimension_numbers<[1], [0], [0], [1], [0, 0, 1, 1], [], []>} : vector<8x32xf32>, vector<32x128xf32>, vector<8x128xf32> -> vector<8x128xf32>
    %85 = arith.addf %83, %84 : vector<8x128xf32>
    %86 = vector.extract_strided_slice %85 {offsets = [0, 0], sizes = [8, 32], strides = [1, 1]} : vector<8x128xf32> to vector<8x32xf32>
    %87 = arith.negf %86 : vector<8x32xf32>
    %88 = math.exp %87 : vector<8x32xf32>
    %cst_36 = arith.constant 1.000000e+00 : f32
    %89 = vector.broadcast %cst_36 : f32 to vector<8x32xf32>
    %90 = arith.addf %89, %88 : vector<8x32xf32>
    %91 = arith.divf %89, %90 : vector<8x32xf32>
    %92 = vector.extract_strided_slice %85 {offsets = [0, 32], sizes = [8, 32], strides = [1, 1]} : vector<8x128xf32> to vector<8x32xf32>
    %93 = arith.negf %92 : vector<8x32xf32>
    %94 = math.exp %93 : vector<8x32xf32>
    %cst_37 = arith.constant 1.000000e+00 : f32
    %95 = vector.broadcast %cst_37 : f32 to vector<8x32xf32>
    %96 = arith.addf %95, %94 : vector<8x32xf32>
    %97 = arith.divf %95, %96 : vector<8x32xf32>
    %98 = vector.extract_strided_slice %85 {offsets = [0, 64], sizes = [8, 32], strides = [1, 1]} : vector<8x128xf32> to vector<8x32xf32>
    %99 = math.tanh %98 : vector<8x32xf32>
    %100 = vector.extract_strided_slice %85 {offsets = [0, 96], sizes = [8, 32], strides = [1, 1]} : vector<8x128xf32> to vector<8x32xf32>
    %101 = arith.negf %100 : vector<8x32xf32>
    %102 = math.exp %101 : vector<8x32xf32>
    %cst_38 = arith.constant 1.000000e+00 : f32
    %103 = vector.broadcast %cst_38 : f32 to vector<8x32xf32>
    %104 = arith.addf %103, %102 : vector<8x32xf32>
    %105 = arith.divf %103, %104 : vector<8x32xf32>
    %106 = arith.mulf %97, %46 : vector<8x32xf32>
    %107 = arith.mulf %91, %99 : vector<8x32xf32>
    %108 = arith.addf %106, %107 : vector<8x32xf32>
    %109 = math.tanh %108 : vector<8x32xf32>
    %110 = arith.mulf %105, %109 : vector<8x32xf32>
    %111 = tpu.concatenate %110, %77 in 1 : vector<8x32xf32>, vector<8x32xf32> -> vector<8x64xf32>
    %cst_39 = arith.constant dense<0.000000e+00> : vector<8x128xf32>
    %112 = tpu.matmul %111, %16, %cst_39 {dimension_numbers = #tpu.dot_dimension_numbers<[1], [0], [0], [1], [0, 0, 1, 1], [], []>} : vector<8x64xf32>, vector<64x128xf32>, vector<8x128xf32> -> vector<8x128xf32>
    %113 = vector.broadcast %17 : vector<1x128xf32> to vector<8x128xf32>
    %114 = arith.addf %112, %113 : vector<8x128xf32>
    %115 = vector.extract_strided_slice %114 {offsets = [0, 0], sizes = [8, 32], strides = [1, 1]} : vector<8x128xf32> to vector<8x32xf32>
    %116 = arith.negf %115 : vector<8x32xf32>
    %117 = math.exp %116 : vector<8x32xf32>
    %cst_40 = arith.constant 1.000000e+00 : f32
    %118 = vector.broadcast %cst_40 : f32 to vector<8x32xf32>
    %119 = arith.addf %118, %117 : vector<8x32xf32>
    %120 = arith.divf %118, %119 : vector<8x32xf32>
    %121 = vector.extract_strided_slice %114 {offsets = [0, 32], sizes = [8, 32], strides = [1, 1]} : vector<8x128xf32> to vector<8x32xf32>
    %122 = arith.negf %121 : vector<8x32xf32>
    %123 = math.exp %122 : vector<8x32xf32>
    %cst_41 = arith.constant 1.000000e+00 : f32
    %124 = vector.broadcast %cst_41 : f32 to vector<8x32xf32>
    %125 = arith.addf %124, %123 : vector<8x32xf32>
    %126 = arith.divf %124, %125 : vector<8x32xf32>
    %127 = vector.extract_strided_slice %114 {offsets = [0, 64], sizes = [8, 32], strides = [1, 1]} : vector<8x128xf32> to vector<8x32xf32>
    %128 = math.tanh %127 : vector<8x32xf32>
    %129 = vector.extract_strided_slice %114 {offsets = [0, 96], sizes = [8, 32], strides = [1, 1]} : vector<8x128xf32> to vector<8x32xf32>
    %130 = arith.negf %129 : vector<8x32xf32>
    %131 = math.exp %130 : vector<8x32xf32>
    %cst_42 = arith.constant 1.000000e+00 : f32
    %132 = vector.broadcast %cst_42 : f32 to vector<8x32xf32>
    %133 = arith.addf %132, %131 : vector<8x32xf32>
    %134 = arith.divf %132, %133 : vector<8x32xf32>
    %135 = arith.mulf %126, %75 : vector<8x32xf32>
    %136 = arith.mulf %120, %128 : vector<8x32xf32>
    %137 = arith.addf %135, %136 : vector<8x32xf32>
    %138 = math.tanh %137 : vector<8x32xf32>
    %139 = arith.mulf %134, %138 : vector<8x32xf32>
    %140 = arith.index_cast %81 : i32 to index
    %c0_43 = arith.constant 0 : index
    %141 = vector.load %arg19[%140, %c0_43] : memref<64x32xf32, #tpu.memory_space<vmem>>, vector<8x32xf32>
    tpu.vector_store %arg19[%140, %c0_43], %139 {strides = array<i32>} : memref<64x32xf32, #tpu.memory_space<vmem>>, vector<8x32xf32>,
    %c2_i32 = arith.constant 2 : i32
    %c8_i32_44 = arith.constant 8 : i32
    %142 = arith.muli %c2_i32, %c8_i32_44 : i32
    %143 = tpu.assume_multiple %142, 8 : i32
    %144 = arith.index_cast %143 : i32 to index
    %c0_45 = arith.constant 0 : index
    %145 = vector.load %arg17[%144, %c0_45] : memref<64x128xf32, #tpu.memory_space<vmem>>, vector<8x128xf32>
    %cst_46 = arith.constant dense<0.000000e+00> : vector<8x128xf32>
    %146 = tpu.matmul %110, %15, %cst_46 {dimension_numbers = #tpu.dot_dimension_numbers<[1], [0], [0], [1], [0, 0, 1, 1], [], []>} : vector<8x32xf32>, vector<32x128xf32>, vector<8x128xf32> -> vector<8x128xf32>
    %147 = arith.addf %145, %146 : vector<8x128xf32>
    %148 = vector.extract_strided_slice %147 {offsets = [0, 0], sizes = [8, 32], strides = [1, 1]} : vector<8x128xf32> to vector<8x32xf32>
    %149 = arith.negf %148 : vector<8x32xf32>
    %150 = math.exp %149 : vector<8x32xf32>
    %cst_47 = arith.constant 1.000000e+00 : f32
    %151 = vector.broadcast %cst_47 : f32 to vector<8x32xf32>
    %152 = arith.addf %151, %150 : vector<8x32xf32>
    %153 = arith.divf %151, %152 : vector<8x32xf32>
    %154 = vector.extract_strided_slice %147 {offsets = [0, 32], sizes = [8, 32], strides = [1, 1]} : vector<8x128xf32> to vector<8x32xf32>
    %155 = arith.negf %154 : vector<8x32xf32>
    %156 = math.exp %155 : vector<8x32xf32>
    %cst_48 = arith.constant 1.000000e+00 : f32
    %157 = vector.broadcast %cst_48 : f32 to vector<8x32xf32>
    %158 = arith.addf %157, %156 : vector<8x32xf32>
    %159 = arith.divf %157, %158 : vector<8x32xf32>
    %160 = vector.extract_strided_slice %147 {offsets = [0, 64], sizes = [8, 32], strides = [1, 1]} : vector<8x128xf32> to vector<8x32xf32>
    %161 = math.tanh %160 : vector<8x32xf32>
    %162 = vector.extract_strided_slice %147 {offsets = [0, 96], sizes = [8, 32], strides = [1, 1]} : vector<8x128xf32> to vector<8x32xf32>
    %163 = arith.negf %162 : vector<8x32xf32>
    %164 = math.exp %163 : vector<8x32xf32>
    %cst_49 = arith.constant 1.000000e+00 : f32
    %165 = vector.broadcast %cst_49 : f32 to vector<8x32xf32>
    %166 = arith.addf %165, %164 : vector<8x32xf32>
    %167 = arith.divf %165, %166 : vector<8x32xf32>
    %168 = arith.mulf %159, %108 : vector<8x32xf32>
    %169 = arith.mulf %153, %161 : vector<8x32xf32>
    %170 = arith.addf %168, %169 : vector<8x32xf32>
    %171 = math.tanh %170 : vector<8x32xf32>
    %172 = arith.mulf %167, %171 : vector<8x32xf32>
    %173 = tpu.concatenate %172, %139 in 1 : vector<8x32xf32>, vector<8x32xf32> -> vector<8x64xf32>
    %cst_50 = arith.constant dense<0.000000e+00> : vector<8x128xf32>
    %174 = tpu.matmul %173, %16, %cst_50 {dimension_numbers = #tpu.dot_dimension_numbers<[1], [0], [0], [1], [0, 0, 1, 1], [], []>} : vector<8x64xf32>, vector<64x128xf32>, vector<8x128xf32> -> vector<8x128xf32>
    %175 = vector.broadcast %17 : vector<1x128xf32> to vector<8x128xf32>
    %176 = arith.addf %174, %175 : vector<8x128xf32>
    %177 = vector.extract_strided_slice %176 {offsets = [0, 0], sizes = [8, 32], strides = [1, 1]} : vector<8x128xf32> to vector<8x32xf32>
    %178 = arith.negf %177 : vector<8x32xf32>
    %179 = math.exp %178 : vector<8x32xf32>
    %cst_51 = arith.constant 1.000000e+00 : f32
    %180 = vector.broadcast %cst_51 : f32 to vector<8x32xf32>
    %181 = arith.addf %180, %179 : vector<8x32xf32>
    %182 = arith.divf %180, %181 : vector<8x32xf32>
    %183 = vector.extract_strided_slice %176 {offsets = [0, 32], sizes = [8, 32], strides = [1, 1]} : vector<8x128xf32> to vector<8x32xf32>
    %184 = arith.negf %183 : vector<8x32xf32>
    %185 = math.exp %184 : vector<8x32xf32>
    %cst_52 = arith.constant 1.000000e+00 : f32
    %186 = vector.broadcast %cst_52 : f32 to vector<8x32xf32>
    %187 = arith.addf %186, %185 : vector<8x32xf32>
    %188 = arith.divf %186, %187 : vector<8x32xf32>
    %189 = vector.extract_strided_slice %176 {offsets = [0, 64], sizes = [8, 32], strides = [1, 1]} : vector<8x128xf32> to vector<8x32xf32>
    %190 = math.tanh %189 : vector<8x32xf32>
    %191 = vector.extract_strided_slice %176 {offsets = [0, 96], sizes = [8, 32], strides = [1, 1]} : vector<8x128xf32> to vector<8x32xf32>
    %192 = arith.negf %191 : vector<8x32xf32>
    %193 = math.exp %192 : vector<8x32xf32>
    %cst_53 = arith.constant 1.000000e+00 : f32
    %194 = vector.broadcast %cst_53 : f32 to vector<8x32xf32>
    %195 = arith.addf %194, %193 : vector<8x32xf32>
    %196 = arith.divf %194, %195 : vector<8x32xf32>
    %197 = arith.mulf %188, %137 : vector<8x32xf32>
    %198 = arith.mulf %182, %190 : vector<8x32xf32>
    %199 = arith.addf %197, %198 : vector<8x32xf32>
    %200 = math.tanh %199 : vector<8x32xf32>
    %201 = arith.mulf %196, %200 : vector<8x32xf32>
    %202 = arith.index_cast %143 : i32 to index
    %c0_54 = arith.constant 0 : index
    %203 = vector.load %arg19[%202, %c0_54] : memref<64x32xf32, #tpu.memory_space<vmem>>, vector<8x32xf32>
    tpu.vector_store %arg19[%202, %c0_54], %201 {strides = array<i32>} : memref<64x32xf32, #tpu.memory_space<vmem>>, vector<8x32xf32>,
    %c3_i32 = arith.constant 3 : i32
    %c8_i32_55 = arith.constant 8 : i32
    %204 = arith.muli %c3_i32, %c8_i32_55 : i32
    %205 = tpu.assume_multiple %204, 8 : i32
    %206 = arith.index_cast %205 : i32 to index
    %c0_56 = arith.constant 0 : index
    %207 = vector.load %arg17[%206, %c0_56] : memref<64x128xf32, #tpu.memory_space<vmem>>, vector<8x128xf32>
    %cst_57 = arith.constant dense<0.000000e+00> : vector<8x128xf32>
    %208 = tpu.matmul %172, %15, %cst_57 {dimension_numbers = #tpu.dot_dimension_numbers<[1], [0], [0], [1], [0, 0, 1, 1], [], []>} : vector<8x32xf32>, vector<32x128xf32>, vector<8x128xf32> -> vector<8x128xf32>
    %209 = arith.addf %207, %208 : vector<8x128xf32>
    %210 = vector.extract_strided_slice %209 {offsets = [0, 0], sizes = [8, 32], strides = [1, 1]} : vector<8x128xf32> to vector<8x32xf32>
    %211 = arith.negf %210 : vector<8x32xf32>
    %212 = math.exp %211 : vector<8x32xf32>
    %cst_58 = arith.constant 1.000000e+00 : f32
    %213 = vector.broadcast %cst_58 : f32 to vector<8x32xf32>
    %214 = arith.addf %213, %212 : vector<8x32xf32>
    %215 = arith.divf %213, %214 : vector<8x32xf32>
    %216 = vector.extract_strided_slice %209 {offsets = [0, 32], sizes = [8, 32], strides = [1, 1]} : vector<8x128xf32> to vector<8x32xf32>
    %217 = arith.negf %216 : vector<8x32xf32>
    %218 = math.exp %217 : vector<8x32xf32>
    %cst_59 = arith.constant 1.000000e+00 : f32
    %219 = vector.broadcast %cst_59 : f32 to vector<8x32xf32>
    %220 = arith.addf %219, %218 : vector<8x32xf32>
    %221 = arith.divf %219, %220 : vector<8x32xf32>
    %222 = vector.extract_strided_slice %209 {offsets = [0, 64], sizes = [8, 32], strides = [1, 1]} : vector<8x128xf32> to vector<8x32xf32>
    %223 = math.tanh %222 : vector<8x32xf32>
    %224 = vector.extract_strided_slice %209 {offsets = [0, 96], sizes = [8, 32], strides = [1, 1]} : vector<8x128xf32> to vector<8x32xf32>
    %225 = arith.negf %224 : vector<8x32xf32>
    %226 = math.exp %225 : vector<8x32xf32>
    %cst_60 = arith.constant 1.000000e+00 : f32
    %227 = vector.broadcast %cst_60 : f32 to vector<8x32xf32>
    %228 = arith.addf %227, %226 : vector<8x32xf32>
    %229 = arith.divf %227, %228 : vector<8x32xf32>
    %230 = arith.mulf %221, %170 : vector<8x32xf32>
    %231 = arith.mulf %215, %223 : vector<8x32xf32>
    %232 = arith.addf %230, %231 : vector<8x32xf32>
    %233 = math.tanh %232 : vector<8x32xf32>
    %234 = arith.mulf %229, %233 : vector<8x32xf32>
    %235 = tpu.concatenate %234, %201 in 1 : vector<8x32xf32>, vector<8x32xf32> -> vector<8x64xf32>
    %cst_61 = arith.constant dense<0.000000e+00> : vector<8x128xf32>
    %236 = tpu.matmul %235, %16, %cst_61 {dimension_numbers = #tpu.dot_dimension_numbers<[1], [0], [0], [1], [0, 0, 1, 1], [], []>} : vector<8x64xf32>, vector<64x128xf32>, vector<8x128xf32> -> vector<8x128xf32>
    %237 = vector.broadcast %17 : vector<1x128xf32> to vector<8x128xf32>
    %238 = arith.addf %236, %237 : vector<8x128xf32>
    %239 = vector.extract_strided_slice %238 {offsets = [0, 0], sizes = [8, 32], strides = [1, 1]} : vector<8x128xf32> to vector<8x32xf32>
    %240 = arith.negf %239 : vector<8x32xf32>
    %241 = math.exp %240 : vector<8x32xf32>
    %cst_62 = arith.constant 1.000000e+00 : f32
    %242 = vector.broadcast %cst_62 : f32 to vector<8x32xf32>
    %243 = arith.addf %242, %241 : vector<8x32xf32>
    %244 = arith.divf %242, %243 : vector<8x32xf32>
    %245 = vector.extract_strided_slice %238 {offsets = [0, 32], sizes = [8, 32], strides = [1, 1]} : vector<8x128xf32> to vector<8x32xf32>
    %246 = arith.negf %245 : vector<8x32xf32>
    %247 = math.exp %246 : vector<8x32xf32>
    %cst_63 = arith.constant 1.000000e+00 : f32
    %248 = vector.broadcast %cst_63 : f32 to vector<8x32xf32>
    %249 = arith.addf %248, %247 : vector<8x32xf32>
    %250 = arith.divf %248, %249 : vector<8x32xf32>
    %251 = vector.extract_strided_slice %238 {offsets = [0, 64], sizes = [8, 32], strides = [1, 1]} : vector<8x128xf32> to vector<8x32xf32>
    %252 = math.tanh %251 : vector<8x32xf32>
    %253 = vector.extract_strided_slice %238 {offsets = [0, 96], sizes = [8, 32], strides = [1, 1]} : vector<8x128xf32> to vector<8x32xf32>
    %254 = arith.negf %253 : vector<8x32xf32>
    %255 = math.exp %254 : vector<8x32xf32>
    %cst_64 = arith.constant 1.000000e+00 : f32
    %256 = vector.broadcast %cst_64 : f32 to vector<8x32xf32>
    %257 = arith.addf %256, %255 : vector<8x32xf32>
    %258 = arith.divf %256, %257 : vector<8x32xf32>
    %259 = arith.mulf %250, %199 : vector<8x32xf32>
    %260 = arith.mulf %244, %252 : vector<8x32xf32>
    %261 = arith.addf %259, %260 : vector<8x32xf32>
    %262 = math.tanh %261 : vector<8x32xf32>
    %263 = arith.mulf %258, %262 : vector<8x32xf32>
    %264 = arith.index_cast %205 : i32 to index
    %c0_65 = arith.constant 0 : index
    %265 = vector.load %arg19[%264, %c0_65] : memref<64x32xf32, #tpu.memory_space<vmem>>, vector<8x32xf32>
    tpu.vector_store %arg19[%264, %c0_65], %263 {strides = array<i32>} : memref<64x32xf32, #tpu.memory_space<vmem>>, vector<8x32xf32>,
    %c4_i32 = arith.constant 4 : i32
    %c8_i32_66 = arith.constant 8 : i32
    %266 = arith.muli %c4_i32, %c8_i32_66 : i32
    %267 = tpu.assume_multiple %266, 8 : i32
    %268 = arith.index_cast %267 : i32 to index
    %c0_67 = arith.constant 0 : index
    %269 = vector.load %arg17[%268, %c0_67] : memref<64x128xf32, #tpu.memory_space<vmem>>, vector<8x128xf32>
    %cst_68 = arith.constant dense<0.000000e+00> : vector<8x128xf32>
    %270 = tpu.matmul %234, %15, %cst_68 {dimension_numbers = #tpu.dot_dimension_numbers<[1], [0], [0], [1], [0, 0, 1, 1], [], []>} : vector<8x32xf32>, vector<32x128xf32>, vector<8x128xf32> -> vector<8x128xf32>
    %271 = arith.addf %269, %270 : vector<8x128xf32>
    %272 = vector.extract_strided_slice %271 {offsets = [0, 0], sizes = [8, 32], strides = [1, 1]} : vector<8x128xf32> to vector<8x32xf32>
    %273 = arith.negf %272 : vector<8x32xf32>
    %274 = math.exp %273 : vector<8x32xf32>
    %cst_69 = arith.constant 1.000000e+00 : f32
    %275 = vector.broadcast %cst_69 : f32 to vector<8x32xf32>
    %276 = arith.addf %275, %274 : vector<8x32xf32>
    %277 = arith.divf %275, %276 : vector<8x32xf32>
    %278 = vector.extract_strided_slice %271 {offsets = [0, 32], sizes = [8, 32], strides = [1, 1]} : vector<8x128xf32> to vector<8x32xf32>
    %279 = arith.negf %278 : vector<8x32xf32>
    %280 = math.exp %279 : vector<8x32xf32>
    %cst_70 = arith.constant 1.000000e+00 : f32
    %281 = vector.broadcast %cst_70 : f32 to vector<8x32xf32>
    %282 = arith.addf %281, %280 : vector<8x32xf32>
    %283 = arith.divf %281, %282 : vector<8x32xf32>
    %284 = vector.extract_strided_slice %271 {offsets = [0, 64], sizes = [8, 32], strides = [1, 1]} : vector<8x128xf32> to vector<8x32xf32>
    %285 = math.tanh %284 : vector<8x32xf32>
    %286 = vector.extract_strided_slice %271 {offsets = [0, 96], sizes = [8, 32], strides = [1, 1]} : vector<8x128xf32> to vector<8x32xf32>
    %287 = arith.negf %286 : vector<8x32xf32>
    %288 = math.exp %287 : vector<8x32xf32>
    %cst_71 = arith.constant 1.000000e+00 : f32
    %289 = vector.broadcast %cst_71 : f32 to vector<8x32xf32>
    %290 = arith.addf %289, %288 : vector<8x32xf32>
    %291 = arith.divf %289, %290 : vector<8x32xf32>
    %292 = arith.mulf %283, %232 : vector<8x32xf32>
    %293 = arith.mulf %277, %285 : vector<8x32xf32>
    %294 = arith.addf %292, %293 : vector<8x32xf32>
    %295 = math.tanh %294 : vector<8x32xf32>
    %296 = arith.mulf %291, %295 : vector<8x32xf32>
    %297 = tpu.concatenate %296, %263 in 1 : vector<8x32xf32>, vector<8x32xf32> -> vector<8x64xf32>
    %cst_72 = arith.constant dense<0.000000e+00> : vector<8x128xf32>
    %298 = tpu.matmul %297, %16, %cst_72 {dimension_numbers = #tpu.dot_dimension_numbers<[1], [0], [0], [1], [0, 0, 1, 1], [], []>} : vector<8x64xf32>, vector<64x128xf32>, vector<8x128xf32> -> vector<8x128xf32>
    %299 = vector.broadcast %17 : vector<1x128xf32> to vector<8x128xf32>
    %300 = arith.addf %298, %299 : vector<8x128xf32>
    %301 = vector.extract_strided_slice %300 {offsets = [0, 0], sizes = [8, 32], strides = [1, 1]} : vector<8x128xf32> to vector<8x32xf32>
    %302 = arith.negf %301 : vector<8x32xf32>
    %303 = math.exp %302 : vector<8x32xf32>
    %cst_73 = arith.constant 1.000000e+00 : f32
    %304 = vector.broadcast %cst_73 : f32 to vector<8x32xf32>
    %305 = arith.addf %304, %303 : vector<8x32xf32>
    %306 = arith.divf %304, %305 : vector<8x32xf32>
    %307 = vector.extract_strided_slice %300 {offsets = [0, 32], sizes = [8, 32], strides = [1, 1]} : vector<8x128xf32> to vector<8x32xf32>
    %308 = arith.negf %307 : vector<8x32xf32>
    %309 = math.exp %308 : vector<8x32xf32>
    %cst_74 = arith.constant 1.000000e+00 : f32
    %310 = vector.broadcast %cst_74 : f32 to vector<8x32xf32>
    %311 = arith.addf %310, %309 : vector<8x32xf32>
    %312 = arith.divf %310, %311 : vector<8x32xf32>
    %313 = vector.extract_strided_slice %300 {offsets = [0, 64], sizes = [8, 32], strides = [1, 1]} : vector<8x128xf32> to vector<8x32xf32>
    %314 = math.tanh %313 : vector<8x32xf32>
    %315 = vector.extract_strided_slice %300 {offsets = [0, 96], sizes = [8, 32], strides = [1, 1]} : vector<8x128xf32> to vector<8x32xf32>
    %316 = arith.negf %315 : vector<8x32xf32>
    %317 = math.exp %316 : vector<8x32xf32>
    %cst_75 = arith.constant 1.000000e+00 : f32
    %318 = vector.broadcast %cst_75 : f32 to vector<8x32xf32>
    %319 = arith.addf %318, %317 : vector<8x32xf32>
    %320 = arith.divf %318, %319 : vector<8x32xf32>
    %321 = arith.mulf %312, %261 : vector<8x32xf32>
    %322 = arith.mulf %306, %314 : vector<8x32xf32>
    %323 = arith.addf %321, %322 : vector<8x32xf32>
    %324 = math.tanh %323 : vector<8x32xf32>
    %325 = arith.mulf %320, %324 : vector<8x32xf32>
    %326 = arith.index_cast %267 : i32 to index
    %c0_76 = arith.constant 0 : index
    %327 = vector.load %arg19[%326, %c0_76] : memref<64x32xf32, #tpu.memory_space<vmem>>, vector<8x32xf32>
    tpu.vector_store %arg19[%326, %c0_76], %325 {strides = array<i32>} : memref<64x32xf32, #tpu.memory_space<vmem>>, vector<8x32xf32>,
    %c5_i32 = arith.constant 5 : i32
    %c8_i32_77 = arith.constant 8 : i32
    %328 = arith.muli %c5_i32, %c8_i32_77 : i32
    %329 = tpu.assume_multiple %328, 8 : i32
    %330 = arith.index_cast %329 : i32 to index
    %c0_78 = arith.constant 0 : index
    %331 = vector.load %arg17[%330, %c0_78] : memref<64x128xf32, #tpu.memory_space<vmem>>, vector<8x128xf32>
    %cst_79 = arith.constant dense<0.000000e+00> : vector<8x128xf32>
    %332 = tpu.matmul %296, %15, %cst_79 {dimension_numbers = #tpu.dot_dimension_numbers<[1], [0], [0], [1], [0, 0, 1, 1], [], []>} : vector<8x32xf32>, vector<32x128xf32>, vector<8x128xf32> -> vector<8x128xf32>
    %333 = arith.addf %331, %332 : vector<8x128xf32>
    %334 = vector.extract_strided_slice %333 {offsets = [0, 0], sizes = [8, 32], strides = [1, 1]} : vector<8x128xf32> to vector<8x32xf32>
    %335 = arith.negf %334 : vector<8x32xf32>
    %336 = math.exp %335 : vector<8x32xf32>
    %cst_80 = arith.constant 1.000000e+00 : f32
    %337 = vector.broadcast %cst_80 : f32 to vector<8x32xf32>
    %338 = arith.addf %337, %336 : vector<8x32xf32>
    %339 = arith.divf %337, %338 : vector<8x32xf32>
    %340 = vector.extract_strided_slice %333 {offsets = [0, 32], sizes = [8, 32], strides = [1, 1]} : vector<8x128xf32> to vector<8x32xf32>
    %341 = arith.negf %340 : vector<8x32xf32>
    %342 = math.exp %341 : vector<8x32xf32>
    %cst_81 = arith.constant 1.000000e+00 : f32
    %343 = vector.broadcast %cst_81 : f32 to vector<8x32xf32>
    %344 = arith.addf %343, %342 : vector<8x32xf32>
    %345 = arith.divf %343, %344 : vector<8x32xf32>
    %346 = vector.extract_strided_slice %333 {offsets = [0, 64], sizes = [8, 32], strides = [1, 1]} : vector<8x128xf32> to vector<8x32xf32>
    %347 = math.tanh %346 : vector<8x32xf32>
    %348 = vector.extract_strided_slice %333 {offsets = [0, 96], sizes = [8, 32], strides = [1, 1]} : vector<8x128xf32> to vector<8x32xf32>
    %349 = arith.negf %348 : vector<8x32xf32>
    %350 = math.exp %349 : vector<8x32xf32>
    %cst_82 = arith.constant 1.000000e+00 : f32
    %351 = vector.broadcast %cst_82 : f32 to vector<8x32xf32>
    %352 = arith.addf %351, %350 : vector<8x32xf32>
    %353 = arith.divf %351, %352 : vector<8x32xf32>
    %354 = arith.mulf %345, %294 : vector<8x32xf32>
    %355 = arith.mulf %339, %347 : vector<8x32xf32>
    %356 = arith.addf %354, %355 : vector<8x32xf32>
    %357 = math.tanh %356 : vector<8x32xf32>
    %358 = arith.mulf %353, %357 : vector<8x32xf32>
    %359 = tpu.concatenate %358, %325 in 1 : vector<8x32xf32>, vector<8x32xf32> -> vector<8x64xf32>
    %cst_83 = arith.constant dense<0.000000e+00> : vector<8x128xf32>
    %360 = tpu.matmul %359, %16, %cst_83 {dimension_numbers = #tpu.dot_dimension_numbers<[1], [0], [0], [1], [0, 0, 1, 1], [], []>} : vector<8x64xf32>, vector<64x128xf32>, vector<8x128xf32> -> vector<8x128xf32>
    %361 = vector.broadcast %17 : vector<1x128xf32> to vector<8x128xf32>
    %362 = arith.addf %360, %361 : vector<8x128xf32>
    %363 = vector.extract_strided_slice %362 {offsets = [0, 0], sizes = [8, 32], strides = [1, 1]} : vector<8x128xf32> to vector<8x32xf32>
    %364 = arith.negf %363 : vector<8x32xf32>
    %365 = math.exp %364 : vector<8x32xf32>
    %cst_84 = arith.constant 1.000000e+00 : f32
    %366 = vector.broadcast %cst_84 : f32 to vector<8x32xf32>
    %367 = arith.addf %366, %365 : vector<8x32xf32>
    %368 = arith.divf %366, %367 : vector<8x32xf32>
    %369 = vector.extract_strided_slice %362 {offsets = [0, 32], sizes = [8, 32], strides = [1, 1]} : vector<8x128xf32> to vector<8x32xf32>
    %370 = arith.negf %369 : vector<8x32xf32>
    %371 = math.exp %370 : vector<8x32xf32>
    %cst_85 = arith.constant 1.000000e+00 : f32
    %372 = vector.broadcast %cst_85 : f32 to vector<8x32xf32>
    %373 = arith.addf %372, %371 : vector<8x32xf32>
    %374 = arith.divf %372, %373 : vector<8x32xf32>
    %375 = vector.extract_strided_slice %362 {offsets = [0, 64], sizes = [8, 32], strides = [1, 1]} : vector<8x128xf32> to vector<8x32xf32>
    %376 = math.tanh %375 : vector<8x32xf32>
    %377 = vector.extract_strided_slice %362 {offsets = [0, 96], sizes = [8, 32], strides = [1, 1]} : vector<8x128xf32> to vector<8x32xf32>
    %378 = arith.negf %377 : vector<8x32xf32>
    %379 = math.exp %378 : vector<8x32xf32>
    %cst_86 = arith.constant 1.000000e+00 : f32
    %380 = vector.broadcast %cst_86 : f32 to vector<8x32xf32>
    %381 = arith.addf %380, %379 : vector<8x32xf32>
    %382 = arith.divf %380, %381 : vector<8x32xf32>
    %383 = arith.mulf %374, %323 : vector<8x32xf32>
    %384 = arith.mulf %368, %376 : vector<8x32xf32>
    %385 = arith.addf %383, %384 : vector<8x32xf32>
    %386 = math.tanh %385 : vector<8x32xf32>
    %387 = arith.mulf %382, %386 : vector<8x32xf32>
    %388 = arith.index_cast %329 : i32 to index
    %c0_87 = arith.constant 0 : index
    %389 = vector.load %arg19[%388, %c0_87] : memref<64x32xf32, #tpu.memory_space<vmem>>, vector<8x32xf32>
    tpu.vector_store %arg19[%388, %c0_87], %387 {strides = array<i32>} : memref<64x32xf32, #tpu.memory_space<vmem>>, vector<8x32xf32>,
    %c6_i32 = arith.constant 6 : i32
    %c8_i32_88 = arith.constant 8 : i32
    %390 = arith.muli %c6_i32, %c8_i32_88 : i32
    %391 = tpu.assume_multiple %390, 8 : i32
    %392 = arith.index_cast %391 : i32 to index
    %c0_89 = arith.constant 0 : index
    %393 = vector.load %arg17[%392, %c0_89] : memref<64x128xf32, #tpu.memory_space<vmem>>, vector<8x128xf32>
    %cst_90 = arith.constant dense<0.000000e+00> : vector<8x128xf32>
    %394 = tpu.matmul %358, %15, %cst_90 {dimension_numbers = #tpu.dot_dimension_numbers<[1], [0], [0], [1], [0, 0, 1, 1], [], []>} : vector<8x32xf32>, vector<32x128xf32>, vector<8x128xf32> -> vector<8x128xf32>
    %395 = arith.addf %393, %394 : vector<8x128xf32>
    %396 = vector.extract_strided_slice %395 {offsets = [0, 0], sizes = [8, 32], strides = [1, 1]} : vector<8x128xf32> to vector<8x32xf32>
    %397 = arith.negf %396 : vector<8x32xf32>
    %398 = math.exp %397 : vector<8x32xf32>
    %cst_91 = arith.constant 1.000000e+00 : f32
    %399 = vector.broadcast %cst_91 : f32 to vector<8x32xf32>
    %400 = arith.addf %399, %398 : vector<8x32xf32>
    %401 = arith.divf %399, %400 : vector<8x32xf32>
    %402 = vector.extract_strided_slice %395 {offsets = [0, 32], sizes = [8, 32], strides = [1, 1]} : vector<8x128xf32> to vector<8x32xf32>
    %403 = arith.negf %402 : vector<8x32xf32>
    %404 = math.exp %403 : vector<8x32xf32>
    %cst_92 = arith.constant 1.000000e+00 : f32
    %405 = vector.broadcast %cst_92 : f32 to vector<8x32xf32>
    %406 = arith.addf %405, %404 : vector<8x32xf32>
    %407 = arith.divf %405, %406 : vector<8x32xf32>
    %408 = vector.extract_strided_slice %395 {offsets = [0, 64], sizes = [8, 32], strides = [1, 1]} : vector<8x128xf32> to vector<8x32xf32>
    %409 = math.tanh %408 : vector<8x32xf32>
    %410 = vector.extract_strided_slice %395 {offsets = [0, 96], sizes = [8, 32], strides = [1, 1]} : vector<8x128xf32> to vector<8x32xf32>
    %411 = arith.negf %410 : vector<8x32xf32>
    %412 = math.exp %411 : vector<8x32xf32>
    %cst_93 = arith.constant 1.000000e+00 : f32
    %413 = vector.broadcast %cst_93 : f32 to vector<8x32xf32>
    %414 = arith.addf %413, %412 : vector<8x32xf32>
    %415 = arith.divf %413, %414 : vector<8x32xf32>
    %416 = arith.mulf %407, %356 : vector<8x32xf32>
    %417 = arith.mulf %401, %409 : vector<8x32xf32>
    %418 = arith.addf %416, %417 : vector<8x32xf32>
    %419 = math.tanh %418 : vector<8x32xf32>
    %420 = arith.mulf %415, %419 : vector<8x32xf32>
    %421 = tpu.concatenate %420, %387 in 1 : vector<8x32xf32>, vector<8x32xf32> -> vector<8x64xf32>
    %cst_94 = arith.constant dense<0.000000e+00> : vector<8x128xf32>
    %422 = tpu.matmul %421, %16, %cst_94 {dimension_numbers = #tpu.dot_dimension_numbers<[1], [0], [0], [1], [0, 0, 1, 1], [], []>} : vector<8x64xf32>, vector<64x128xf32>, vector<8x128xf32> -> vector<8x128xf32>
    %423 = vector.broadcast %17 : vector<1x128xf32> to vector<8x128xf32>
    %424 = arith.addf %422, %423 : vector<8x128xf32>
    %425 = vector.extract_strided_slice %424 {offsets = [0, 0], sizes = [8, 32], strides = [1, 1]} : vector<8x128xf32> to vector<8x32xf32>
    %426 = arith.negf %425 : vector<8x32xf32>
    %427 = math.exp %426 : vector<8x32xf32>
    %cst_95 = arith.constant 1.000000e+00 : f32
    %428 = vector.broadcast %cst_95 : f32 to vector<8x32xf32>
    %429 = arith.addf %428, %427 : vector<8x32xf32>
    %430 = arith.divf %428, %429 : vector<8x32xf32>
    %431 = vector.extract_strided_slice %424 {offsets = [0, 32], sizes = [8, 32], strides = [1, 1]} : vector<8x128xf32> to vector<8x32xf32>
    %432 = arith.negf %431 : vector<8x32xf32>
    %433 = math.exp %432 : vector<8x32xf32>
    %cst_96 = arith.constant 1.000000e+00 : f32
    %434 = vector.broadcast %cst_96 : f32 to vector<8x32xf32>
    %435 = arith.addf %434, %433 : vector<8x32xf32>
    %436 = arith.divf %434, %435 : vector<8x32xf32>
    %437 = vector.extract_strided_slice %424 {offsets = [0, 64], sizes = [8, 32], strides = [1, 1]} : vector<8x128xf32> to vector<8x32xf32>
    %438 = math.tanh %437 : vector<8x32xf32>
    %439 = vector.extract_strided_slice %424 {offsets = [0, 96], sizes = [8, 32], strides = [1, 1]} : vector<8x128xf32> to vector<8x32xf32>
    %440 = arith.negf %439 : vector<8x32xf32>
    %441 = math.exp %440 : vector<8x32xf32>
    %cst_97 = arith.constant 1.000000e+00 : f32
    %442 = vector.broadcast %cst_97 : f32 to vector<8x32xf32>
    %443 = arith.addf %442, %441 : vector<8x32xf32>
    %444 = arith.divf %442, %443 : vector<8x32xf32>
    %445 = arith.mulf %436, %385 : vector<8x32xf32>
    %446 = arith.mulf %430, %438 : vector<8x32xf32>
    %447 = arith.addf %445, %446 : vector<8x32xf32>
    %448 = math.tanh %447 : vector<8x32xf32>
    %449 = arith.mulf %444, %448 : vector<8x32xf32>
    %450 = arith.index_cast %391 : i32 to index
    %c0_98 = arith.constant 0 : index
    %451 = vector.load %arg19[%450, %c0_98] : memref<64x32xf32, #tpu.memory_space<vmem>>, vector<8x32xf32>
    tpu.vector_store %arg19[%450, %c0_98], %449 {strides = array<i32>} : memref<64x32xf32, #tpu.memory_space<vmem>>, vector<8x32xf32>,
    %c7_i32 = arith.constant 7 : i32
    %c8_i32_99 = arith.constant 8 : i32
    %452 = arith.muli %c7_i32, %c8_i32_99 : i32
    %453 = tpu.assume_multiple %452, 8 : i32
    %454 = arith.index_cast %453 : i32 to index
    %c0_100 = arith.constant 0 : index
    %455 = vector.load %arg17[%454, %c0_100] : memref<64x128xf32, #tpu.memory_space<vmem>>, vector<8x128xf32>
    %cst_101 = arith.constant dense<0.000000e+00> : vector<8x128xf32>
    %456 = tpu.matmul %420, %15, %cst_101 {dimension_numbers = #tpu.dot_dimension_numbers<[1], [0], [0], [1], [0, 0, 1, 1], [], []>} : vector<8x32xf32>, vector<32x128xf32>, vector<8x128xf32> -> vector<8x128xf32>
    %457 = arith.addf %455, %456 : vector<8x128xf32>
    %458 = vector.extract_strided_slice %457 {offsets = [0, 0], sizes = [8, 32], strides = [1, 1]} : vector<8x128xf32> to vector<8x32xf32>
    %459 = arith.negf %458 : vector<8x32xf32>
    %460 = math.exp %459 : vector<8x32xf32>
    %cst_102 = arith.constant 1.000000e+00 : f32
    %461 = vector.broadcast %cst_102 : f32 to vector<8x32xf32>
    %462 = arith.addf %461, %460 : vector<8x32xf32>
    %463 = arith.divf %461, %462 : vector<8x32xf32>
    %464 = vector.extract_strided_slice %457 {offsets = [0, 32], sizes = [8, 32], strides = [1, 1]} : vector<8x128xf32> to vector<8x32xf32>
    %465 = arith.negf %464 : vector<8x32xf32>
    %466 = math.exp %465 : vector<8x32xf32>
    %cst_103 = arith.constant 1.000000e+00 : f32
    %467 = vector.broadcast %cst_103 : f32 to vector<8x32xf32>
    %468 = arith.addf %467, %466 : vector<8x32xf32>
    %469 = arith.divf %467, %468 : vector<8x32xf32>
    %470 = vector.extract_strided_slice %457 {offsets = [0, 64], sizes = [8, 32], strides = [1, 1]} : vector<8x128xf32> to vector<8x32xf32>
    %471 = math.tanh %470 : vector<8x32xf32>
    %472 = vector.extract_strided_slice %457 {offsets = [0, 96], sizes = [8, 32], strides = [1, 1]} : vector<8x128xf32> to vector<8x32xf32>
    %473 = arith.negf %472 : vector<8x32xf32>
    %474 = math.exp %473 : vector<8x32xf32>
    %cst_104 = arith.constant 1.000000e+00 : f32
    %475 = vector.broadcast %cst_104 : f32 to vector<8x32xf32>
    %476 = arith.addf %475, %474 : vector<8x32xf32>
    %477 = arith.divf %475, %476 : vector<8x32xf32>
    %478 = arith.mulf %469, %418 : vector<8x32xf32>
    %479 = arith.mulf %463, %471 : vector<8x32xf32>
    %480 = arith.addf %478, %479 : vector<8x32xf32>
    %481 = math.tanh %480 : vector<8x32xf32>
    %482 = arith.mulf %477, %481 : vector<8x32xf32>
    %483 = tpu.concatenate %482, %449 in 1 : vector<8x32xf32>, vector<8x32xf32> -> vector<8x64xf32>
    %cst_105 = arith.constant dense<0.000000e+00> : vector<8x128xf32>
    %484 = tpu.matmul %483, %16, %cst_105 {dimension_numbers = #tpu.dot_dimension_numbers<[1], [0], [0], [1], [0, 0, 1, 1], [], []>} : vector<8x64xf32>, vector<64x128xf32>, vector<8x128xf32> -> vector<8x128xf32>
    %485 = vector.broadcast %17 : vector<1x128xf32> to vector<8x128xf32>
    %486 = arith.addf %484, %485 : vector<8x128xf32>
    %487 = vector.extract_strided_slice %486 {offsets = [0, 0], sizes = [8, 32], strides = [1, 1]} : vector<8x128xf32> to vector<8x32xf32>
    %488 = arith.negf %487 : vector<8x32xf32>
    %489 = math.exp %488 : vector<8x32xf32>
    %cst_106 = arith.constant 1.000000e+00 : f32
    %490 = vector.broadcast %cst_106 : f32 to vector<8x32xf32>
    %491 = arith.addf %490, %489 : vector<8x32xf32>
    %492 = arith.divf %490, %491 : vector<8x32xf32>
    %493 = vector.extract_strided_slice %486 {offsets = [0, 32], sizes = [8, 32], strides = [1, 1]} : vector<8x128xf32> to vector<8x32xf32>
    %494 = arith.negf %493 : vector<8x32xf32>
    %495 = math.exp %494 : vector<8x32xf32>
    %cst_107 = arith.constant 1.000000e+00 : f32
    %496 = vector.broadcast %cst_107 : f32 to vector<8x32xf32>
    %497 = arith.addf %496, %495 : vector<8x32xf32>
    %498 = arith.divf %496, %497 : vector<8x32xf32>
    %499 = vector.extract_strided_slice %486 {offsets = [0, 64], sizes = [8, 32], strides = [1, 1]} : vector<8x128xf32> to vector<8x32xf32>
    %500 = math.tanh %499 : vector<8x32xf32>
    %501 = vector.extract_strided_slice %486 {offsets = [0, 96], sizes = [8, 32], strides = [1, 1]} : vector<8x128xf32> to vector<8x32xf32>
    %502 = arith.negf %501 : vector<8x32xf32>
    %503 = math.exp %502 : vector<8x32xf32>
    %cst_108 = arith.constant 1.000000e+00 : f32
    %504 = vector.broadcast %cst_108 : f32 to vector<8x32xf32>
    %505 = arith.addf %504, %503 : vector<8x32xf32>
    %506 = arith.divf %504, %505 : vector<8x32xf32>
    %507 = arith.mulf %498, %447 : vector<8x32xf32>
    %508 = arith.mulf %492, %500 : vector<8x32xf32>
    %509 = arith.addf %507, %508 : vector<8x32xf32>
    %510 = math.tanh %509 : vector<8x32xf32>
    %511 = arith.mulf %506, %510 : vector<8x32xf32>
    %512 = arith.index_cast %453 : i32 to index
    %c0_109 = arith.constant 0 : index
    %513 = vector.load %arg19[%512, %c0_109] : memref<64x32xf32, #tpu.memory_space<vmem>>, vector<8x32xf32>
    tpu.vector_store %arg19[%512, %c0_109], %511 {strides = array<i32>} : memref<64x32xf32, #tpu.memory_space<vmem>>, vector<8x32xf32>,
    %c8_i32_110 = arith.constant 8 : i32
    %c0_111 = arith.constant 0 : index
    %c0_112 = arith.constant 0 : index
    %514 = vector.load %arg8[%c0_111, %c0_112] : memref<32x128xf32, #tpu.memory_space<vmem>>, vector<32x128xf32>
    %c0_113 = arith.constant 0 : index
    %c0_114 = arith.constant 0 : index
    %515 = vector.load %arg10[%c0_113, %c0_114] : memref<64x128xf32, #tpu.memory_space<vmem>>, vector<64x128xf32>
    %c0_115 = arith.constant 0 : index
    %c0_116 = arith.constant 0 : index
    %516 = vector.load %arg11[%c0_115, %c0_116] : memref<1x128xf32, #tpu.memory_space<vmem>>, vector<1x128xf32>
    %c0_i32_117 = arith.constant 0 : i32
    %c8_i32_118 = arith.constant 8 : i32
    %517 = arith.muli %c0_i32_117, %c8_i32_118 : i32
    %518 = tpu.assume_multiple %517, 8 : i32
    %519 = arith.index_cast %518 : i32 to index
    %c0_119 = arith.constant 0 : index
    %520 = vector.load %arg18[%519, %c0_119] : memref<64x128xf32, #tpu.memory_space<vmem>>, vector<8x128xf32>
    %cst_120 = arith.constant dense<0.000000e+00> : vector<8x128xf32>
    %521 = tpu.matmul %482, %514, %cst_120 {dimension_numbers = #tpu.dot_dimension_numbers<[1], [0], [0], [1], [0, 0, 1, 1], [], []>} : vector<8x32xf32>, vector<32x128xf32>, vector<8x128xf32> -> vector<8x128xf32>
    %522 = arith.addf %520, %521 : vector<8x128xf32>
    %523 = vector.extract_strided_slice %522 {offsets = [0, 0], sizes = [8, 32], strides = [1, 1]} : vector<8x128xf32> to vector<8x32xf32>
    %524 = arith.negf %523 : vector<8x32xf32>
    %525 = math.exp %524 : vector<8x32xf32>
    %cst_121 = arith.constant 1.000000e+00 : f32
    %526 = vector.broadcast %cst_121 : f32 to vector<8x32xf32>
    %527 = arith.addf %526, %525 : vector<8x32xf32>
    %528 = arith.divf %526, %527 : vector<8x32xf32>
    %529 = vector.extract_strided_slice %522 {offsets = [0, 32], sizes = [8, 32], strides = [1, 1]} : vector<8x128xf32> to vector<8x32xf32>
    %530 = arith.negf %529 : vector<8x32xf32>
    %531 = math.exp %530 : vector<8x32xf32>
    %cst_122 = arith.constant 1.000000e+00 : f32
    %532 = vector.broadcast %cst_122 : f32 to vector<8x32xf32>
    %533 = arith.addf %532, %531 : vector<8x32xf32>
    %534 = arith.divf %532, %533 : vector<8x32xf32>
    %535 = vector.extract_strided_slice %522 {offsets = [0, 64], sizes = [8, 32], strides = [1, 1]} : vector<8x128xf32> to vector<8x32xf32>
    %536 = math.tanh %535 : vector<8x32xf32>
    %537 = vector.extract_strided_slice %522 {offsets = [0, 96], sizes = [8, 32], strides = [1, 1]} : vector<8x128xf32> to vector<8x32xf32>
    %538 = arith.negf %537 : vector<8x32xf32>
    %539 = math.exp %538 : vector<8x32xf32>
    %cst_123 = arith.constant 1.000000e+00 : f32
    %540 = vector.broadcast %cst_123 : f32 to vector<8x32xf32>
    %541 = arith.addf %540, %539 : vector<8x32xf32>
    %542 = arith.divf %540, %541 : vector<8x32xf32>
    %543 = arith.mulf %534, %480 : vector<8x32xf32>
    %544 = arith.mulf %528, %536 : vector<8x32xf32>
    %545 = arith.addf %543, %544 : vector<8x32xf32>
    %546 = math.tanh %545 : vector<8x32xf32>
    %547 = arith.mulf %542, %546 : vector<8x32xf32>
    %548 = tpu.concatenate %547, %511 in 1 : vector<8x32xf32>, vector<8x32xf32> -> vector<8x64xf32>
    %cst_124 = arith.constant dense<0.000000e+00> : vector<8x128xf32>
    %549 = tpu.matmul %548, %515, %cst_124 {dimension_numbers = #tpu.dot_dimension_numbers<[1], [0], [0], [1], [0, 0, 1, 1], [], []>} : vector<8x64xf32>, vector<64x128xf32>, vector<8x128xf32> -> vector<8x128xf32>
    %550 = vector.broadcast %516 : vector<1x128xf32> to vector<8x128xf32>
    %551 = arith.addf %549, %550 : vector<8x128xf32>
    %552 = vector.extract_strided_slice %551 {offsets = [0, 0], sizes = [8, 32], strides = [1, 1]} : vector<8x128xf32> to vector<8x32xf32>
    %553 = arith.negf %552 : vector<8x32xf32>
    %554 = math.exp %553 : vector<8x32xf32>
    %cst_125 = arith.constant 1.000000e+00 : f32
    %555 = vector.broadcast %cst_125 : f32 to vector<8x32xf32>
    %556 = arith.addf %555, %554 : vector<8x32xf32>
    %557 = arith.divf %555, %556 : vector<8x32xf32>
    %558 = vector.extract_strided_slice %551 {offsets = [0, 32], sizes = [8, 32], strides = [1, 1]} : vector<8x128xf32> to vector<8x32xf32>
    %559 = arith.negf %558 : vector<8x32xf32>
    %560 = math.exp %559 : vector<8x32xf32>
    %cst_126 = arith.constant 1.000000e+00 : f32
    %561 = vector.broadcast %cst_126 : f32 to vector<8x32xf32>
    %562 = arith.addf %561, %560 : vector<8x32xf32>
    %563 = arith.divf %561, %562 : vector<8x32xf32>
    %564 = vector.extract_strided_slice %551 {offsets = [0, 64], sizes = [8, 32], strides = [1, 1]} : vector<8x128xf32> to vector<8x32xf32>
    %565 = math.tanh %564 : vector<8x32xf32>
    %566 = vector.extract_strided_slice %551 {offsets = [0, 96], sizes = [8, 32], strides = [1, 1]} : vector<8x128xf32> to vector<8x32xf32>
    %567 = arith.negf %566 : vector<8x32xf32>
    %568 = math.exp %567 : vector<8x32xf32>
    %cst_127 = arith.constant 1.000000e+00 : f32
    %569 = vector.broadcast %cst_127 : f32 to vector<8x32xf32>
    %570 = arith.addf %569, %568 : vector<8x32xf32>
    %571 = arith.divf %569, %570 : vector<8x32xf32>
    %572 = arith.mulf %563, %509 : vector<8x32xf32>
    %573 = arith.mulf %557, %565 : vector<8x32xf32>
    %574 = arith.addf %572, %573 : vector<8x32xf32>
    %575 = math.tanh %574 : vector<8x32xf32>
    %576 = arith.mulf %571, %575 : vector<8x32xf32>
    %577 = arith.index_cast %518 : i32 to index
    %c0_128 = arith.constant 0 : index
    %578 = vector.load %arg20[%577, %c0_128] : memref<64x32xf32, #tpu.memory_space<vmem>>, vector<8x32xf32>
    tpu.vector_store %arg20[%577, %c0_128], %576 {strides = array<i32>} : memref<64x32xf32, #tpu.memory_space<vmem>>, vector<8x32xf32>,
    %c1_i32_129 = arith.constant 1 : i32
    %c8_i32_130 = arith.constant 8 : i32
    %579 = arith.muli %c1_i32_129, %c8_i32_130 : i32
    %580 = tpu.assume_multiple %579, 8 : i32
    %581 = arith.index_cast %580 : i32 to index
    %c0_131 = arith.constant 0 : index
    %582 = vector.load %arg18[%581, %c0_131] : memref<64x128xf32, #tpu.memory_space<vmem>>, vector<8x128xf32>
    %cst_132 = arith.constant dense<0.000000e+00> : vector<8x128xf32>
    %583 = tpu.matmul %547, %514, %cst_132 {dimension_numbers = #tpu.dot_dimension_numbers<[1], [0], [0], [1], [0, 0, 1, 1], [], []>} : vector<8x32xf32>, vector<32x128xf32>, vector<8x128xf32> -> vector<8x128xf32>
    %584 = arith.addf %582, %583 : vector<8x128xf32>
    %585 = vector.extract_strided_slice %584 {offsets = [0, 0], sizes = [8, 32], strides = [1, 1]} : vector<8x128xf32> to vector<8x32xf32>
    %586 = arith.negf %585 : vector<8x32xf32>
    %587 = math.exp %586 : vector<8x32xf32>
    %cst_133 = arith.constant 1.000000e+00 : f32
    %588 = vector.broadcast %cst_133 : f32 to vector<8x32xf32>
    %589 = arith.addf %588, %587 : vector<8x32xf32>
    %590 = arith.divf %588, %589 : vector<8x32xf32>
    %591 = vector.extract_strided_slice %584 {offsets = [0, 32], sizes = [8, 32], strides = [1, 1]} : vector<8x128xf32> to vector<8x32xf32>
    %592 = arith.negf %591 : vector<8x32xf32>
    %593 = math.exp %592 : vector<8x32xf32>
    %cst_134 = arith.constant 1.000000e+00 : f32
    %594 = vector.broadcast %cst_134 : f32 to vector<8x32xf32>
    %595 = arith.addf %594, %593 : vector<8x32xf32>
    %596 = arith.divf %594, %595 : vector<8x32xf32>
    %597 = vector.extract_strided_slice %584 {offsets = [0, 64], sizes = [8, 32], strides = [1, 1]} : vector<8x128xf32> to vector<8x32xf32>
    %598 = math.tanh %597 : vector<8x32xf32>
    %599 = vector.extract_strided_slice %584 {offsets = [0, 96], sizes = [8, 32], strides = [1, 1]} : vector<8x128xf32> to vector<8x32xf32>
    %600 = arith.negf %599 : vector<8x32xf32>
    %601 = math.exp %600 : vector<8x32xf32>
    %cst_135 = arith.constant 1.000000e+00 : f32
    %602 = vector.broadcast %cst_135 : f32 to vector<8x32xf32>
    %603 = arith.addf %602, %601 : vector<8x32xf32>
    %604 = arith.divf %602, %603 : vector<8x32xf32>
    %605 = arith.mulf %596, %545 : vector<8x32xf32>
    %606 = arith.mulf %590, %598 : vector<8x32xf32>
    %607 = arith.addf %605, %606 : vector<8x32xf32>
    %608 = math.tanh %607 : vector<8x32xf32>
    %609 = arith.mulf %604, %608 : vector<8x32xf32>
    %610 = tpu.concatenate %609, %576 in 1 : vector<8x32xf32>, vector<8x32xf32> -> vector<8x64xf32>
    %cst_136 = arith.constant dense<0.000000e+00> : vector<8x128xf32>
    %611 = tpu.matmul %610, %515, %cst_136 {dimension_numbers = #tpu.dot_dimension_numbers<[1], [0], [0], [1], [0, 0, 1, 1], [], []>} : vector<8x64xf32>, vector<64x128xf32>, vector<8x128xf32> -> vector<8x128xf32>
    %612 = vector.broadcast %516 : vector<1x128xf32> to vector<8x128xf32>
    %613 = arith.addf %611, %612 : vector<8x128xf32>
    %614 = vector.extract_strided_slice %613 {offsets = [0, 0], sizes = [8, 32], strides = [1, 1]} : vector<8x128xf32> to vector<8x32xf32>
    %615 = arith.negf %614 : vector<8x32xf32>
    %616 = math.exp %615 : vector<8x32xf32>
    %cst_137 = arith.constant 1.000000e+00 : f32
    %617 = vector.broadcast %cst_137 : f32 to vector<8x32xf32>
    %618 = arith.addf %617, %616 : vector<8x32xf32>
    %619 = arith.divf %617, %618 : vector<8x32xf32>
    %620 = vector.extract_strided_slice %613 {offsets = [0, 32], sizes = [8, 32], strides = [1, 1]} : vector<8x128xf32> to vector<8x32xf32>
    %621 = arith.negf %620 : vector<8x32xf32>
    %622 = math.exp %621 : vector<8x32xf32>
    %cst_138 = arith.constant 1.000000e+00 : f32
    %623 = vector.broadcast %cst_138 : f32 to vector<8x32xf32>
    %624 = arith.addf %623, %622 : vector<8x32xf32>
    %625 = arith.divf %623, %624 : vector<8x32xf32>
    %626 = vector.extract_strided_slice %613 {offsets = [0, 64], sizes = [8, 32], strides = [1, 1]} : vector<8x128xf32> to vector<8x32xf32>
    %627 = math.tanh %626 : vector<8x32xf32>
    %628 = vector.extract_strided_slice %613 {offsets = [0, 96], sizes = [8, 32], strides = [1, 1]} : vector<8x128xf32> to vector<8x32xf32>
    %629 = arith.negf %628 : vector<8x32xf32>
    %630 = math.exp %629 : vector<8x32xf32>
    %cst_139 = arith.constant 1.000000e+00 : f32
    %631 = vector.broadcast %cst_139 : f32 to vector<8x32xf32>
    %632 = arith.addf %631, %630 : vector<8x32xf32>
    %633 = arith.divf %631, %632 : vector<8x32xf32>
    %634 = arith.mulf %625, %574 : vector<8x32xf32>
    %635 = arith.mulf %619, %627 : vector<8x32xf32>
    %636 = arith.addf %634, %635 : vector<8x32xf32>
    %637 = math.tanh %636 : vector<8x32xf32>
    %638 = arith.mulf %633, %637 : vector<8x32xf32>
    %639 = arith.index_cast %580 : i32 to index
    %c0_140 = arith.constant 0 : index
    %640 = vector.load %arg20[%639, %c0_140] : memref<64x32xf32, #tpu.memory_space<vmem>>, vector<8x32xf32>
    tpu.vector_store %arg20[%639, %c0_140], %638 {strides = array<i32>} : memref<64x32xf32, #tpu.memory_space<vmem>>, vector<8x32xf32>,
    %c2_i32_141 = arith.constant 2 : i32
    %c8_i32_142 = arith.constant 8 : i32
    %641 = arith.muli %c2_i32_141, %c8_i32_142 : i32
    %642 = tpu.assume_multiple %641, 8 : i32
    %643 = arith.index_cast %642 : i32 to index
    %c0_143 = arith.constant 0 : index
    %644 = vector.load %arg18[%643, %c0_143] : memref<64x128xf32, #tpu.memory_space<vmem>>, vector<8x128xf32>
    %cst_144 = arith.constant dense<0.000000e+00> : vector<8x128xf32>
    %645 = tpu.matmul %609, %514, %cst_144 {dimension_numbers = #tpu.dot_dimension_numbers<[1], [0], [0], [1], [0, 0, 1, 1], [], []>} : vector<8x32xf32>, vector<32x128xf32>, vector<8x128xf32> -> vector<8x128xf32>
    %646 = arith.addf %644, %645 : vector<8x128xf32>
    %647 = vector.extract_strided_slice %646 {offsets = [0, 0], sizes = [8, 32], strides = [1, 1]} : vector<8x128xf32> to vector<8x32xf32>
    %648 = arith.negf %647 : vector<8x32xf32>
    %649 = math.exp %648 : vector<8x32xf32>
    %cst_145 = arith.constant 1.000000e+00 : f32
    %650 = vector.broadcast %cst_145 : f32 to vector<8x32xf32>
    %651 = arith.addf %650, %649 : vector<8x32xf32>
    %652 = arith.divf %650, %651 : vector<8x32xf32>
    %653 = vector.extract_strided_slice %646 {offsets = [0, 32], sizes = [8, 32], strides = [1, 1]} : vector<8x128xf32> to vector<8x32xf32>
    %654 = arith.negf %653 : vector<8x32xf32>
    %655 = math.exp %654 : vector<8x32xf32>
    %cst_146 = arith.constant 1.000000e+00 : f32
    %656 = vector.broadcast %cst_146 : f32 to vector<8x32xf32>
    %657 = arith.addf %656, %655 : vector<8x32xf32>
    %658 = arith.divf %656, %657 : vector<8x32xf32>
    %659 = vector.extract_strided_slice %646 {offsets = [0, 64], sizes = [8, 32], strides = [1, 1]} : vector<8x128xf32> to vector<8x32xf32>
    %660 = math.tanh %659 : vector<8x32xf32>
    %661 = vector.extract_strided_slice %646 {offsets = [0, 96], sizes = [8, 32], strides = [1, 1]} : vector<8x128xf32> to vector<8x32xf32>
    %662 = arith.negf %661 : vector<8x32xf32>
    %663 = math.exp %662 : vector<8x32xf32>
    %cst_147 = arith.constant 1.000000e+00 : f32
    %664 = vector.broadcast %cst_147 : f32 to vector<8x32xf32>
    %665 = arith.addf %664, %663 : vector<8x32xf32>
    %666 = arith.divf %664, %665 : vector<8x32xf32>
    %667 = arith.mulf %658, %607 : vector<8x32xf32>
    %668 = arith.mulf %652, %660 : vector<8x32xf32>
    %669 = arith.addf %667, %668 : vector<8x32xf32>
    %670 = math.tanh %669 : vector<8x32xf32>
    %671 = arith.mulf %666, %670 : vector<8x32xf32>
    %672 = tpu.concatenate %671, %638 in 1 : vector<8x32xf32>, vector<8x32xf32> -> vector<8x64xf32>
    %cst_148 = arith.constant dense<0.000000e+00> : vector<8x128xf32>
    %673 = tpu.matmul %672, %515, %cst_148 {dimension_numbers = #tpu.dot_dimension_numbers<[1], [0], [0], [1], [0, 0, 1, 1], [], []>} : vector<8x64xf32>, vector<64x128xf32>, vector<8x128xf32> -> vector<8x128xf32>
    %674 = vector.broadcast %516 : vector<1x128xf32> to vector<8x128xf32>
    %675 = arith.addf %673, %674 : vector<8x128xf32>
    %676 = vector.extract_strided_slice %675 {offsets = [0, 0], sizes = [8, 32], strides = [1, 1]} : vector<8x128xf32> to vector<8x32xf32>
    %677 = arith.negf %676 : vector<8x32xf32>
    %678 = math.exp %677 : vector<8x32xf32>
    %cst_149 = arith.constant 1.000000e+00 : f32
    %679 = vector.broadcast %cst_149 : f32 to vector<8x32xf32>
    %680 = arith.addf %679, %678 : vector<8x32xf32>
    %681 = arith.divf %679, %680 : vector<8x32xf32>
    %682 = vector.extract_strided_slice %675 {offsets = [0, 32], sizes = [8, 32], strides = [1, 1]} : vector<8x128xf32> to vector<8x32xf32>
    %683 = arith.negf %682 : vector<8x32xf32>
    %684 = math.exp %683 : vector<8x32xf32>
    %cst_150 = arith.constant 1.000000e+00 : f32
    %685 = vector.broadcast %cst_150 : f32 to vector<8x32xf32>
    %686 = arith.addf %685, %684 : vector<8x32xf32>
    %687 = arith.divf %685, %686 : vector<8x32xf32>
    %688 = vector.extract_strided_slice %675 {offsets = [0, 64], sizes = [8, 32], strides = [1, 1]} : vector<8x128xf32> to vector<8x32xf32>
    %689 = math.tanh %688 : vector<8x32xf32>
    %690 = vector.extract_strided_slice %675 {offsets = [0, 96], sizes = [8, 32], strides = [1, 1]} : vector<8x128xf32> to vector<8x32xf32>
    %691 = arith.negf %690 : vector<8x32xf32>
    %692 = math.exp %691 : vector<8x32xf32>
    %cst_151 = arith.constant 1.000000e+00 : f32
    %693 = vector.broadcast %cst_151 : f32 to vector<8x32xf32>
    %694 = arith.addf %693, %692 : vector<8x32xf32>
    %695 = arith.divf %693, %694 : vector<8x32xf32>
    %696 = arith.mulf %687, %636 : vector<8x32xf32>
    %697 = arith.mulf %681, %689 : vector<8x32xf32>
    %698 = arith.addf %696, %697 : vector<8x32xf32>
    %699 = math.tanh %698 : vector<8x32xf32>
    %700 = arith.mulf %695, %699 : vector<8x32xf32>
    %701 = arith.index_cast %642 : i32 to index
    %c0_152 = arith.constant 0 : index
    %702 = vector.load %arg20[%701, %c0_152] : memref<64x32xf32, #tpu.memory_space<vmem>>, vector<8x32xf32>
    tpu.vector_store %arg20[%701, %c0_152], %700 {strides = array<i32>} : memref<64x32xf32, #tpu.memory_space<vmem>>, vector<8x32xf32>,
    %c3_i32_153 = arith.constant 3 : i32
    %c8_i32_154 = arith.constant 8 : i32
    %703 = arith.muli %c3_i32_153, %c8_i32_154 : i32
    %704 = tpu.assume_multiple %703, 8 : i32
    %705 = arith.index_cast %704 : i32 to index
    %c0_155 = arith.constant 0 : index
    %706 = vector.load %arg18[%705, %c0_155] : memref<64x128xf32, #tpu.memory_space<vmem>>, vector<8x128xf32>
    %cst_156 = arith.constant dense<0.000000e+00> : vector<8x128xf32>
    %707 = tpu.matmul %671, %514, %cst_156 {dimension_numbers = #tpu.dot_dimension_numbers<[1], [0], [0], [1], [0, 0, 1, 1], [], []>} : vector<8x32xf32>, vector<32x128xf32>, vector<8x128xf32> -> vector<8x128xf32>
    %708 = arith.addf %706, %707 : vector<8x128xf32>
    %709 = vector.extract_strided_slice %708 {offsets = [0, 0], sizes = [8, 32], strides = [1, 1]} : vector<8x128xf32> to vector<8x32xf32>
    %710 = arith.negf %709 : vector<8x32xf32>
    %711 = math.exp %710 : vector<8x32xf32>
    %cst_157 = arith.constant 1.000000e+00 : f32
    %712 = vector.broadcast %cst_157 : f32 to vector<8x32xf32>
    %713 = arith.addf %712, %711 : vector<8x32xf32>
    %714 = arith.divf %712, %713 : vector<8x32xf32>
    %715 = vector.extract_strided_slice %708 {offsets = [0, 32], sizes = [8, 32], strides = [1, 1]} : vector<8x128xf32> to vector<8x32xf32>
    %716 = arith.negf %715 : vector<8x32xf32>
    %717 = math.exp %716 : vector<8x32xf32>
    %cst_158 = arith.constant 1.000000e+00 : f32
    %718 = vector.broadcast %cst_158 : f32 to vector<8x32xf32>
    %719 = arith.addf %718, %717 : vector<8x32xf32>
    %720 = arith.divf %718, %719 : vector<8x32xf32>
    %721 = vector.extract_strided_slice %708 {offsets = [0, 64], sizes = [8, 32], strides = [1, 1]} : vector<8x128xf32> to vector<8x32xf32>
    %722 = math.tanh %721 : vector<8x32xf32>
    %723 = vector.extract_strided_slice %708 {offsets = [0, 96], sizes = [8, 32], strides = [1, 1]} : vector<8x128xf32> to vector<8x32xf32>
    %724 = arith.negf %723 : vector<8x32xf32>
    %725 = math.exp %724 : vector<8x32xf32>
    %cst_159 = arith.constant 1.000000e+00 : f32
    %726 = vector.broadcast %cst_159 : f32 to vector<8x32xf32>
    %727 = arith.addf %726, %725 : vector<8x32xf32>
    %728 = arith.divf %726, %727 : vector<8x32xf32>
    %729 = arith.mulf %720, %669 : vector<8x32xf32>
    %730 = arith.mulf %714, %722 : vector<8x32xf32>
    %731 = arith.addf %729, %730 : vector<8x32xf32>
    %732 = math.tanh %731 : vector<8x32xf32>
    %733 = arith.mulf %728, %732 : vector<8x32xf32>
    %734 = tpu.concatenate %733, %700 in 1 : vector<8x32xf32>, vector<8x32xf32> -> vector<8x64xf32>
    %cst_160 = arith.constant dense<0.000000e+00> : vector<8x128xf32>
    %735 = tpu.matmul %734, %515, %cst_160 {dimension_numbers = #tpu.dot_dimension_numbers<[1], [0], [0], [1], [0, 0, 1, 1], [], []>} : vector<8x64xf32>, vector<64x128xf32>, vector<8x128xf32> -> vector<8x128xf32>
    %736 = vector.broadcast %516 : vector<1x128xf32> to vector<8x128xf32>
    %737 = arith.addf %735, %736 : vector<8x128xf32>
    %738 = vector.extract_strided_slice %737 {offsets = [0, 0], sizes = [8, 32], strides = [1, 1]} : vector<8x128xf32> to vector<8x32xf32>
    %739 = arith.negf %738 : vector<8x32xf32>
    %740 = math.exp %739 : vector<8x32xf32>
    %cst_161 = arith.constant 1.000000e+00 : f32
    %741 = vector.broadcast %cst_161 : f32 to vector<8x32xf32>
    %742 = arith.addf %741, %740 : vector<8x32xf32>
    %743 = arith.divf %741, %742 : vector<8x32xf32>
    %744 = vector.extract_strided_slice %737 {offsets = [0, 32], sizes = [8, 32], strides = [1, 1]} : vector<8x128xf32> to vector<8x32xf32>
    %745 = arith.negf %744 : vector<8x32xf32>
    %746 = math.exp %745 : vector<8x32xf32>
    %cst_162 = arith.constant 1.000000e+00 : f32
    %747 = vector.broadcast %cst_162 : f32 to vector<8x32xf32>
    %748 = arith.addf %747, %746 : vector<8x32xf32>
    %749 = arith.divf %747, %748 : vector<8x32xf32>
    %750 = vector.extract_strided_slice %737 {offsets = [0, 64], sizes = [8, 32], strides = [1, 1]} : vector<8x128xf32> to vector<8x32xf32>
    %751 = math.tanh %750 : vector<8x32xf32>
    %752 = vector.extract_strided_slice %737 {offsets = [0, 96], sizes = [8, 32], strides = [1, 1]} : vector<8x128xf32> to vector<8x32xf32>
    %753 = arith.negf %752 : vector<8x32xf32>
    %754 = math.exp %753 : vector<8x32xf32>
    %cst_163 = arith.constant 1.000000e+00 : f32
    %755 = vector.broadcast %cst_163 : f32 to vector<8x32xf32>
    %756 = arith.addf %755, %754 : vector<8x32xf32>
    %757 = arith.divf %755, %756 : vector<8x32xf32>
    %758 = arith.mulf %749, %698 : vector<8x32xf32>
    %759 = arith.mulf %743, %751 : vector<8x32xf32>
    %760 = arith.addf %758, %759 : vector<8x32xf32>
    %761 = math.tanh %760 : vector<8x32xf32>
    %762 = arith.mulf %757, %761 : vector<8x32xf32>
    %763 = arith.index_cast %704 : i32 to index
    %c0_164 = arith.constant 0 : index
    %764 = vector.load %arg20[%763, %c0_164] : memref<64x32xf32, #tpu.memory_space<vmem>>, vector<8x32xf32>
    tpu.vector_store %arg20[%763, %c0_164], %762 {strides = array<i32>} : memref<64x32xf32, #tpu.memory_space<vmem>>, vector<8x32xf32>,
    %c4_i32_165 = arith.constant 4 : i32
    %c8_i32_166 = arith.constant 8 : i32
    %765 = arith.muli %c4_i32_165, %c8_i32_166 : i32
    %766 = tpu.assume_multiple %765, 8 : i32
    %767 = arith.index_cast %766 : i32 to index
    %c0_167 = arith.constant 0 : index
    %768 = vector.load %arg18[%767, %c0_167] : memref<64x128xf32, #tpu.memory_space<vmem>>, vector<8x128xf32>
    %cst_168 = arith.constant dense<0.000000e+00> : vector<8x128xf32>
    %769 = tpu.matmul %733, %514, %cst_168 {dimension_numbers = #tpu.dot_dimension_numbers<[1], [0], [0], [1], [0, 0, 1, 1], [], []>} : vector<8x32xf32>, vector<32x128xf32>, vector<8x128xf32> -> vector<8x128xf32>
    %770 = arith.addf %768, %769 : vector<8x128xf32>
    %771 = vector.extract_strided_slice %770 {offsets = [0, 0], sizes = [8, 32], strides = [1, 1]} : vector<8x128xf32> to vector<8x32xf32>
    %772 = arith.negf %771 : vector<8x32xf32>
    %773 = math.exp %772 : vector<8x32xf32>
    %cst_169 = arith.constant 1.000000e+00 : f32
    %774 = vector.broadcast %cst_169 : f32 to vector<8x32xf32>
    %775 = arith.addf %774, %773 : vector<8x32xf32>
    %776 = arith.divf %774, %775 : vector<8x32xf32>
    %777 = vector.extract_strided_slice %770 {offsets = [0, 32], sizes = [8, 32], strides = [1, 1]} : vector<8x128xf32> to vector<8x32xf32>
    %778 = arith.negf %777 : vector<8x32xf32>
    %779 = math.exp %778 : vector<8x32xf32>
    %cst_170 = arith.constant 1.000000e+00 : f32
    %780 = vector.broadcast %cst_170 : f32 to vector<8x32xf32>
    %781 = arith.addf %780, %779 : vector<8x32xf32>
    %782 = arith.divf %780, %781 : vector<8x32xf32>
    %783 = vector.extract_strided_slice %770 {offsets = [0, 64], sizes = [8, 32], strides = [1, 1]} : vector<8x128xf32> to vector<8x32xf32>
    %784 = math.tanh %783 : vector<8x32xf32>
    %785 = vector.extract_strided_slice %770 {offsets = [0, 96], sizes = [8, 32], strides = [1, 1]} : vector<8x128xf32> to vector<8x32xf32>
    %786 = arith.negf %785 : vector<8x32xf32>
    %787 = math.exp %786 : vector<8x32xf32>
    %cst_171 = arith.constant 1.000000e+00 : f32
    %788 = vector.broadcast %cst_171 : f32 to vector<8x32xf32>
    %789 = arith.addf %788, %787 : vector<8x32xf32>
    %790 = arith.divf %788, %789 : vector<8x32xf32>
    %791 = arith.mulf %782, %731 : vector<8x32xf32>
    %792 = arith.mulf %776, %784 : vector<8x32xf32>
    %793 = arith.addf %791, %792 : vector<8x32xf32>
    %794 = math.tanh %793 : vector<8x32xf32>
    %795 = arith.mulf %790, %794 : vector<8x32xf32>
    %796 = tpu.concatenate %795, %762 in 1 : vector<8x32xf32>, vector<8x32xf32> -> vector<8x64xf32>
    %cst_172 = arith.constant dense<0.000000e+00> : vector<8x128xf32>
    %797 = tpu.matmul %796, %515, %cst_172 {dimension_numbers = #tpu.dot_dimension_numbers<[1], [0], [0], [1], [0, 0, 1, 1], [], []>} : vector<8x64xf32>, vector<64x128xf32>, vector<8x128xf32> -> vector<8x128xf32>
    %798 = vector.broadcast %516 : vector<1x128xf32> to vector<8x128xf32>
    %799 = arith.addf %797, %798 : vector<8x128xf32>
    %800 = vector.extract_strided_slice %799 {offsets = [0, 0], sizes = [8, 32], strides = [1, 1]} : vector<8x128xf32> to vector<8x32xf32>
    %801 = arith.negf %800 : vector<8x32xf32>
    %802 = math.exp %801 : vector<8x32xf32>
    %cst_173 = arith.constant 1.000000e+00 : f32
    %803 = vector.broadcast %cst_173 : f32 to vector<8x32xf32>
    %804 = arith.addf %803, %802 : vector<8x32xf32>
    %805 = arith.divf %803, %804 : vector<8x32xf32>
    %806 = vector.extract_strided_slice %799 {offsets = [0, 32], sizes = [8, 32], strides = [1, 1]} : vector<8x128xf32> to vector<8x32xf32>
    %807 = arith.negf %806 : vector<8x32xf32>
    %808 = math.exp %807 : vector<8x32xf32>
    %cst_174 = arith.constant 1.000000e+00 : f32
    %809 = vector.broadcast %cst_174 : f32 to vector<8x32xf32>
    %810 = arith.addf %809, %808 : vector<8x32xf32>
    %811 = arith.divf %809, %810 : vector<8x32xf32>
    %812 = vector.extract_strided_slice %799 {offsets = [0, 64], sizes = [8, 32], strides = [1, 1]} : vector<8x128xf32> to vector<8x32xf32>
    %813 = math.tanh %812 : vector<8x32xf32>
    %814 = vector.extract_strided_slice %799 {offsets = [0, 96], sizes = [8, 32], strides = [1, 1]} : vector<8x128xf32> to vector<8x32xf32>
    %815 = arith.negf %814 : vector<8x32xf32>
    %816 = math.exp %815 : vector<8x32xf32>
    %cst_175 = arith.constant 1.000000e+00 : f32
    %817 = vector.broadcast %cst_175 : f32 to vector<8x32xf32>
    %818 = arith.addf %817, %816 : vector<8x32xf32>
    %819 = arith.divf %817, %818 : vector<8x32xf32>
    %820 = arith.mulf %811, %760 : vector<8x32xf32>
    %821 = arith.mulf %805, %813 : vector<8x32xf32>
    %822 = arith.addf %820, %821 : vector<8x32xf32>
    %823 = math.tanh %822 : vector<8x32xf32>
    %824 = arith.mulf %819, %823 : vector<8x32xf32>
    %825 = arith.index_cast %766 : i32 to index
    %c0_176 = arith.constant 0 : index
    %826 = vector.load %arg20[%825, %c0_176] : memref<64x32xf32, #tpu.memory_space<vmem>>, vector<8x32xf32>
    tpu.vector_store %arg20[%825, %c0_176], %824 {strides = array<i32>} : memref<64x32xf32, #tpu.memory_space<vmem>>, vector<8x32xf32>,
    %c5_i32_177 = arith.constant 5 : i32
    %c8_i32_178 = arith.constant 8 : i32
    %827 = arith.muli %c5_i32_177, %c8_i32_178 : i32
    %828 = tpu.assume_multiple %827, 8 : i32
    %829 = arith.index_cast %828 : i32 to index
    %c0_179 = arith.constant 0 : index
    %830 = vector.load %arg18[%829, %c0_179] : memref<64x128xf32, #tpu.memory_space<vmem>>, vector<8x128xf32>
    %cst_180 = arith.constant dense<0.000000e+00> : vector<8x128xf32>
    %831 = tpu.matmul %795, %514, %cst_180 {dimension_numbers = #tpu.dot_dimension_numbers<[1], [0], [0], [1], [0, 0, 1, 1], [], []>} : vector<8x32xf32>, vector<32x128xf32>, vector<8x128xf32> -> vector<8x128xf32>
    %832 = arith.addf %830, %831 : vector<8x128xf32>
    %833 = vector.extract_strided_slice %832 {offsets = [0, 0], sizes = [8, 32], strides = [1, 1]} : vector<8x128xf32> to vector<8x32xf32>
    %834 = arith.negf %833 : vector<8x32xf32>
    %835 = math.exp %834 : vector<8x32xf32>
    %cst_181 = arith.constant 1.000000e+00 : f32
    %836 = vector.broadcast %cst_181 : f32 to vector<8x32xf32>
    %837 = arith.addf %836, %835 : vector<8x32xf32>
    %838 = arith.divf %836, %837 : vector<8x32xf32>
    %839 = vector.extract_strided_slice %832 {offsets = [0, 32], sizes = [8, 32], strides = [1, 1]} : vector<8x128xf32> to vector<8x32xf32>
    %840 = arith.negf %839 : vector<8x32xf32>
    %841 = math.exp %840 : vector<8x32xf32>
    %cst_182 = arith.constant 1.000000e+00 : f32
    %842 = vector.broadcast %cst_182 : f32 to vector<8x32xf32>
    %843 = arith.addf %842, %841 : vector<8x32xf32>
    %844 = arith.divf %842, %843 : vector<8x32xf32>
    %845 = vector.extract_strided_slice %832 {offsets = [0, 64], sizes = [8, 32], strides = [1, 1]} : vector<8x128xf32> to vector<8x32xf32>
    %846 = math.tanh %845 : vector<8x32xf32>
    %847 = vector.extract_strided_slice %832 {offsets = [0, 96], sizes = [8, 32], strides = [1, 1]} : vector<8x128xf32> to vector<8x32xf32>
    %848 = arith.negf %847 : vector<8x32xf32>
    %849 = math.exp %848 : vector<8x32xf32>
    %cst_183 = arith.constant 1.000000e+00 : f32
    %850 = vector.broadcast %cst_183 : f32 to vector<8x32xf32>
    %851 = arith.addf %850, %849 : vector<8x32xf32>
    %852 = arith.divf %850, %851 : vector<8x32xf32>
    %853 = arith.mulf %844, %793 : vector<8x32xf32>
    %854 = arith.mulf %838, %846 : vector<8x32xf32>
    %855 = arith.addf %853, %854 : vector<8x32xf32>
    %856 = math.tanh %855 : vector<8x32xf32>
    %857 = arith.mulf %852, %856 : vector<8x32xf32>
    %858 = tpu.concatenate %857, %824 in 1 : vector<8x32xf32>, vector<8x32xf32> -> vector<8x64xf32>
    %cst_184 = arith.constant dense<0.000000e+00> : vector<8x128xf32>
    %859 = tpu.matmul %858, %515, %cst_184 {dimension_numbers = #tpu.dot_dimension_numbers<[1], [0], [0], [1], [0, 0, 1, 1], [], []>} : vector<8x64xf32>, vector<64x128xf32>, vector<8x128xf32> -> vector<8x128xf32>
    %860 = vector.broadcast %516 : vector<1x128xf32> to vector<8x128xf32>
    %861 = arith.addf %859, %860 : vector<8x128xf32>
    %862 = vector.extract_strided_slice %861 {offsets = [0, 0], sizes = [8, 32], strides = [1, 1]} : vector<8x128xf32> to vector<8x32xf32>
    %863 = arith.negf %862 : vector<8x32xf32>
    %864 = math.exp %863 : vector<8x32xf32>
    %cst_185 = arith.constant 1.000000e+00 : f32
    %865 = vector.broadcast %cst_185 : f32 to vector<8x32xf32>
    %866 = arith.addf %865, %864 : vector<8x32xf32>
    %867 = arith.divf %865, %866 : vector<8x32xf32>
    %868 = vector.extract_strided_slice %861 {offsets = [0, 32], sizes = [8, 32], strides = [1, 1]} : vector<8x128xf32> to vector<8x32xf32>
    %869 = arith.negf %868 : vector<8x32xf32>
    %870 = math.exp %869 : vector<8x32xf32>
    %cst_186 = arith.constant 1.000000e+00 : f32
    %871 = vector.broadcast %cst_186 : f32 to vector<8x32xf32>
    %872 = arith.addf %871, %870 : vector<8x32xf32>
    %873 = arith.divf %871, %872 : vector<8x32xf32>
    %874 = vector.extract_strided_slice %861 {offsets = [0, 64], sizes = [8, 32], strides = [1, 1]} : vector<8x128xf32> to vector<8x32xf32>
    %875 = math.tanh %874 : vector<8x32xf32>
    %876 = vector.extract_strided_slice %861 {offsets = [0, 96], sizes = [8, 32], strides = [1, 1]} : vector<8x128xf32> to vector<8x32xf32>
    %877 = arith.negf %876 : vector<8x32xf32>
    %878 = math.exp %877 : vector<8x32xf32>
    %cst_187 = arith.constant 1.000000e+00 : f32
    %879 = vector.broadcast %cst_187 : f32 to vector<8x32xf32>
    %880 = arith.addf %879, %878 : vector<8x32xf32>
    %881 = arith.divf %879, %880 : vector<8x32xf32>
    %882 = arith.mulf %873, %822 : vector<8x32xf32>
    %883 = arith.mulf %867, %875 : vector<8x32xf32>
    %884 = arith.addf %882, %883 : vector<8x32xf32>
    %885 = math.tanh %884 : vector<8x32xf32>
    %886 = arith.mulf %881, %885 : vector<8x32xf32>
    %887 = arith.index_cast %828 : i32 to index
    %c0_188 = arith.constant 0 : index
    %888 = vector.load %arg20[%887, %c0_188] : memref<64x32xf32, #tpu.memory_space<vmem>>, vector<8x32xf32>
    tpu.vector_store %arg20[%887, %c0_188], %886 {strides = array<i32>} : memref<64x32xf32, #tpu.memory_space<vmem>>, vector<8x32xf32>,
    %c6_i32_189 = arith.constant 6 : i32
    %c8_i32_190 = arith.constant 8 : i32
    %889 = arith.muli %c6_i32_189, %c8_i32_190 : i32
    %890 = tpu.assume_multiple %889, 8 : i32
    %891 = arith.index_cast %890 : i32 to index
    %c0_191 = arith.constant 0 : index
    %892 = vector.load %arg18[%891, %c0_191] : memref<64x128xf32, #tpu.memory_space<vmem>>, vector<8x128xf32>
    %cst_192 = arith.constant dense<0.000000e+00> : vector<8x128xf32>
    %893 = tpu.matmul %857, %514, %cst_192 {dimension_numbers = #tpu.dot_dimension_numbers<[1], [0], [0], [1], [0, 0, 1, 1], [], []>} : vector<8x32xf32>, vector<32x128xf32>, vector<8x128xf32> -> vector<8x128xf32>
    %894 = arith.addf %892, %893 : vector<8x128xf32>
    %895 = vector.extract_strided_slice %894 {offsets = [0, 0], sizes = [8, 32], strides = [1, 1]} : vector<8x128xf32> to vector<8x32xf32>
    %896 = arith.negf %895 : vector<8x32xf32>
    %897 = math.exp %896 : vector<8x32xf32>
    %cst_193 = arith.constant 1.000000e+00 : f32
    %898 = vector.broadcast %cst_193 : f32 to vector<8x32xf32>
    %899 = arith.addf %898, %897 : vector<8x32xf32>
    %900 = arith.divf %898, %899 : vector<8x32xf32>
    %901 = vector.extract_strided_slice %894 {offsets = [0, 32], sizes = [8, 32], strides = [1, 1]} : vector<8x128xf32> to vector<8x32xf32>
    %902 = arith.negf %901 : vector<8x32xf32>
    %903 = math.exp %902 : vector<8x32xf32>
    %cst_194 = arith.constant 1.000000e+00 : f32
    %904 = vector.broadcast %cst_194 : f32 to vector<8x32xf32>
    %905 = arith.addf %904, %903 : vector<8x32xf32>
    %906 = arith.divf %904, %905 : vector<8x32xf32>
    %907 = vector.extract_strided_slice %894 {offsets = [0, 64], sizes = [8, 32], strides = [1, 1]} : vector<8x128xf32> to vector<8x32xf32>
    %908 = math.tanh %907 : vector<8x32xf32>
    %909 = vector.extract_strided_slice %894 {offsets = [0, 96], sizes = [8, 32], strides = [1, 1]} : vector<8x128xf32> to vector<8x32xf32>
    %910 = arith.negf %909 : vector<8x32xf32>
    %911 = math.exp %910 : vector<8x32xf32>
    %cst_195 = arith.constant 1.000000e+00 : f32
    %912 = vector.broadcast %cst_195 : f32 to vector<8x32xf32>
    %913 = arith.addf %912, %911 : vector<8x32xf32>
    %914 = arith.divf %912, %913 : vector<8x32xf32>
    %915 = arith.mulf %906, %855 : vector<8x32xf32>
    %916 = arith.mulf %900, %908 : vector<8x32xf32>
    %917 = arith.addf %915, %916 : vector<8x32xf32>
    %918 = math.tanh %917 : vector<8x32xf32>
    %919 = arith.mulf %914, %918 : vector<8x32xf32>
    %920 = tpu.concatenate %919, %886 in 1 : vector<8x32xf32>, vector<8x32xf32> -> vector<8x64xf32>
    %cst_196 = arith.constant dense<0.000000e+00> : vector<8x128xf32>
    %921 = tpu.matmul %920, %515, %cst_196 {dimension_numbers = #tpu.dot_dimension_numbers<[1], [0], [0], [1], [0, 0, 1, 1], [], []>} : vector<8x64xf32>, vector<64x128xf32>, vector<8x128xf32> -> vector<8x128xf32>
    %922 = vector.broadcast %516 : vector<1x128xf32> to vector<8x128xf32>
    %923 = arith.addf %921, %922 : vector<8x128xf32>
    %924 = vector.extract_strided_slice %923 {offsets = [0, 0], sizes = [8, 32], strides = [1, 1]} : vector<8x128xf32> to vector<8x32xf32>
    %925 = arith.negf %924 : vector<8x32xf32>
    %926 = math.exp %925 : vector<8x32xf32>
    %cst_197 = arith.constant 1.000000e+00 : f32
    %927 = vector.broadcast %cst_197 : f32 to vector<8x32xf32>
    %928 = arith.addf %927, %926 : vector<8x32xf32>
    %929 = arith.divf %927, %928 : vector<8x32xf32>
    %930 = vector.extract_strided_slice %923 {offsets = [0, 32], sizes = [8, 32], strides = [1, 1]} : vector<8x128xf32> to vector<8x32xf32>
    %931 = arith.negf %930 : vector<8x32xf32>
    %932 = math.exp %931 : vector<8x32xf32>
    %cst_198 = arith.constant 1.000000e+00 : f32
    %933 = vector.broadcast %cst_198 : f32 to vector<8x32xf32>
    %934 = arith.addf %933, %932 : vector<8x32xf32>
    %935 = arith.divf %933, %934 : vector<8x32xf32>
    %936 = vector.extract_strided_slice %923 {offsets = [0, 64], sizes = [8, 32], strides = [1, 1]} : vector<8x128xf32> to vector<8x32xf32>
    %937 = math.tanh %936 : vector<8x32xf32>
    %938 = vector.extract_strided_slice %923 {offsets = [0, 96], sizes = [8, 32], strides = [1, 1]} : vector<8x128xf32> to vector<8x32xf32>
    %939 = arith.negf %938 : vector<8x32xf32>
    %940 = math.exp %939 : vector<8x32xf32>
    %cst_199 = arith.constant 1.000000e+00 : f32
    %941 = vector.broadcast %cst_199 : f32 to vector<8x32xf32>
    %942 = arith.addf %941, %940 : vector<8x32xf32>
    %943 = arith.divf %941, %942 : vector<8x32xf32>
    %944 = arith.mulf %935, %884 : vector<8x32xf32>
    %945 = arith.mulf %929, %937 : vector<8x32xf32>
    %946 = arith.addf %944, %945 : vector<8x32xf32>
    %947 = math.tanh %946 : vector<8x32xf32>
    %948 = arith.mulf %943, %947 : vector<8x32xf32>
    %949 = arith.index_cast %890 : i32 to index
    %c0_200 = arith.constant 0 : index
    %950 = vector.load %arg20[%949, %c0_200] : memref<64x32xf32, #tpu.memory_space<vmem>>, vector<8x32xf32>
    tpu.vector_store %arg20[%949, %c0_200], %948 {strides = array<i32>} : memref<64x32xf32, #tpu.memory_space<vmem>>, vector<8x32xf32>,
    %c7_i32_201 = arith.constant 7 : i32
    %c8_i32_202 = arith.constant 8 : i32
    %951 = arith.muli %c7_i32_201, %c8_i32_202 : i32
    %952 = tpu.assume_multiple %951, 8 : i32
    %953 = arith.index_cast %952 : i32 to index
    %c0_203 = arith.constant 0 : index
    %954 = vector.load %arg18[%953, %c0_203] : memref<64x128xf32, #tpu.memory_space<vmem>>, vector<8x128xf32>
    %cst_204 = arith.constant dense<0.000000e+00> : vector<8x128xf32>
    %955 = tpu.matmul %919, %514, %cst_204 {dimension_numbers = #tpu.dot_dimension_numbers<[1], [0], [0], [1], [0, 0, 1, 1], [], []>} : vector<8x32xf32>, vector<32x128xf32>, vector<8x128xf32> -> vector<8x128xf32>
    %956 = arith.addf %954, %955 : vector<8x128xf32>
    %957 = vector.extract_strided_slice %956 {offsets = [0, 0], sizes = [8, 32], strides = [1, 1]} : vector<8x128xf32> to vector<8x32xf32>
    %958 = arith.negf %957 : vector<8x32xf32>
    %959 = math.exp %958 : vector<8x32xf32>
    %cst_205 = arith.constant 1.000000e+00 : f32
    %960 = vector.broadcast %cst_205 : f32 to vector<8x32xf32>
    %961 = arith.addf %960, %959 : vector<8x32xf32>
    %962 = arith.divf %960, %961 : vector<8x32xf32>
    %963 = vector.extract_strided_slice %956 {offsets = [0, 32], sizes = [8, 32], strides = [1, 1]} : vector<8x128xf32> to vector<8x32xf32>
    %964 = arith.negf %963 : vector<8x32xf32>
    %965 = math.exp %964 : vector<8x32xf32>
    %cst_206 = arith.constant 1.000000e+00 : f32
    %966 = vector.broadcast %cst_206 : f32 to vector<8x32xf32>
    %967 = arith.addf %966, %965 : vector<8x32xf32>
    %968 = arith.divf %966, %967 : vector<8x32xf32>
    %969 = vector.extract_strided_slice %956 {offsets = [0, 64], sizes = [8, 32], strides = [1, 1]} : vector<8x128xf32> to vector<8x32xf32>
    %970 = math.tanh %969 : vector<8x32xf32>
    %971 = vector.extract_strided_slice %956 {offsets = [0, 96], sizes = [8, 32], strides = [1, 1]} : vector<8x128xf32> to vector<8x32xf32>
    %972 = arith.negf %971 : vector<8x32xf32>
    %973 = math.exp %972 : vector<8x32xf32>
    %cst_207 = arith.constant 1.000000e+00 : f32
    %974 = vector.broadcast %cst_207 : f32 to vector<8x32xf32>
    %975 = arith.addf %974, %973 : vector<8x32xf32>
    %976 = arith.divf %974, %975 : vector<8x32xf32>
    %977 = arith.mulf %968, %917 : vector<8x32xf32>
    %978 = arith.mulf %962, %970 : vector<8x32xf32>
    %979 = arith.addf %977, %978 : vector<8x32xf32>
    %980 = math.tanh %979 : vector<8x32xf32>
    %981 = arith.mulf %976, %980 : vector<8x32xf32>
    %982 = tpu.concatenate %981, %948 in 1 : vector<8x32xf32>, vector<8x32xf32> -> vector<8x64xf32>
    %cst_208 = arith.constant dense<0.000000e+00> : vector<8x128xf32>
    %983 = tpu.matmul %982, %515, %cst_208 {dimension_numbers = #tpu.dot_dimension_numbers<[1], [0], [0], [1], [0, 0, 1, 1], [], []>} : vector<8x64xf32>, vector<64x128xf32>, vector<8x128xf32> -> vector<8x128xf32>
    %984 = vector.broadcast %516 : vector<1x128xf32> to vector<8x128xf32>
    %985 = arith.addf %983, %984 : vector<8x128xf32>
    %986 = vector.extract_strided_slice %985 {offsets = [0, 0], sizes = [8, 32], strides = [1, 1]} : vector<8x128xf32> to vector<8x32xf32>
    %987 = arith.negf %986 : vector<8x32xf32>
    %988 = math.exp %987 : vector<8x32xf32>
    %cst_209 = arith.constant 1.000000e+00 : f32
    %989 = vector.broadcast %cst_209 : f32 to vector<8x32xf32>
    %990 = arith.addf %989, %988 : vector<8x32xf32>
    %991 = arith.divf %989, %990 : vector<8x32xf32>
    %992 = vector.extract_strided_slice %985 {offsets = [0, 32], sizes = [8, 32], strides = [1, 1]} : vector<8x128xf32> to vector<8x32xf32>
    %993 = arith.negf %992 : vector<8x32xf32>
    %994 = math.exp %993 : vector<8x32xf32>
    %cst_210 = arith.constant 1.000000e+00 : f32
    %995 = vector.broadcast %cst_210 : f32 to vector<8x32xf32>
    %996 = arith.addf %995, %994 : vector<8x32xf32>
    %997 = arith.divf %995, %996 : vector<8x32xf32>
    %998 = vector.extract_strided_slice %985 {offsets = [0, 64], sizes = [8, 32], strides = [1, 1]} : vector<8x128xf32> to vector<8x32xf32>
    %999 = math.tanh %998 : vector<8x32xf32>
    %1000 = vector.extract_strided_slice %985 {offsets = [0, 96], sizes = [8, 32], strides = [1, 1]} : vector<8x128xf32> to vector<8x32xf32>
    %1001 = arith.negf %1000 : vector<8x32xf32>
    %1002 = math.exp %1001 : vector<8x32xf32>
    %cst_211 = arith.constant 1.000000e+00 : f32
    %1003 = vector.broadcast %cst_211 : f32 to vector<8x32xf32>
    %1004 = arith.addf %1003, %1002 : vector<8x32xf32>
    %1005 = arith.divf %1003, %1004 : vector<8x32xf32>
    %1006 = arith.mulf %997, %946 : vector<8x32xf32>
    %1007 = arith.mulf %991, %999 : vector<8x32xf32>
    %1008 = arith.addf %1006, %1007 : vector<8x32xf32>
    %1009 = math.tanh %1008 : vector<8x32xf32>
    %1010 = arith.mulf %1005, %1009 : vector<8x32xf32>
    %1011 = arith.index_cast %952 : i32 to index
    %c0_212 = arith.constant 0 : index
    %1012 = vector.load %arg20[%1011, %c0_212] : memref<64x32xf32, #tpu.memory_space<vmem>>, vector<8x32xf32>
    tpu.vector_store %arg20[%1011, %c0_212], %1010 {strides = array<i32>} : memref<64x32xf32, #tpu.memory_space<vmem>>, vector<8x32xf32>,
    %c8_i32_213 = arith.constant 8 : i32
    %c0_214 = arith.constant 0 : index
    %c0_215 = arith.constant 0 : index
    %1013 = vector.load %arg19[%c0_214, %c0_215] : memref<64x32xf32, #tpu.memory_space<vmem>>, vector<64x32xf32>
    %c0_216 = arith.constant 0 : index
    %c0_217 = arith.constant 0 : index
    %1014 = vector.load %arg20[%c0_216, %c0_217] : memref<64x32xf32, #tpu.memory_space<vmem>>, vector<64x32xf32>
    %1015 = tpu.transpose %1013, [1, 0] : vector<64x32xf32> -> vector<32x64xf32>
    %cst_218 = arith.constant dense<0.000000e+00> : vector<64x64xf32>
    %1016 = tpu.matmul %1014, %1015, %cst_218 {dimension_numbers = #tpu.dot_dimension_numbers<[1], [0], [0], [1], [0, 0, 1, 1], [], []>} : vector<64x32xf32>, vector<32x64xf32>, vector<64x64xf32> -> vector<64x64xf32>
    %1017 = tpu.iota {dimensions = array<i32: 0>} : vector<64x64xi32>
    %c7_i32_219 = arith.constant 7 : i32
    %1018 = vector.broadcast %c7_i32_219 : i32 to vector<64x64xi32>
    %1019 = arith.andi %1017, %1018 : vector<64x64xi32>
    %1020 = tpu.iota {dimensions = array<i32: 1>} : vector<64x64xi32>
    %c7_i32_220 = arith.constant 7 : i32
    %1021 = vector.broadcast %c7_i32_220 : i32 to vector<64x64xi32>
    %1022 = arith.andi %1020, %1021 : vector<64x64xi32>
    %1023 = arith.cmpi eq, %1019, %1022 : vector<64x64xi32>
    %cst_221 = arith.constant -1.000000e+30 : f32
    %1024 = vector.broadcast %cst_221 : f32 to vector<64x64xf32>
    %1025 = arith.select %1023, %1016, %1024 : vector<64x64xi1>, vector<64x64xf32>
    %cst_222 = arith.constant dense<0xFF800000> : vector<64xf32>
    %1026 = vector.multi_reduction <maximumf>, %1025, %cst_222 [1] : vector<64x64xf32> to vector<64xf32>
    %1027 = vector.shape_cast %1026 : vector<64xf32> to vector<64x1xf32>
    %1028 = vector.broadcast %1027 : vector<64x1xf32> to vector<64x64xf32>
    %1029 = arith.subf %1025, %1028 : vector<64x64xf32>
    %1030 = math.exp %1029 : vector<64x64xf32>
    %cst_223 = arith.constant 0.000000e+00 : f32
    %1031 = vector.broadcast %cst_223 : f32 to vector<64x64xf32>
    %1032 = arith.select %1023, %1030, %1031 : vector<64x64xi1>, vector<64x64xf32>
    %cst_224 = arith.constant dense<0.000000e+00> : vector<64xf32>
    %1033 = vector.multi_reduction <add>, %1032, %cst_224 [1] : vector<64x64xf32> to vector<64xf32>
    %1034 = vector.shape_cast %1033 : vector<64xf32> to vector<64x1xf32>
    %1035 = tpu.reciprocal %1034 {approx = true} : vector<64x1xf32> -> vector<64x1xf32>
    %1036 = vector.broadcast %1035 : vector<64x1xf32> to vector<64x64xf32>
    %1037 = arith.mulf %1032, %1036 : vector<64x64xf32>
    %cst_225 = arith.constant dense<0.000000e+00> : vector<64x32xf32>
    %1038 = tpu.matmul %1037, %1013, %cst_225 {dimension_numbers = #tpu.dot_dimension_numbers<[1], [0], [0], [1], [0, 0, 1, 1], [], []>} : vector<64x64xf32>, vector<64x32xf32>, vector<64x32xf32> -> vector<64x32xf32>
    %1039 = tpu.concatenate %1038, %1014 in 1 : vector<64x32xf32>, vector<64x32xf32> -> vector<64x64xf32>
    %c0_226 = arith.constant 0 : index
    %c0_227 = arith.constant 0 : index
    %1040 = vector.load %arg12[%c0_226, %c0_227] : memref<64x32xf32, #tpu.memory_space<vmem>>, vector<64x32xf32>
    %cst_228 = arith.constant dense<0.000000e+00> : vector<64x32xf32>
    %1041 = tpu.matmul %1039, %1040, %cst_228 {dimension_numbers = #tpu.dot_dimension_numbers<[1], [0], [0], [1], [0, 0, 1, 1], [], []>} : vector<64x64xf32>, vector<64x32xf32>, vector<64x32xf32> -> vector<64x32xf32>
    %c0_229 = arith.constant 0 : index
    %c0_230 = arith.constant 0 : index
    %1042 = vector.load %arg13[%c0_229, %c0_230] : memref<1x32xf32, #tpu.memory_space<vmem>>, vector<1x32xf32>
    %1043 = vector.broadcast %1042 : vector<1x32xf32> to vector<64x32xf32>
    %1044 = arith.addf %1041, %1043 : vector<64x32xf32>
    %c0_231 = arith.constant 0 : index
    %c0_232 = arith.constant 0 : index
    %1045 = vector.load %arg14[%c0_231, %c0_232] : memref<32x128xf32, #tpu.memory_space<vmem>>, vector<32x128xf32>
    %cst_233 = arith.constant dense<0.000000e+00> : vector<64x128xf32>
    %1046 = tpu.matmul %1044, %1045, %cst_233 {dimension_numbers = #tpu.dot_dimension_numbers<[1], [0], [0], [1], [0, 0, 1, 1], [], []>} : vector<64x32xf32>, vector<32x128xf32>, vector<64x128xf32> -> vector<64x128xf32>
    %c0_234 = arith.constant 0 : index
    %c0_235 = arith.constant 0 : index
    %1047 = vector.load %arg15[%c0_234, %c0_235] : memref<1x128xf32, #tpu.memory_space<vmem>>, vector<1x128xf32>
    %1048 = vector.broadcast %1047 : vector<1x128xf32> to vector<64x128xf32>
    %1049 = arith.addf %1046, %1048 : vector<64x128xf32>
    %c0_236 = arith.constant 0 : index
    %c0_237 = arith.constant 0 : index
    %1050 = vector.load %arg16[%c0_236, %c0_237] : memref<64x128xf32, #tpu.memory_space<vmem>>, vector<64x128xf32>
    tpu.vector_store %arg16[%c0_236, %c0_237], %1049 {strides = array<i32>} : memref<64x128xf32, #tpu.memory_space<vmem>>, vector<64x128xf32>,
    return
  }
}

</mosaic_0001>

<bundles_post_ra>
// kernel: tpu_custom_call.1
= control target key start
LH: loop header
LB: loop body
LE: loop exit
PB: predicated region body
PF: predicated region fallthrough
CT: control target
= control target key end

     0   :  { %s7625_s0 = inlined_call_operand.vmem [shape: f32[64,32], index: 0, kind: input, shape index: {}]   ;;  %s7626_s1 = inlined_call_operand.vmem [shape: f32[64,32], index: 1, kind: input, shape index: {}]   ;;  %s7627_s2 = inlined_call_operand.vmem [shape: f32[32,128], index: 2, kind: input, shape index: {}]   ;;  %s7628_s3 = inlined_call_operand.vmem [shape: f32[32,128], index: 3, kind: input, shape index: {}]   ;;  %s7629_s4 = inlined_call_operand.vmem [shape: f32[1,128], index: 4, kind: input, shape index: {}]   ;;  %s7630_s5 = inlined_call_operand.vmem [shape: f32[64,128], index: 5, kind: input, shape index: {}]   ;;  %s7631_s6 = inlined_call_operand.vmem [shape: f32[1,128], index: 6, kind: input, shape index: {}]   ;;  %s7632_s7 = inlined_call_operand.vmem [shape: f32[32,128], index: 7, kind: input, shape index: {}]   ;;  %s7633_s8 = inlined_call_operand.hbm [shape: f32[32,128], index: 8, kind: input, shape index: {}]   ;;  %s7634_s9 = inlined_call_operand.hbm [shape: f32[1,128], index: 9, kind: input, shape index: {}]   ;;  %s7635_s10 = inlined_call_operand.vmem [shape: f32[64,128], index: 10, kind: input, shape index: {}]   ;;  %s7636_s11 = inlined_call_operand.vmem [shape: f32[1,128], index: 11, kind: input, shape index: {}]   ;;  %s7637_s12 = inlined_call_operand.vmem [shape: f32[64,32], index: 12, kind: input, shape index: {}]   ;;  %s7638_s13 = inlined_call_operand.vmem [shape: f32[1,32], index: 13, kind: input, shape index: {}]   ;;  %s7639_s14 = inlined_call_operand.vmem [shape: f32[32,128], index: 14, kind: input, shape index: {}]   ;;  %s7640_s15 = inlined_call_operand.vmem [shape: f32[1,128], index: 15, kind: input, shape index: {}]   ;;  %s7641_s16 = inlined_call_operand.hbm [shape: f32[64,128], index: 16, kind: output, shape index: {}]  }
   0x1   :  { %7643 = sst [smem:[#allocation15_spill]] %s7625_s0 }
   0x2   :  { %21 = vsyncpa [#allocation7], 0 }
   0x3   :  { %22 = vsyncpa [#allocation10], 0 }
   0x4   :  { %23 = vsyncpa [#allocation8], 0  ;;  %s6357_s21 = smov [#allocation6]   ;;  %s6285_s25 = scalar_lea.hbm %s7633_s8, 512 }
   0x5   :  { %s45_s22 = sshll.u32 %s6357_s21, 4  ;;  %p6286_p0 = scmp.ne.s32.totalorder %s7633_s8, %s6285_s25  ;;  %s46_s22 = int_to_ptr.vmem [resolvable:$true] %s45_s22 }
   0x6   :  { %p6289_p1 = scmp.lt.u32.totalorder %s6285_s25, %s7633_s8 }
   0x8   :  { %p6291_p2 = pnand %p6289_p1, %p6286_p0 }
   0xa   :  { %6294 = shalt.err (!%p6291_p2)
}
   0xb   :  { %s6295_s30 = scalar_lea.vmem %s46_s22, 512  ;;  %p6300_p4 = scmp.lt.s32.totalorder %s46_s22, %s46_s22 }
   0xc   :  { %p6296_p3 = scmp.ne.s32.totalorder %s46_s22, %s6295_s30  ;;  %p6301_p5 = scmp.lt.s32.totalorder %s6295_s30, %s6295_s30 }
   0xe   :  { %p6302_p6 = por %p6301_p5, %p6300_p4 }
  0x10   :  { %p6303_p7 = pnand %p6302_p6, %p6296_p3 }
  0x12   :  { %6306 = shalt.err (!%p6303_p7)
}
  0x13   :  { %s6358_s0 = smov 128   ;;  %s6359_s17 = smov 8  }
  0x14   :  { %51 = dma.hbm_to_vmem [thread:$0]  %s7633_s8, 512, %s46_s22, [#allocation7], %s6358_s0, %s6358_s0, %s6359_s17  }
  0x15   :  { %s6360_s20 = smov [#allocation9]   ;;  %s6307_s25 = scalar_lea.hbm %s7634_s9, 16 }
  0x16   :  { %s58_s21 = sshll.u32 %s6360_s20, 4  ;;  %p6308_p8 = scmp.ne.s32.totalorder %s7634_s9, %s6307_s25  ;;  %s59_s21 = int_to_ptr.vmem [resolvable:$true] %s58_s21 }
  0x17   :  { %p6311_p9 = scmp.lt.u32.totalorder %s6307_s25, %s7634_s9 }
  0x19   :  { %p6313_p10 = pnand %p6311_p9, %p6308_p8 }
  0x1b   :  { %6316 = shalt.err (!%p6313_p10)
}
  0x1c   :  { %s6317_s30 = scalar_lea.vmem %s59_s21, 16  ;;  %s6321_s8 = scalar_lea.vmem %s59_s21, 32 }
  0x1d   :  { %p6318_p11 = scmp.ne.s32.totalorder %s59_s21, %s6317_s30  ;;  %p6322_p12 = scmp.lt.s32.totalorder %s59_s21, %s59_s21 }
  0x1e   :  { %p6323_p13 = scmp.lt.s32.totalorder %s6321_s8, %s6317_s30 }
  0x20   :  { %p6324_p0 = por %p6323_p13, %p6322_p12 }
  0x22   :  { %p6325_p1 = pnand %p6324_p0, %p6318_p11 }
  0x24   :  { %6328 = shalt.err (!%p6325_p1)
}
  0x25   :  { %61 = dma.hbm_to_vmem [thread:$0]  %s7634_s9, 16, %s59_s21, [#allocation10]  }
  0x26   :  { %6351 = dma.done.wait [#allocation7], 512  }
  0x27   :  { %6352 = vsyncadd [#allocation7], 4294966784 }
  0x28   :  { %6353 = dma.done.wait [#allocation10], 16  }
  0x29   :  { %6354 = vsyncadd [#allocation10], 4294967280  ;;  %vm99_vm0 = vcmask 261120   ;;  %v88_v0 = vld [vmem:[%s7627_s2] sm:$0xff]  ;;  %v89_v1 = vld [vmem:[%s7627_s2 + $0x8] sm:$0xff]  ;;  %s7644_s29 = sld [smem:[#allocation15_spill]] }
  0x2a   :  { %v90_v2 = vld [vmem:[%s7627_s2 + $0x10] sm:$0xff]  ;;  %v5615_v3 = vpack.c.bf16 %v89_v1, %v88_v0  ;;  %v91_v4 = vld [vmem:[%s7627_s2 + $0x18] sm:$0xff]  ;;  %v393_v7 = vld [vmem:[%s7628_s3] sm:$0xff]  ;;  %v6361_v11 = vmov 0.0|0.0   ;;  %vm6362_vm1 = vmmov 0   ;;  %v6363_v21 = vmov 0.0  }
  0x2b   :  { %v5619_v6 = vpack.c.bf16 %v91_v4, %v90_v2  ;;  %v394_v8 = vld [vmem:[%s7628_s3 + $0x8] sm:$0xff]  ;;  %v395_v13 = vld [vmem:[%s7628_s3 + $0x10] sm:$0xff]  ;;  %v396_v14 = vld [vmem:[%s7628_s3 + $0x18] sm:$0xff]  ;;  %s6365_s23 = smov 32   ;;  %vm516_vm2 = vcmask 523264  }
  0x2c   :  { %5616 = vmatprep.subr.bf16.mxu0 %v5615_v3  ;;  %v6504_v10 = vpack.c.bf16 %v394_v8, %v393_v7  ;;  %v6522_v16 = vpack.c.bf16 %v396_v14, %v395_v13  ;;  %v4558_v22 = vld [vmem:[%s7629_s4] ss:$0 sm:$0xff]  ;;  %s6364_s4 = smov 64   ;;  %v246_v53 = vld [vmem:[%s7632_s7 + $0x8] sm:$0xff]  ;;  %v247_v54 = vld [vmem:[%s7632_s7 + $0x10] sm:$0xff] }
  0x2d   :  { %5618 = vmatpush3.bf16.msra.mxu0 %v5615_v3  ;;  %v245_v52 = vld [vmem:[%s7632_s7] sm:$0xff]  ;;  %v248_v56 = vld [vmem:[%s7632_s7 + $0x18] sm:$0xff]  ;;  %v398_v60 = vld [vmem:[%s7630_s5 + $0x8] sm:$0xff] }
  0x2e   :  { %5620 = vmatprep.subr.bf16.mxu0 %v5619_v6  ;;  %v5623_v55 = vpack.c.bf16 %v246_v53, %v245_v52  ;;  %v237_v57 = vld [vmem:[%s7626_s1] sm:$0xff]  ;;  %v5627_v58 = vpack.c.bf16 %v248_v56, %v247_v54  ;;  %v238_v61 = vld [vmem:[%s7626_s1 + $0x8] sm:$0xff]  ;;  %v239_v63 = vld [vmem:[%s7626_s1 + $0x10] sm:$0xff] }
  0x2f   :  { %v80_v5 = vld [vmem:[%s7644_s29] sm:$0xff]  ;;  %v81_v9 = vld [vmem:[%s7644_s29 + $0x8] sm:$0xff]  ;;  %v82_v12 = vld [vmem:[%s7644_s29 + $0x10] sm:$0xff]  ;;  %5019 = vmatprep.mubr.msk.f32.mxu1 %vm99_vm0, %v237_v57 }
  0x30   :  { %4999 = vmatprep.mubr.msk.f32.mxu0 %vm99_vm0, %v80_v5  ;;  %v83_v15 = vld [vmem:[%s7644_s29 + $0x18] sm:$0xff]  ;;  %v84_v17 = vld [vmem:[%s7644_s29 + $0x20] sm:$0xff]  ;;  %v85_v18 = vld [vmem:[%s7644_s29 + $0x28] sm:$0xff]  ;;  %5624 = vmatprep.subr.bf16.mxu1 %v5623_v55 }
  0x31   :  { %5622 = vmatpush3.bf16.msra.mxu0 %v5619_v6  ;;  %v86_v19 = vld [vmem:[%s7644_s29 + $0x30] sm:$0xff]  ;;  %v87_v20 = vld [vmem:[%s7644_s29 + $0x38] sm:$0xff]  ;;  %5626 = vmatpush3.bf16.msra.mxu1 %v5623_v55  ;;  %v397_v59 = vld [vmem:[%s7630_s5] sm:$0xff] }
  0x32   :  { %5631 = vmatprep.subr.bf16.mxu0 %v6361_v11  ;;  %5628 = vmatprep.subr.bf16.mxu1 %v5627_v58  ;;  %v6600_v62 = vpack.c.bf16 %v398_v60, %v397_v59  ;;  %v399_v0 = vld [vmem:[%s7630_s5 + $0x10] sm:$0xff]  ;;  %v400_v1 = vld [vmem:[%s7630_s5 + $0x18] sm:$0xff]  ;;  %v241_v5 = vld [vmem:[%s7626_s1 + $0x20] sm:$0xff] }
  0x33   :  { %v240_v3 = vld [vmem:[%s7626_s1 + $0x18] sm:$0xff]  ;;  %v6619_v4 = vpack.c.bf16 %v400_v1, %v399_v0  ;;  %v401_v6 = vld [vmem:[%s7630_s5 + $0x20] sm:$0xff]  ;;  %v402_v7 = vld [vmem:[%s7630_s5 + $0x28] sm:$0xff] }
  0x34   :  { %5000 = vmatmul.mubr.msk.f32.vlgmr.msra.gmra.mrb[0].mxu0 %vm99_vm0, %v81_v9  ;;  %v242_v8 = vld [vmem:[%s7626_s1 + $0x28] sm:$0xff]  ;;  %v6637_v9 = vpack.c.bf16 %v402_v7, %v401_v6  ;;  %v403_v13 = vld [vmem:[%s7630_s5 + $0x30] sm:$0xff]  ;;  %v404_v14 = vld [vmem:[%s7630_s5 + $0x38] sm:$0xff] }
  0x35   :  { %5633 = vmatpush3.bf16.msra.mxu0 %v6504_v10  ;;  %5002 = vmatprep.mubr.msk.f32.mxu0 %vm99_vm0, %v82_v12  ;;  %v243_v12 = vld [vmem:[%s7626_s1 + $0x30] sm:$0xff]  ;;  %vm7354_vm3 = vmpackc.low %vm99_vm0, %vm99_vm0 }
  0x36   :  { %5634 = vmatprep.subr.bf16.mxu0 %v6361_v11  ;;  %5630 = vmatpush3.bf16.msra.mxu1 %v5627_v58 }
  0x37   :  { %5637 = vmatprep.subr.bf16.mxu1 %v6361_v11 }
  0x38   :  { %5003 = vmatmul.mubr.msk.f32.gmra.mrb[2].mxu0 %vm99_vm0, %v83_v15  ;;  %v244_v15 = vld [vmem:[%s7626_s1 + $0x38] sm:$0xff] }
  0x39   :  { %5005 = vmatprep.mubr.msk.f32.mxu0 %vm99_vm0, %v84_v17  ;;  %5636 = vmatpush3.bf16.msra.mxu0 %v6522_v16  ;;  %v6655_v17 = vpack.c.bf16 %v404_v14, %v403_v13 }
  0x3a   :  { %5649 = vmatprep.subr.bf16.mxu0 %v6361_v11  ;;  %5020 = vmatmul.mubr.msk.f32.vlgmr.msra.gmra.mrb[0].mxu1 %vm99_vm0, %v238_v61 }
  0x3b   :  { %5639 = vmatpush3.bf16.msra.mxu1 %v6600_v62  ;;  %5022 = vmatprep.mubr.msk.f32.mxu1 %vm99_vm0, %v239_v63 }
  0x3c   :  { %5006 = vmatmul.mubr.msk.f32.gmra.mrb[4].mxu0 %vm99_vm0, %v85_v18  ;;  %5640 = vmatprep.subr.bf16.mxu1 %v6361_v11 }
  0x3d   :  { %5008 = vmatprep.mubr.msk.f32.mxu0 %vm99_vm0, %v86_v19 }
  0x3e   :  { %5023 = vmatmul.mubr.msk.f32.gmra.mrb[2].mxu1 %vm99_vm0, %v240_v3 }
  0x3f   :  { %5642 = vmatpush3.bf16.msra.mxu1 %v6619_v4  ;;  %5025 = vmatprep.mubr.msk.f32.mxu1 %vm99_vm0, %v241_v5 }
  0x40   :  { %5009 = vmatmul.mubr.msk.f32.gmra.mrb[6].mxu0 %vm99_vm0, %v87_v20  ;;  %5643 = vmatprep.subr.bf16.mxu1 %v6361_v11  ;;  %v6664_v20 = vld [vmem:[#allocation9] ss:$0 sm:$0xff] }
  0x41   :  { %5039 = vmatprep.mubr.msk.f32.mxu0 %vm6362_vm1, %v6363_v21 }
  0x42   :  { %5026 = vmatmul.mubr.msk.f32.gmra.mrb[4].mxu1 %vm99_vm0, %v242_v8 }
  0x43   :  { %5645 = vmatpush3.bf16.msra.mxu1 %v6637_v9  ;;  %5028 = vmatprep.mubr.msk.f32.mxu1 %vm99_vm0, %v243_v12 }
  0x44   :  { %5040 = vmatmul.mubr.f32.vlgmr.msra.gmra.mrb[8].mxu0 %v6363_v21  ;;  %5646 = vmatprep.subr.bf16.mxu1 %v6361_v11 }
  0x45   :  { %5651 = vmatpush3.bf16.msra.mxu0 %v6504_v10  ;;  %5069 = vmatprep.mubr.msk.f32.mxu0 %vm6362_vm1, %v6363_v21 }
  0x46   :  { %5652 = vmatprep.subr.bf16.mxu0 %v6361_v11  ;;  %5029 = vmatmul.mubr.msk.f32.gmra.mrb[6].mxu1 %vm99_vm0, %v244_v15 }
  0x47   :  { %5648 = vmatpush3.bf16.msra.mxu1 %v6655_v17  ;;  %5058 = vmatprep.mubr.msk.f32.mxu1 %vm6362_vm1, %v6363_v21 }
  0x48   :  { %5655 = vmatprep.subr.bf16.mxu1 %v6361_v11 }
  0x49   :  { %5654 = vmatpush3.bf16.msra.mxu0 %v6522_v16 }
  0x4a   :  { %5667 = vmatprep.subr.bf16.mxu0 %v6361_v11 }
 0x107   :  { %v5001_v23 = vpop.f32.mrb[0].mxu0 }
 0x108   :  { %v6556_v24 = vadd.f32 %v5001_v23, %v4558_v22  ;;  %v190_v25 = vpop.f32.mrb[1].mxu0 }
 0x109   :  { %v191_v38 = vadd.f32 %v4558_v22, %v190_v25 }
 0x10b   :  { %v5004_v26 = vpop.f32.mrb[2].mxu0 }
 0x10c   :  { %v6558_v27 = vadd.f32 %v5004_v26, %v4558_v22  ;;  %v200_v28 = vpop.f32.mrb[3].mxu0 }
 0x10d   :  { %v6560_v29 = vadd.f32 %v4558_v22, %v200_v28 }
 0x10f   :  { %v5007_v30 = vpop.f32.mrb[4].mxu0 }
 0x110   :  { %v6562_v31 = vadd.f32 %v5007_v30, %v4558_v22  ;;  %v210_v32 = vpop.f32.mrb[5].mxu0 }
 0x111   :  { %v6564_v33 = vadd.f32 %v4558_v22, %v210_v32 }
 0x113   :  { %v5010_v34 = vpop.f32.mrb[6].mxu0 }
 0x114   :  { %v6566_v35 = vadd.f32 %v5010_v34, %v4558_v22  ;;  %v220_v36 = vpop.f32.mrb[7].mxu0 }
 0x115   :  { %v6568_v37 = vadd.f32 %v4558_v22, %v220_v36  ;;  %v5021_v22 = vpop.f32.mrb[0].mxu1 }
 0x116   :  { %v6667_v23 = vadd.f32 %v5021_v22, %v6664_v20  ;;  %v6669_v25 = vpop.f32.mrb[1].mxu1 }
 0x117   :  { %v476_v39 = vpop.f32.mrb[8].mxu0  ;;  %v5024_v26 = vpop.f32.mrb[2].mxu1 }
 0x118   :  { %v480_v40 = vadd.f32 %v476_v39, %v191_v38  ;;  %v5041_v41 = vpop.f32.mrb[9].mxu0  ;;  %v6672_v28 = vadd.f32 %v5024_v26, %v6664_v20  ;;  %v356_v30 = vpop.f32.mrb[3].mxu1 }
 0x119   :  { %v6675_v32 = vadd.f32 %v6664_v20, %v356_v30  ;;  %v5027_v34 = vpop.f32.mrb[4].mxu1 }
 0x11a   :  { %5997 = vtanh.f32 %v480_v40  ;;  %v4576_v43 = vmul.f32 -1.442695, %v480_v40  ;;  %v6678_v36 = vadd.f32 %v5027_v34, %v6664_v20  ;;  %v366_v38 = vpop.f32.mrb[5].mxu1 }
 0x11b   :  { %v6681_v39 = vadd.f32 %v6664_v20, %v366_v38  ;;  %v5030_v40 = vpop.f32.mrb[6].mxu1 }
 0x11c   :  { %5999 = vpow2.f32 %v4576_v43  ;;  %v6684_v41 = vadd.f32 %v5030_v40, %v6664_v20 }
 0x124   :  { %v5998_v42 = vpop.eup %5997 }
 0x125   :  { %490 = vrot.lane.b32.xlu0 %v5998_v42, %s6364_s4  ;;  %v376_v42 = vpop.f32.mrb[7].mxu1 }
 0x126   :  { %v6000_v44 = vpop.eup %5999  ;;  %v6687_v43 = vadd.f32 %v6664_v20, %v376_v42 }
 0x127   :  { %v484_v45 = vadd.f32 1.0, %v6000_v44 }
 0x129   :  { %6001 = vrcp.f32 %v484_v45 }
 0x133   :  { %v6002_v46 = vpop.eup %6001 }
 0x134   :  { %v488_v49 = vmul.f32 0.0, %v6002_v46 }
 0x197   :  { %v491_v47 = vpop.permute.xlu0 %490 }
 0x198   :  { %v493_v48 = vmul.f32 %v6002_v46, %v491_v47 }
 0x19a   :  { %495 = vrot.lane.b32.xlu0 %v493_v48, %s6365_s23 }
 0x20c   :  { %v496_v50 = vpop.permute.xlu0 %495 }
 0x20d   :  { %v6572_v51 = vadd.f32 %v496_v50, %v488_v49 }
 0x20f   :  { %6003 = vtanh.f32 %v6572_v51 }
 0x219   :  { %v6004_v2 = vpop.eup %6003 }
 0x21a   :  { %501 = vrot.lane.b32.xlu1 %v6004_v2, %s6364_s4 }
 0x28c   :  { %v502_v18 = vpop.permute.xlu1 %501 }
 0x28d   :  { %v504_v19 = vmul.f32 %v6002_v46, %v502_v18  ;;  %v6711_v46 = vld [vmem:[%s7631_s6] ss:$0 sm:$0xff] }
 0x28f   :  { %506 = vrot.lane.b32.xlu1 %v504_v19, %s6365_s23 }
 0x301   :  { %v507_v44 = vpop.permute.xlu1 %506 }
 0x302   :  { %v509_v45 = vsel %vm99_vm0, %v507_v44, 0.0  ;;  %5070 = vmatmul.mubr.msk.f32.vlgmr.msra.gmra.mrb[10].mxu0 %vm99_vm0, %v507_v44 }
 0x303   :  { %5059 = vmatmul.mubr.msk.f32.vlgmr.msra.gmra.mrb[8].mxu1 %vm516_vm2, %v509_v45  ;;  %5669 = vmatpush3.bf16.msra.mxu0 %v6504_v10 }
 0x304   :  { %5657 = vmatpush3.bf16.msra.mxu1 %v6600_v62  ;;  %5670 = vmatprep.subr.bf16.mxu0 %v6361_v11 }
 0x305   :  { %5658 = vmatprep.subr.bf16.mxu1 %v6361_v11  ;;  %5099 = vmatprep.mubr.msk.f32.mxu0 %vm6362_vm1, %v6363_v21 }
 0x306   :  { %5088 = vmatprep.mubr.msk.f32.mxu1 %vm6362_vm1, %v6363_v21 }
 0x307   :  { %5672 = vmatpush3.bf16.msra.mxu0 %v6522_v16 }
 0x308   :  { %5660 = vmatpush3.bf16.msra.mxu1 %v6619_v4  ;;  %5673 = vmatprep.subr.bf16.mxu0 %v6361_v11 }
 0x309   :  { %5661 = vmatprep.subr.bf16.mxu1 %v6361_v11 }
 0x30c   :  { %5663 = vmatpush3.bf16.msra.mxu1 %v6637_v9 }
 0x30d   :  { %5664 = vmatprep.subr.bf16.mxu1 %v6361_v11 }
 0x310   :  { %5666 = vmatpush3.bf16.msra.mxu1 %v6655_v17 }
 0x311   :  { %5685 = vmatprep.subr.bf16.mxu1 %v6361_v11 }
 0x3d5   :  { %v689_v47 = vpop.f32.mrb[10].mxu0 }
 0x3d6   :  { %v693_v48 = vadd.f32 %v689_v47, %v6556_v24  ;;  %v586_v49 = vpop.f32.mrb[8].mxu1  ;;  %v5071_v50 = vpop.f32.mrb[11].mxu0 }
 0x3d7   :  { %v587_v52 = vadd.f32 %v6711_v46, %v586_v49  ;;  %v5060_v53 = vpop.f32.mrb[9].mxu1 }
 0x3d8   :  { %6005 = vtanh.f32 %v693_v48  ;;  %v4581_v56 = vmul.f32 -1.442695, %v693_v48 }
 0x3d9   :  { %6007 = vtanh.f32 %v587_v52  ;;  %v4579_v57 = vmul.f32 -1.442695, %v587_v52 }
 0x3da   :  { %6009 = vpow2.f32 %v4581_v56 }
 0x3db   :  { %6011 = vpow2.f32 %v4579_v57 }
 0x3e2   :  { %v6006_v54 = vpop.eup %6005 }
 0x3e3   :  { %v6008_v55 = vpop.eup %6007  ;;  %703 = vrot.lane.b32.xlu1 %v6006_v54, %s6364_s4 }
 0x3e4   :  { %599 = vrot.lane.b32.xlu0 %v6008_v55, %s6364_s4  ;;  %v6010_v58 = vpop.eup %6009 }
 0x3e5   :  { %v6012_v59 = vpop.eup %6011  ;;  %v697_v24 = vadd.f32 1.0, %v6010_v58 }
 0x3e6   :  { %v593_v60 = vadd.f32 1.0, %v6012_v59 }
 0x3e7   :  { %6013 = vrcp.f32 %v697_v24 }
 0x3e8   :  { %6015 = vrcp.f32 %v593_v60 }
 0x3f1   :  { %v6014_v61 = vpop.eup %6013 }
 0x3f2   :  { %v6016_v0 = vpop.eup %6015  ;;  %v701_v5 = vmul.f32 %v6014_v61, %v6572_v51 }
 0x3f3   :  { %v597_v7 = vmul.f32 0.0, %v6016_v0 }
 0x455   :  { %v704_v63 = vpop.permute.xlu1 %703 }
 0x456   :  { %v706_v1 = vmul.f32 %v6014_v61, %v704_v63  ;;  %v600_v2 = vpop.permute.xlu0 %599 }
 0x457   :  { %v602_v3 = vmul.f32 %v6016_v0, %v600_v2 }
 0x458   :  { %708 = vrot.lane.b32.xlu1 %v706_v1, %s6365_s23 }
 0x459   :  { %604 = vrot.lane.b32.xlu0 %v602_v3, %s6365_s23 }
 0x4ca   :  { %v709_v6 = vpop.permute.xlu1 %708 }
 0x4cb   :  { %v6720_v8 = vadd.f32 %v709_v6, %v701_v5  ;;  %v605_v12 = vpop.permute.xlu0 %604 }
 0x4cc   :  { %v6722_v13 = vadd.f32 %v605_v12, %v597_v7 }
 0x4cd   :  { %6017 = vtanh.f32 %v6720_v8 }
 0x4ce   :  { %6019 = vtanh.f32 %v6722_v13 }
 0x4d7   :  { %v6018_v14 = vpop.eup %6017 }
 0x4d8   :  { %v6020_v15 = vpop.eup %6019  ;;  %714 = vrot.lane.b32.xlu1 %v6018_v14, %s6364_s4 }
 0x4d9   :  { %610 = vrot.lane.b32.xlu0 %v6020_v15, %s6364_s4 }
 0x54a   :  { %v715_v18 = vpop.permute.xlu1 %714 }
 0x54b   :  { %v717_v19 = vmul.f32 %v6014_v61, %v715_v18  ;;  %v611_v51 = vpop.permute.xlu0 %610 }
 0x54c   :  { %v6728_v22 = vmul.f32 %v6016_v0, %v611_v51 }
 0x54d   :  { %719 = vrot.lane.b32.xlu0 %v717_v19, %s6365_s23 }
 0x54e   :  { %722 = vrot.lane.b32.xlu1 %v6728_v22, %s6364_s4 }
 0x5bf   :  { %v720_v26 = vpop.permute.xlu0 %719 }
 0x5c0   :  { %v723_v30 = vpop.permute.xlu1 %722  ;;  %5100 = vmatmul.mubr.msk.f32.vlgmr.msra.gmra.mrb[12].mxu0 %vm99_vm0, %v720_v26 }
 0x5c1   :  { %v725_v34 = vsel %vm99_vm0, %v720_v26, %v723_v30  ;;  %5675 = vmatpush3.bf16.msra.mxu0 %v6600_v62  ;;  %5118 = vmatprep.mubr.msk.f32.mxu0 %vm6362_vm1, %v6363_v21 }
 0x5c2   :  { %5089 = vmatmul.mubr.msk.f32.vlgmr.msra.gmra.mrb[10].mxu1 %vm516_vm2, %v725_v34  ;;  %5676 = vmatprep.subr.bf16.mxu0 %v6361_v11 }
 0x5c3   :  { %5687 = vmatpush3.bf16.msra.mxu1 %v6504_v10  ;;  %5129 = vmatprep.mubr.msk.f32.mxu1 %vm6362_vm1, %v6363_v21 }
 0x5c4   :  { %5688 = vmatprep.subr.bf16.mxu1 %v6361_v11 }
 0x5c5   :  { %5678 = vmatpush3.bf16.msra.mxu0 %v6619_v4 }
 0x5c6   :  { %5679 = vmatprep.subr.bf16.mxu0 %v6361_v11 }
 0x5c7   :  { %5690 = vmatpush3.bf16.msra.mxu1 %v6522_v16 }
 0x5c8   :  { %5691 = vmatprep.subr.bf16.mxu1 %v6361_v11 }
 0x5c9   :  { %5681 = vmatpush3.bf16.msra.mxu0 %v6637_v9 }
 0x5ca   :  { %5682 = vmatprep.subr.bf16.mxu0 %v6361_v11 }
 0x5cd   :  { %5684 = vmatpush3.bf16.msra.mxu0 %v6655_v17 }
 0x5ce   :  { %5703 = vmatprep.subr.bf16.mxu0 %v6361_v11 }
 0x693   :  { %v899_v38 = vpop.f32.mrb[12].mxu0 }
 0x694   :  { %v903_v40 = vadd.f32 %v899_v38, %v6560_v29  ;;  %v5101_v42 = vpop.f32.mrb[13].mxu0 }
 0x695   :  { %v795_v44 = vpop.f32.mrb[10].mxu1 }
 0x696   :  { %6021 = vtanh.f32 %v903_v40  ;;  %v796_v45 = vadd.f32 %v6711_v46, %v795_v44  ;;  %v5090_v47 = vpop.f32.mrb[11].mxu1  ;;  %v4585_v50 = vmul.f32 -1.442695, %v903_v40 }
 0x698   :  { %6023 = vtanh.f32 %v796_v45  ;;  %v4583_v52 = vmul.f32 -1.442695, %v796_v45 }
 0x699   :  { %6025 = vpow2.f32 %v4585_v50 }
 0x69a   :  { %6027 = vpow2.f32 %v4583_v52 }
 0x6a0   :  { %v6022_v48 = vpop.eup %6021 }
 0x6a1   :  { %913 = vrot.lane.b32.xlu1 %v6022_v48, %s6364_s4 }
 0x6a2   :  { %v6024_v49 = vpop.eup %6023 }
 0x6a3   :  { %808 = vrot.lane.b32.xlu0 %v6024_v49, %s6364_s4  ;;  %v6026_v53 = vpop.eup %6025 }
 0x6a4   :  { %v6028_v54 = vpop.eup %6027  ;;  %v907_v29 = vadd.f32 1.0, %v6026_v53 }
 0x6a5   :  { %v802_v55 = vadd.f32 1.0, %v6028_v54 }
 0x6a6   :  { %6029 = vrcp.f32 %v907_v29 }
 0x6a7   :  { %6031 = vrcp.f32 %v802_v55 }
 0x6b0   :  { %v6030_v56 = vpop.eup %6029 }
 0x6b1   :  { %v6032_v59 = vpop.eup %6031  ;;  %v911_v61 = vmul.f32 %v6030_v56, %v6720_v8 }
 0x6b2   :  { %v806_v1 = vmul.f32 %v6032_v59, %v6722_v13 }
 0x713   :  { %v914_v57 = vpop.permute.xlu1 %913 }
 0x714   :  { %v916_v58 = vmul.f32 %v6030_v56, %v914_v57 }
 0x715   :  { %v809_v24 = vpop.permute.xlu0 %808 }
 0x716   :  { %918 = vrot.lane.b32.xlu1 %v916_v58, %s6365_s23  ;;  %v811_v60 = vmul.f32 %v6032_v59, %v809_v24 }
 0x718   :  { %813 = vrot.lane.b32.xlu0 %v811_v60, %s6365_s23 }
 0x788   :  { %v919_v63 = vpop.permute.xlu1 %918 }
 0x789   :  { %v6759_v0 = vadd.f32 %v919_v63, %v911_v61 }
 0x78a   :  { %v814_v2 = vpop.permute.xlu0 %813 }
 0x78b   :  { %6033 = vtanh.f32 %v6759_v0  ;;  %v6763_v3 = vadd.f32 %v814_v2, %v806_v1 }
 0x78d   :  { %6035 = vtanh.f32 %v6763_v3 }
 0x795   :  { %v6034_v5 = vpop.eup %6033 }
 0x796   :  { %924 = vrot.lane.b32.xlu1 %v6034_v5, %s6364_s4 }
 0x797   :  { %v6036_v6 = vpop.eup %6035 }
 0x798   :  { %819 = vrot.lane.b32.xlu0 %v6036_v6, %s6364_s4 }
 0x808   :  { %v925_v7 = vpop.permute.xlu1 %924 }
 0x809   :  { %v927_v8 = vmul.f32 %v6030_v56, %v925_v7 }
 0x80a   :  { %v820_v12 = vpop.permute.xlu0 %819 }
 0x80b   :  { %929 = vrot.lane.b32.xlu0 %v927_v8, %s6365_s23  ;;  %v6769_v14 = vmul.f32 %v6032_v59, %v820_v12 }
 0x80d   :  { %932 = vrot.lane.b32.xlu1 %v6769_v14, %s6364_s4 }
 0x87d   :  { %v930_v13 = vpop.permute.xlu0 %929 }
 0x87e   :  { %5130 = vmatmul.mubr.msk.f32.vlgmr.msra.gmra.mrb[12].mxu1 %vm99_vm0, %v930_v13 }
 0x87f   :  { %5693 = vmatpush3.bf16.msra.mxu1 %v6600_v62  ;;  %5148 = vmatprep.mubr.msk.f32.mxu1 %vm6362_vm1, %v6363_v21  ;;  %v933_v15 = vpop.permute.xlu1 %932 }
 0x880   :  { %5694 = vmatprep.subr.bf16.mxu1 %v6361_v11  ;;  %v935_v18 = vsel %vm99_vm0, %v930_v13, %v933_v15 }
 0x881   :  { %5119 = vmatmul.mubr.msk.f32.vlgmr.msra.gmra.mrb[14].mxu0 %vm516_vm2, %v935_v18 }
 0x882   :  { %5705 = vmatpush3.bf16.msra.mxu0 %v6504_v10  ;;  %5159 = vmatprep.mubr.msk.f32.mxu0 %vm6362_vm1, %v6363_v21 }
 0x883   :  { %5696 = vmatpush3.bf16.msra.mxu1 %v6619_v4  ;;  %5706 = vmatprep.subr.bf16.mxu0 %v6361_v11 }
 0x884   :  { %5697 = vmatprep.subr.bf16.mxu1 %v6361_v11 }
 0x886   :  { %5708 = vmatpush3.bf16.msra.mxu0 %v6522_v16 }
 0x887   :  { %5699 = vmatpush3.bf16.msra.mxu1 %v6637_v9  ;;  %5709 = vmatprep.subr.bf16.mxu0 %v6361_v11 }
 0x888   :  { %5700 = vmatprep.subr.bf16.mxu1 %v6361_v11 }
 0x88b   :  { %5702 = vmatpush3.bf16.msra.mxu1 %v6655_v17 }
 0x88c   :  { %5721 = vmatprep.subr.bf16.mxu1 %v6361_v11 }
 0x951   :  { %v1109_v19 = vpop.f32.mrb[12].mxu1 }
 0x952   :  { %v1113_v51 = vadd.f32 %v1109_v19, %v6558_v27  ;;  %v5131_v26 = vpop.f32.mrb[13].mxu1 }
 0x954   :  { %6037 = vtanh.f32 %v1113_v51  ;;  %v1005_v30 = vpop.f32.mrb[14].mxu0  ;;  %v4589_v44 = vmul.f32 -1.442695, %v1113_v51 }
 0x955   :  { %v1006_v34 = vadd.f32 %v6711_v46, %v1005_v30  ;;  %v5120_v38 = vpop.f32.mrb[15].mxu0 }
 0x957   :  { %6039 = vtanh.f32 %v1006_v34  ;;  %v4587_v45 = vmul.f32 -1.442695, %v1006_v34 }
 0x958   :  { %6041 = vpow2.f32 %v4589_v44 }
 0x959   :  { %6043 = vpow2.f32 %v4587_v45 }
 0x95e   :  { %v6038_v40 = vpop.eup %6037 }
 0x95f   :  { %1123 = vrot.lane.b32.xlu1 %v6038_v40, %s6364_s4 }
 0x961   :  { %v6040_v42 = vpop.eup %6039 }
 0x962   :  { %1018 = vrot.lane.b32.xlu0 %v6040_v42, %s6364_s4  ;;  %v6042_v47 = vpop.eup %6041 }
 0x963   :  { %v1117_v48 = vadd.f32 1.0, %v6042_v47  ;;  %v6044_v27 = vpop.eup %6043 }
 0x964   :  { %v1012_v49 = vadd.f32 1.0, %v6044_v27 }
 0x965   :  { %6045 = vrcp.f32 %v1117_v48 }
 0x966   :  { %6047 = vrcp.f32 %v1012_v49 }
 0x96f   :  { %v6046_v50 = vpop.eup %6045 }
 0x970   :  { %v6048_v54 = vpop.eup %6047  ;;  %v1121_v56 = vmul.f32 %v6046_v50, %v6759_v0 }
 0x971   :  { %v1016_v59 = vmul.f32 %v6048_v54, %v6763_v3 }
 0x9d1   :  { %v1124_v52 = vpop.permute.xlu1 %1123 }
 0x9d2   :  { %v1126_v53 = vmul.f32 %v6046_v50, %v1124_v52 }
 0x9d4   :  { %1128 = vrot.lane.b32.xlu1 %v1126_v53, %s6365_s23  ;;  %v1019_v29 = vpop.permute.xlu0 %1018 }
 0x9d5   :  { %v1021_v55 = vmul.f32 %v6048_v54, %v1019_v29 }
 0x9d7   :  { %1023 = vrot.lane.b32.xlu0 %v1021_v55, %s6365_s23 }
 0xa46   :  { %v1129_v57 = vpop.permute.xlu1 %1128 }
 0xa47   :  { %v6799_v58 = vadd.f32 %v1129_v57, %v1121_v56 }
 0xa49   :  { %6049 = vtanh.f32 %v6799_v58  ;;  %v1024_v24 = vpop.permute.xlu0 %1023 }
 0xa4a   :  { %v6803_v60 = vadd.f32 %v1024_v24, %v1016_v59 }
 0xa4c   :  { %6051 = vtanh.f32 %v6803_v60 }
 0xa53   :  { %v6050_v61 = vpop.eup %6049 }
 0xa54   :  { %1134 = vrot.lane.b32.xlu1 %v6050_v61, %s6364_s4 }
 0xa56   :  { %v6052_v63 = vpop.eup %6051 }
 0xa57   :  { %1029 = vrot.lane.b32.xlu0 %v6052_v63, %s6364_s4 }
 0xac6   :  { %v1135_v1 = vpop.permute.xlu1 %1134 }
 0xac7   :  { %v1137_v0 = vmul.f32 %v6046_v50, %v1135_v1 }
 0xac9   :  { %1139 = vrot.lane.b32.xlu0 %v1137_v0, %s6365_s23  ;;  %v1030_v2 = vpop.permute.xlu0 %1029 }
 0xaca   :  { %v6809_v5 = vmul.f32 %v6048_v54, %v1030_v2 }
 0xacc   :  { %1142 = vrot.lane.b32.xlu1 %v6809_v5, %s6364_s4 }
 0xb3b   :  { %v1140_v3 = vpop.permute.xlu0 %1139 }
 0xb3c   :  { %5160 = vmatmul.mubr.msk.f32.vlgmr.msra.gmra.mrb[16].mxu0 %vm99_vm0, %v1140_v3 }
 0xb3d   :  { %5711 = vmatpush3.bf16.msra.mxu0 %v6600_v62  ;;  %5178 = vmatprep.mubr.msk.f32.mxu0 %vm6362_vm1, %v6363_v21 }
 0xb3e   :  { %5712 = vmatprep.subr.bf16.mxu0 %v6361_v11  ;;  %v1143_v6 = vpop.permute.xlu1 %1142 }
 0xb3f   :  { %v1145_v7 = vsel %vm99_vm0, %v1140_v3, %v1143_v6 }
 0xb40   :  { %5149 = vmatmul.mubr.msk.f32.vlgmr.msra.gmra.mrb[14].mxu1 %vm516_vm2, %v1145_v7 }
 0xb41   :  { %5714 = vmatpush3.bf16.msra.mxu0 %v6619_v4  ;;  %5723 = vmatpush3.bf16.msra.mxu1 %v6504_v10 }
 0xb42   :  { %5715 = vmatprep.subr.bf16.mxu0 %v6361_v11  ;;  %5724 = vmatprep.subr.bf16.mxu1 %v6361_v11 }
 0xb43   :  { %5189 = vmatprep.mubr.msk.f32.mxu1 %vm6362_vm1, %v6363_v21 }
 0xb45   :  { %5717 = vmatpush3.bf16.msra.mxu0 %v6637_v9  ;;  %5726 = vmatpush3.bf16.msra.mxu1 %v6522_v16 }
 0xb46   :  { %5718 = vmatprep.subr.bf16.mxu0 %v6361_v11  ;;  %5727 = vmatprep.subr.bf16.mxu1 %v6361_v11 }
 0xb49   :  { %5720 = vmatpush3.bf16.msra.mxu0 %v6655_v17 }
 0xb4a   :  { %5739 = vmatprep.subr.bf16.mxu0 %v6361_v11 }
 0xc0f   :  { %v1319_v8 = vpop.f32.mrb[16].mxu0 }
 0xc10   :  { %v1323_v12 = vadd.f32 %v1319_v8, %v6564_v33  ;;  %v5161_v13 = vpop.f32.mrb[17].mxu0 }
 0xc12   :  { %6053 = vtanh.f32 %v1323_v12  ;;  %v4593_v30 = vmul.f32 -1.442695, %v1323_v12 }
 0xc13   :  { %v1215_v15 = vpop.f32.mrb[14].mxu1 }
 0xc14   :  { %v1216_v18 = vadd.f32 %v6711_v46, %v1215_v15  ;;  %v5150_v19 = vpop.f32.mrb[15].mxu1 }
 0xc16   :  { %6055 = vtanh.f32 %v1216_v18  ;;  %v4591_v34 = vmul.f32 -1.442695, %v1216_v18 }
 0xc17   :  { %6057 = vpow2.f32 %v4593_v30 }
 0xc18   :  { %6059 = vpow2.f32 %v4591_v34 }
 0xc1c   :  { %v6054_v51 = vpop.eup %6053 }
 0xc1d   :  { %1333 = vrot.lane.b32.xlu1 %v6054_v51, %s6364_s4 }
 0xc20   :  { %v6056_v26 = vpop.eup %6055 }
 0xc21   :  { %1228 = vrot.lane.b32.xlu0 %v6056_v26, %s6364_s4  ;;  %v6058_v38 = vpop.eup %6057 }
 0xc22   :  { %v1327_v40 = vadd.f32 1.0, %v6058_v38  ;;  %v6060_v33 = vpop.eup %6059 }
 0xc23   :  { %v1222_v42 = vadd.f32 1.0, %v6060_v33 }
 0xc24   :  { %6061 = vrcp.f32 %v1327_v40 }
 0xc25   :  { %6063 = vrcp.f32 %v1222_v42 }
 0xc2e   :  { %v6062_v44 = vpop.eup %6061 }
 0xc2f   :  { %v6064_v48 = vpop.eup %6063  ;;  %v1331_v50 = vmul.f32 %v6062_v44, %v6799_v58 }
 0xc30   :  { %v1226_v54 = vmul.f32 %v6064_v48, %v6803_v60 }
 0xc8f   :  { %v1334_v45 = vpop.permute.xlu1 %1333 }
 0xc90   :  { %v1336_v47 = vmul.f32 %v6062_v44, %v1334_v45 }
 0xc92   :  { %1338 = vrot.lane.b32.xlu1 %v1336_v47, %s6365_s23 }
 0xc93   :  { %v1229_v27 = vpop.permute.xlu0 %1228 }
 0xc94   :  { %v1231_v49 = vmul.f32 %v6064_v48, %v1229_v27 }
 0xc96   :  { %1233 = vrot.lane.b32.xlu0 %v1231_v49, %s6365_s23 }
 0xd04   :  { %v1339_v52 = vpop.permute.xlu1 %1338 }
 0xd05   :  { %v6839_v53 = vadd.f32 %v1339_v52, %v1331_v50 }
 0xd07   :  { %6065 = vtanh.f32 %v6839_v53 }
 0xd08   :  { %v1234_v29 = vpop.permute.xlu0 %1233 }
 0xd09   :  { %v6843_v55 = vadd.f32 %v1234_v29, %v1226_v54 }
 0xd0b   :  { %6067 = vtanh.f32 %v6843_v55 }
 0xd11   :  { %v6066_v56 = vpop.eup %6065 }
 0xd12   :  { %1344 = vrot.lane.b32.xlu1 %v6066_v56, %s6364_s4 }
 0xd15   :  { %v6068_v57 = vpop.eup %6067 }
 0xd16   :  { %1239 = vrot.lane.b32.xlu0 %v6068_v57, %s6364_s4 }
 0xd84   :  { %v1345_v59 = vpop.permute.xlu1 %1344 }
 0xd85   :  { %v1347_v58 = vmul.f32 %v6062_v44, %v1345_v59 }
 0xd87   :  { %1349 = vrot.lane.b32.xlu0 %v1347_v58, %s6365_s23 }
 0xd88   :  { %v1240_v24 = vpop.permute.xlu0 %1239 }
 0xd89   :  { %v6849_v61 = vmul.f32 %v6064_v48, %v1240_v24 }
 0xd8b   :  { %1352 = vrot.lane.b32.xlu1 %v6849_v61, %s6364_s4 }
 0xdf9   :  { %v1350_v60 = vpop.permute.xlu0 %1349 }
 0xdfa   :  { %5190 = vmatmul.mubr.msk.f32.vlgmr.msra.gmra.mrb[16].mxu1 %vm99_vm0, %v1350_v60 }
 0xdfb   :  { %5729 = vmatpush3.bf16.msra.mxu1 %v6600_v62  ;;  %5208 = vmatprep.mubr.msk.f32.mxu1 %vm6362_vm1, %v6363_v21 }
 0xdfc   :  { %5730 = vmatprep.subr.bf16.mxu1 %v6361_v11 }
 0xdfd   :  { %v1353_v63 = vpop.permute.xlu1 %1352 }
 0xdfe   :  { %v1355_v1 = vsel %vm99_vm0, %v1350_v60, %v1353_v63 }
 0xdff   :  { %5732 = vmatpush3.bf16.msra.mxu1 %v6619_v4  ;;  %5179 = vmatmul.mubr.msk.f32.vlgmr.msra.gmra.mrb[18].mxu0 %vm516_vm2, %v1355_v1 }
 0xe00   :  { %5733 = vmatprep.subr.bf16.mxu1 %v6361_v11  ;;  %5741 = vmatpush3.bf16.msra.mxu0 %v6504_v10 }
 0xe01   :  { %5219 = vmatprep.mubr.msk.f32.mxu0 %vm6362_vm1, %v6363_v21  ;;  %5742 = vmatprep.subr.bf16.mxu0 %v6361_v11 }
 0xe03   :  { %5735 = vmatpush3.bf16.msra.mxu1 %v6637_v9 }
 0xe04   :  { %5736 = vmatprep.subr.bf16.mxu1 %v6361_v11  ;;  %5744 = vmatpush3.bf16.msra.mxu0 %v6522_v16 }
 0xe05   :  { %5745 = vmatprep.subr.bf16.mxu0 %v6361_v11 }
 0xe07   :  { %5738 = vmatpush3.bf16.msra.mxu1 %v6655_v17 }
 0xe08   :  { %5757 = vmatprep.subr.bf16.mxu1 %v6361_v11 }
 0xecd   :  { %v1529_v0 = vpop.f32.mrb[16].mxu1 }
 0xece   :  { %v1533_v2 = vadd.f32 %v1529_v0, %v6562_v31  ;;  %v5191_v3 = vpop.f32.mrb[17].mxu1 }
 0xed0   :  { %6069 = vtanh.f32 %v1533_v2  ;;  %v4597_v15 = vmul.f32 -1.442695, %v1533_v2 }
 0xed2   :  { %v1425_v6 = vpop.f32.mrb[18].mxu0 }
 0xed3   :  { %v1426_v7 = vadd.f32 %v6711_v46, %v1425_v6  ;;  %v5180_v8 = vpop.f32.mrb[19].mxu0 }
 0xed5   :  { %6071 = vtanh.f32 %v1426_v7  ;;  %v4595_v18 = vmul.f32 -1.442695, %v1426_v7 }
 0xed6   :  { %6073 = vpow2.f32 %v4597_v15 }
 0xed7   :  { %6075 = vpow2.f32 %v4595_v18 }
 0xeda   :  { %v6070_v12 = vpop.eup %6069 }
 0xedb   :  { %1543 = vrot.lane.b32.xlu1 %v6070_v12, %s6364_s4 }
 0xedf   :  { %v6072_v13 = vpop.eup %6071 }
 0xee0   :  { %1438 = vrot.lane.b32.xlu0 %v6072_v13, %s6364_s4  ;;  %v6074_v19 = vpop.eup %6073 }
 0xee1   :  { %v1537_v51 = vadd.f32 1.0, %v6074_v19  ;;  %v6076_v31 = vpop.eup %6075 }
 0xee2   :  { %v1432_v26 = vadd.f32 1.0, %v6076_v31 }
 0xee3   :  { %6077 = vrcp.f32 %v1537_v51 }
 0xee4   :  { %6079 = vrcp.f32 %v1432_v26 }
 0xeed   :  { %v6078_v30 = vpop.eup %6077 }
 0xeee   :  { %v6080_v40 = vpop.eup %6079  ;;  %v1541_v44 = vmul.f32 %v6078_v30, %v6839_v53 }
 0xeef   :  { %v1436_v48 = vmul.f32 %v6080_v40, %v6843_v55 }
 0xf4d   :  { %v1544_v34 = vpop.permute.xlu1 %1543 }
 0xf4e   :  { %v1546_v38 = vmul.f32 %v6078_v30, %v1544_v34 }
 0xf50   :  { %1548 = vrot.lane.b32.xlu1 %v1546_v38, %s6365_s23 }
 0xf52   :  { %v1439_v33 = vpop.permute.xlu0 %1438 }
 0xf53   :  { %v1441_v42 = vmul.f32 %v6080_v40, %v1439_v33 }
 0xf55   :  { %1443 = vrot.lane.b32.xlu0 %v1441_v42, %s6365_s23 }
 0xfc2   :  { %v1549_v45 = vpop.permute.xlu1 %1548 }
 0xfc3   :  { %v6879_v47 = vadd.f32 %v1549_v45, %v1541_v44 }
 0xfc5   :  { %6081 = vtanh.f32 %v6879_v47 }
 0xfc7   :  { %v1444_v27 = vpop.permute.xlu0 %1443 }
 0xfc8   :  { %v6883_v49 = vadd.f32 %v1444_v27, %v1436_v48 }
 0xfca   :  { %6083 = vtanh.f32 %v6883_v49 }
 0xfcf   :  { %v6082_v50 = vpop.eup %6081 }
 0xfd0   :  { %1554 = vrot.lane.b32.xlu1 %v6082_v50, %s6364_s4 }
 0xfd4   :  { %v6084_v52 = vpop.eup %6083 }
 0xfd5   :  { %1449 = vrot.lane.b32.xlu0 %v6084_v52, %s6364_s4 }
0x1042   :  { %v1555_v54 = vpop.permute.xlu1 %1554 }
0x1043   :  { %v1557_v53 = vmul.f32 %v6078_v30, %v1555_v54 }
0x1045   :  { %1559 = vrot.lane.b32.xlu0 %v1557_v53, %s6365_s23 }
0x1047   :  { %v1450_v29 = vpop.permute.xlu0 %1449 }
0x1048   :  { %v6889_v56 = vmul.f32 %v6080_v40, %v1450_v29 }
0x104a   :  { %1562 = vrot.lane.b32.xlu1 %v6889_v56, %s6364_s4 }
0x10b7   :  { %v1560_v55 = vpop.permute.xlu0 %1559 }
0x10b8   :  { %5220 = vmatmul.mubr.msk.f32.vlgmr.msra.gmra.mrb[20].mxu0 %vm99_vm0, %v1560_v55 }
0x10b9   :  { %5747 = vmatpush3.bf16.msra.mxu0 %v6600_v62  ;;  %5238 = vmatprep.mubr.msk.f32.mxu0 %vm6362_vm1, %v6363_v21 }
0x10ba   :  { %5748 = vmatprep.subr.bf16.mxu0 %v6361_v11 }
0x10bc   :  { %v1563_v57 = vpop.permute.xlu1 %1562 }
0x10bd   :  { %5750 = vmatpush3.bf16.msra.mxu0 %v6619_v4  ;;  %v1565_v59 = vsel %vm99_vm0, %v1560_v55, %v1563_v57 }
0x10be   :  { %5751 = vmatprep.subr.bf16.mxu0 %v6361_v11  ;;  %5209 = vmatmul.mubr.msk.f32.vlgmr.msra.gmra.mrb[18].mxu1 %vm516_vm2, %v1565_v59 }
0x10bf   :  { %5759 = vmatpush3.bf16.msra.mxu1 %v6504_v10  ;;  %5249 = vmatprep.mubr.msk.f32.mxu1 %vm6362_vm1, %v6363_v21 }
0x10c0   :  { %5760 = vmatprep.subr.bf16.mxu1 %v6361_v11 }
0x10c1   :  { %5753 = vmatpush3.bf16.msra.mxu0 %v6637_v9 }
0x10c2   :  { %5754 = vmatprep.subr.bf16.mxu0 %v6361_v11 }
0x10c3   :  { %5762 = vmatpush3.bf16.msra.mxu1 %v6522_v16 }
0x10c4   :  { %5763 = vmatprep.subr.bf16.mxu1 %v6361_v11 }
0x10c5   :  { %5756 = vmatpush3.bf16.msra.mxu0 %v6655_v17 }
0x10c6   :  { %5775 = vmatprep.subr.bf16.mxu0 %v6361_v11 }
0x118b   :  { %v1739_v58 = vpop.f32.mrb[20].mxu0 }
0x118c   :  { %v1743_v10 = vadd.f32 %v1739_v58, %v6568_v37  ;;  %v5221_v24 = vpop.f32.mrb[21].mxu0 }
0x118e   :  { %6085 = vtanh.f32 %v1743_v10  ;;  %v4601_v2 = vmul.f32 -1.442695, %v1743_v10 }
0x1191   :  { %v1635_v60 = vpop.f32.mrb[18].mxu1 }
0x1192   :  { %v1636_v63 = vadd.f32 %v6711_v46, %v1635_v60  ;;  %v5210_v1 = vpop.f32.mrb[19].mxu1 }
0x1194   :  { %6087 = vtanh.f32 %v1636_v63  ;;  %v4599_v3 = vmul.f32 -1.442695, %v1636_v63 }
0x1195   :  { %6089 = vpow2.f32 %v4601_v2 }
0x1196   :  { %6091 = vpow2.f32 %v4599_v3 }
0x1198   :  { %v6086_v0 = vpop.eup %6085 }
0x1199   :  { %1753 = vrot.lane.b32.xlu1 %v6086_v0, %s6364_s4 }
0x119e   :  { %v6088_v16 = vpop.eup %6087 }
0x119f   :  { %1648 = vrot.lane.b32.xlu0 %v6088_v16, %s6364_s4  ;;  %v6090_v6 = vpop.eup %6089 }
0x11a0   :  { %v1747_v7 = vadd.f32 1.0, %v6090_v6  ;;  %v6092_v37 = vpop.eup %6091 }
0x11a1   :  { %v1642_v8 = vadd.f32 1.0, %v6092_v37 }
0x11a2   :  { %6093 = vrcp.f32 %v1747_v7 }
0x11a3   :  { %6095 = vrcp.f32 %v1642_v8 }
0x11ac   :  { %v6094_v12 = vpop.eup %6093 }
0x11ad   :  { %v6096_v18 = vpop.eup %6095  ;;  %v1751_v31 = vmul.f32 %v6094_v12, %v6879_v47 }
0x11ae   :  { %v1646_v34 = vmul.f32 %v6096_v18, %v6883_v49 }
0x120b   :  { %v1754_v13 = vpop.permute.xlu1 %1753 }
0x120c   :  { %v1756_v15 = vmul.f32 %v6094_v12, %v1754_v13  ;;  %v2090_v13 = vld [vmem:[#allocation6 + $0x8] sm:$0xff] }
0x120e   :  { %1758 = vrot.lane.b32.xlu1 %v1756_v15, %s6365_s23  ;;  %v2091_v15 = vld [vmem:[#allocation6 + $0x10] sm:$0xff] }
0x1211   :  { %v1649_v19 = vpop.permute.xlu0 %1648 }
0x1212   :  { %v1651_v51 = vmul.f32 %v6096_v18, %v1649_v19  ;;  %v2092_v19 = vld [vmem:[#allocation6 + $0x18] sm:$0xff] }
0x1214   :  { %1653 = vrot.lane.b32.xlu0 %v1651_v51, %s6365_s23 }
0x1280   :  { %v1759_v26 = vpop.permute.xlu1 %1758 }
0x1281   :  { %v1761_v30 = vadd.f32 %v1759_v26, %v1751_v31  ;;  %v6958_v31 = vpack.c.bf16 %v2092_v19, %v2091_v15  ;;  %v2098_v15 = vld [vmem:[%s7635_s10 + $0x28] sm:$0xff]  ;;  %v2099_v19 = vld [vmem:[%s7635_s10 + $0x30] sm:$0xff] }
0x1283   :  { %6097 = vtanh.f32 %v1761_v30 }
0x1286   :  { %v1654_v38 = vpop.permute.xlu0 %1653 }
0x1287   :  { %v1656_v40 = vadd.f32 %v1654_v38, %v1646_v34 }
0x1289   :  { %6099 = vtanh.f32 %v1656_v40 }
0x128d   :  { %v6098_v33 = vpop.eup %6097 }
0x128e   :  { %1764 = vrot.lane.b32.xlu1 %v6098_v33, %s6364_s4 }
0x1293   :  { %v6100_v42 = vpop.eup %6099 }
0x1294   :  { %1659 = vrot.lane.b32.xlu0 %v6100_v42, %s6364_s4 }
0x1300   :  { %v1765_v44 = vpop.permute.xlu1 %1764 }
0x1301   :  { %v1767_v45 = vmul.f32 %v6094_v12, %v1765_v44  ;;  %v2089_v12 = vld [vmem:[#allocation6] sm:$0xff] }
0x1303   :  { %1769 = vrot.lane.b32.xlu0 %v1767_v45, %s6365_s23  ;;  %v347_v45 = vadd.f32 %v6664_v20, %v6669_v25 }
0x1306   :  { %v1660_v48 = vpop.permute.xlu0 %1659 }
0x1307   :  { %v6923_v47 = vmul.f32 %v6096_v18, %v1660_v48  ;;  %v6954_v18 = vpack.c.bf16 %v2090_v13, %v2089_v12  ;;  %v2097_v13 = vld [vmem:[%s7635_s10 + $0x20] sm:$0xff] }
0x1309   :  { %1772 = vrot.lane.b32.xlu1 %v6923_v47, %s6364_s4 }
0x1375   :  { %v1770_v27 = vpop.permute.xlu0 %1769 }
0x1376   :  { %5250 = vmatmul.mubr.msk.f32.vlgmr.msra.gmra.mrb[20].mxu1 %vm99_vm0, %v1770_v27 }
0x1377   :  { %5765 = vmatpush3.bf16.msra.mxu1 %v6600_v62  ;;  %5268 = vmatprep.mubr.msk.f32.mxu1 %vm6362_vm1, %v6363_v21 }
0x1378   :  { %5766 = vmatprep.subr.bf16.mxu1 %v6361_v11 }
0x137b   :  { %5768 = vmatpush3.bf16.msra.mxu1 %v6619_v4  ;;  %v1773_v49 = vpop.permute.xlu1 %1772 }
0x137c   :  { %5769 = vmatprep.subr.bf16.mxu1 %v6361_v11  ;;  %v1775_v50 = vsel %vm99_vm0, %v1770_v27, %v1773_v49 }
0x137d   :  { %5239 = vmatmul.mubr.msk.f32.vlgmr.msra.gmra.mrb[22].mxu0 %vm516_vm2, %v1775_v50 }
0x137e   :  { %5279 = vmatprep.mubr.msk.f32.mxu0 %vm6362_vm1, %v6363_v21  ;;  %5777 = vmatpush3.bf16.msra.mxu0 %v6954_v18 }
0x137f   :  { %5771 = vmatpush3.bf16.msra.mxu1 %v6637_v9  ;;  %5778 = vmatprep.subr.bf16.mxu0 %v6361_v11 }
0x1380   :  { %5772 = vmatprep.subr.bf16.mxu1 %v6361_v11 }
0x1382   :  { %5780 = vmatpush3.bf16.msra.mxu0 %v6958_v31 }
0x1383   :  { %5774 = vmatpush3.bf16.msra.mxu1 %v6655_v17  ;;  %5781 = vmatprep.subr.bf16.mxu0 %v6361_v11 }
0x1384   :  { %5793 = vmatprep.subr.bf16.mxu1 %v6361_v11 }
0x1449   :  { %v1949_v62 = vpop.f32.mrb[20].mxu1 }
0x144a   :  { %v1953_v4 = vadd.f32 %v1949_v62, %v6566_v35  ;;  %v5251_v52 = vpop.f32.mrb[21].mxu1 }
0x144c   :  { %6101 = vtanh.f32 %v1953_v4  ;;  %v4605_v57 = vmul.f32 -1.442695, %v1953_v4 }
0x1450   :  { %v1845_v54 = vpop.f32.mrb[22].mxu0 }
0x1451   :  { %v1846_v53 = vadd.f32 %v6711_v46, %v1845_v54  ;;  %v5240_v29 = vpop.f32.mrb[23].mxu0 }
0x1453   :  { %6103 = vtanh.f32 %v1846_v53  ;;  %v4603_v17 = vmul.f32 -1.442695, %v1846_v53 }
0x1454   :  { %6105 = vpow2.f32 %v4605_v57 }
0x1455   :  { %6107 = vpow2.f32 %v4603_v17 }
0x1456   :  { %v6102_v55 = vpop.eup %6101 }
0x1457   :  { %1963 = vrot.lane.b32.xlu1 %v6102_v55, %s6364_s4 }
0x145d   :  { %v6104_v9 = vpop.eup %6103 }
0x145e   :  { %1858 = vrot.lane.b32.xlu0 %v6104_v9, %s6364_s4  ;;  %v6106_v59 = vpop.eup %6105 }
0x145f   :  { %v1957_v58 = vadd.f32 1.0, %v6106_v59  ;;  %v6108_v35 = vpop.eup %6107 }
0x1460   :  { %v1852_v10 = vadd.f32 1.0, %v6108_v35 }
0x1461   :  { %6109 = vrcp.f32 %v1957_v58 }
0x1462   :  { %6111 = vrcp.f32 %v1852_v10 }
0x146b   :  { %v6110_v24 = vpop.eup %6109 }
0x146c   :  { %v6112_v1 = vpop.eup %6111  ;;  %v1961_v2 = vmul.f32 %v6110_v24, %v1761_v30 }
0x146d   :  { %v1856_v7 = vmul.f32 %v6112_v1, %v1656_v40 }
0x14c9   :  { %v1964_v60 = vpop.permute.xlu1 %1963 }
0x14ca   :  { %v1966_v63 = vmul.f32 %v6110_v24, %v1964_v60 }
0x14cc   :  { %1968 = vrot.lane.b32.xlu1 %v1966_v63, %s6365_s23 }
0x14d0   :  { %v1859_v0 = vpop.permute.xlu0 %1858 }
0x14d1   :  { %v1861_v16 = vmul.f32 %v6112_v1, %v1859_v0 }
0x14d3   :  { %1863 = vrot.lane.b32.xlu0 %v1861_v16, %s6365_s23  ;;  %v2093_v16 = vld [vmem:[%s7635_s10] sm:$0xff] }
0x153e   :  { %v1969_v3 = vpop.permute.xlu1 %1968 }
0x153f   :  { %v6948_v6 = vadd.f32 %v1969_v3, %v1961_v2  ;;  %v2094_v2 = vld [vmem:[%s7635_s10 + $0x8] sm:$0xff]  ;;  %v2095_v3 = vld [vmem:[%s7635_s10 + $0x10] sm:$0xff] }
0x1541   :  { %6113 = vtanh.f32 %v6948_v6 }
0x1545   :  { %v1864_v37 = vpop.permute.xlu0 %1863 }
0x1546   :  { %v6951_v8 = vadd.f32 %v1864_v37, %v1856_v7  ;;  %v7004_v7 = vpack.c.bf16 %v2094_v2, %v2093_v16  ;;  %v2096_v37 = vld [vmem:[%s7635_s10 + $0x18] sm:$0xff] }
0x1548   :  { %6115 = vtanh.f32 %v6951_v8 }
0x154b   :  { %v6114_v51 = vpop.eup %6113 }
0x154c   :  { %1974 = vrot.lane.b32.xlu1 %v6114_v51, %s6364_s4  ;;  %v7026_v51 = vpack.c.bf16 %v2098_v15, %v2097_v13 }
0x1552   :  { %v6116_v26 = vpop.eup %6115 }
0x1553   :  { %1869 = vrot.lane.b32.xlu0 %v6116_v26, %s6364_s4  ;;  %v2100_v26 = vld [vmem:[%s7635_s10 + $0x38] sm:$0xff] }
0x15be   :  { %v1975_v30 = vpop.permute.xlu1 %1974 }
0x15bf   :  { %v1977_v34 = vmul.f32 %v6110_v24, %v1975_v30  ;;  %v7032_v30 = vpack.c.bf16 %v2100_v26, %v2099_v19 }
0x15c1   :  { %1979 = vrot.lane.b32.xlu0 %v1977_v34, %s6365_s23 }
0x15c5   :  { %v1870_v38 = vpop.permute.xlu0 %1869 }
0x15c6   :  { %v6965_v40 = vmul.f32 %v6112_v1, %v1870_v38 }
0x15c8   :  { %1982 = vrot.lane.b32.xlu1 %v6965_v40, %s6364_s4 }
0x1633   :  { %v1980_v33 = vpop.permute.xlu0 %1979 }
0x1634   :  { %5280 = vmatmul.mubr.msk.f32.vlgmr.msra.gmra.mrb[24].mxu0 %vm99_vm0, %v1980_v33 }
0x1635   :  { %5298 = vmatprep.mubr.msk.f32.mxu0 %vm6362_vm1, %v6363_v21  ;;  %5783 = vmatpush3.bf16.msra.mxu0 %v7004_v7 }
0x1636   :  { %5784 = vmatprep.subr.bf16.mxu0 %v6361_v11 }
0x163a   :  { %v1983_v42 = vpop.permute.xlu1 %1982 }
0x163b   :  { %v1985_v44 = vsel %vm99_vm0, %v1980_v33, %v1983_v42 }
0x163c   :  { %5269 = vmatmul.mubr.msk.f32.vlgmr.msra.gmra.mrb[22].mxu1 %vm516_vm2, %v1985_v44 }
0x163d   :  { %5795 = vmatpush3.bf16.msra.mxu1 %v6954_v18  ;;  %5309 = vmatprep.mubr.msk.f32.mxu1 %vm6362_vm1, %v6363_v21 }
0x163e   :  { %5796 = vmatprep.subr.bf16.mxu1 %v6361_v11 }
0x1641   :  { %5798 = vmatpush3.bf16.msra.mxu1 %v6958_v31 }
0x1642   :  { %5799 = vmatprep.subr.bf16.mxu1 %v6361_v11 }
0x1707   :  { %v2171_v48 = vpop.f32.mrb[24].mxu0 }
0x1708   :  { %v2175_v27 = vadd.f32 %v2171_v48, %v347_v45  ;;  %v5281_v49 = vpop.f32.mrb[25].mxu0 }
0x170a   :  { %6117 = vtanh.f32 %v2175_v27  ;;  %v4609_v53 = vmul.f32 -1.442695, %v2175_v27 }
0x170f   :  { %v2055_v50 = vpop.f32.mrb[22].mxu1 }
0x1710   :  { %v2056_v62 = vadd.f32 %v6711_v46, %v2055_v50  ;;  %v5270_v4 = vpop.f32.mrb[23].mxu1 }
0x1712   :  { %6119 = vtanh.f32 %v2056_v62  ;;  %v4607_v29 = vmul.f32 -1.442695, %v2056_v62  ;;  %v7065_v62 = vld [vmem:[%s7636_s11] ss:$0 sm:$0xff] }
0x1713   :  { %6121 = vpow2.f32 %v4609_v53 }
0x1714   :  { %v6118_v52 = vpop.eup %6117  ;;  %6123 = vpow2.f32 %v4607_v29 }
0x1715   :  { %2185 = vrot.lane.b32.xlu1 %v6118_v52, %s6364_s4 }
0x171c   :  { %v6120_v54 = vpop.eup %6119 }
0x171d   :  { %2068 = vrot.lane.b32.xlu0 %v6120_v54, %s6364_s4  ;;  %v6122_v20 = vpop.eup %6121 }
0x171e   :  { %v2179_v25 = vadd.f32 1.0, %v6122_v20  ;;  %v6124_v55 = vpop.eup %6123 }
0x171f   :  { %v2062_v9 = vadd.f32 1.0, %v6124_v55 }
0x1720   :  { %6125 = vrcp.f32 %v2179_v25 }
0x1721   :  { %6127 = vrcp.f32 %v2062_v9 }
0x172a   :  { %v6126_v57 = vpop.eup %6125 }
0x172b   :  { %v6128_v59 = vpop.eup %6127  ;;  %v2183_v10 = vmul.f32 %v6126_v57, %v6948_v6 }
0x172c   :  { %v2066_v63 = vmul.f32 %v6128_v59, %v6951_v8  ;;  %v7011_v8 = vpack.c.bf16 %v2096_v37, %v2095_v3 }
0x172e   :  { %5786 = vmatpush3.bf16.msra.mxu0 %v7011_v8 }
0x172f   :  { %5787 = vmatprep.subr.bf16.mxu0 %v6361_v11 }
0x1732   :  { %5789 = vmatpush3.bf16.msra.mxu0 %v7026_v51 }
0x1733   :  { %5790 = vmatprep.subr.bf16.mxu0 %v6361_v11 }
0x1736   :  { %5792 = vmatpush3.bf16.msra.mxu0 %v7032_v30 }
0x1737   :  { %5811 = vmatprep.subr.bf16.mxu0 %v6361_v11 }
0x1787   :  { %v2186_v46 = vpop.permute.xlu1 %2185 }
0x1788   :  { %v2188_v17 = vmul.f32 %v6126_v57, %v2186_v46 }
0x178a   :  { %2190 = vrot.lane.b32.xlu1 %v2188_v17, %s6365_s23 }
0x178f   :  { %v2069_v58 = vpop.permute.xlu0 %2068 }
0x1790   :  { %v2071_v35 = vmul.f32 %v6128_v59, %v2069_v58 }
0x1792   :  { %2073 = vrot.lane.b32.xlu0 %v2071_v35, %s6365_s23 }
0x17fc   :  { %v2191_v24 = vpop.permute.xlu1 %2190 }
0x17fd   :  { %v6988_v60 = vadd.f32 %v2191_v24, %v2183_v10 }
0x17ff   :  { %6129 = vtanh.f32 %v6988_v60 }
0x1804   :  { %v2074_v1 = vpop.permute.xlu0 %2073 }
0x1805   :  { %v6992_v0 = vadd.f32 %v2074_v1, %v2066_v63 }
0x1807   :  { %6131 = vtanh.f32 %v6992_v0 }
0x1809   :  { %v6130_v6 = vpop.eup %6129 }
0x180a   :  { %2196 = vrot.lane.b32.xlu1 %v6130_v6, %s6364_s4 }
0x1811   :  { %v6132_v12 = vpop.eup %6131 }
0x1812   :  { %2079 = vrot.lane.b32.xlu0 %v6132_v12, %s6364_s4 }
0x187c   :  { %v2197_v34 = vpop.permute.xlu1 %2196 }
0x187d   :  { %v2199_v38 = vmul.f32 %v6126_v57, %v2197_v34 }
0x187f   :  { %2201 = vrot.lane.b32.xlu0 %v2199_v38, %s6365_s23 }
0x1884   :  { %v2080_v33 = vpop.permute.xlu0 %2079 }
0x1885   :  { %v7038_v42 = vmul.f32 %v6128_v59, %v2080_v33 }
0x1887   :  { %2204 = vrot.lane.b32.xlu1 %v7038_v42, %s6364_s4 }
0x18f1   :  { %v2202_v44 = vpop.permute.xlu0 %2201 }
0x18f2   :  { %5310 = vmatmul.mubr.msk.f32.vlgmr.msra.gmra.mrb[24].mxu1 %vm99_vm0, %v2202_v44 }
0x18f3   :  { %5801 = vmatpush3.bf16.msra.mxu1 %v7004_v7  ;;  %5328 = vmatprep.mubr.msk.f32.mxu1 %vm6362_vm1, %v6363_v21 }
0x18f4   :  { %5802 = vmatprep.subr.bf16.mxu1 %v6361_v11 }
0x18f7   :  { %5804 = vmatpush3.bf16.msra.mxu1 %v7011_v8 }
0x18f8   :  { %5805 = vmatprep.subr.bf16.mxu1 %v6361_v11 }
0x18f9   :  { %v2205_v45 = vpop.permute.xlu1 %2204 }
0x18fa   :  { %v2207_v48 = vsel %vm99_vm0, %v2202_v44, %v2205_v45 }
0x18fb   :  { %5807 = vmatpush3.bf16.msra.mxu1 %v7026_v51  ;;  %5299 = vmatmul.mubr.msk.f32.vlgmr.msra.gmra.mrb[26].mxu0 %vm516_vm2, %v2207_v48 }
0x18fc   :  { %5808 = vmatprep.subr.bf16.mxu1 %v6361_v11  ;;  %5813 = vmatpush3.bf16.msra.mxu0 %v6954_v18 }
0x18fd   :  { %5339 = vmatprep.mubr.msk.f32.mxu0 %vm6362_vm1, %v6363_v21  ;;  %5814 = vmatprep.subr.bf16.mxu0 %v6361_v11 }
0x18ff   :  { %5810 = vmatpush3.bf16.msra.mxu1 %v7032_v30 }
0x1900   :  { %5829 = vmatprep.subr.bf16.mxu1 %v6361_v11  ;;  %5816 = vmatpush3.bf16.msra.mxu0 %v6958_v31 }
0x1901   :  { %5817 = vmatprep.subr.bf16.mxu0 %v6361_v11 }
0x19c5   :  { %v2386_v27 = vpop.f32.mrb[24].mxu1 }
0x19c6   :  { %v2390_v49 = vadd.f32 %v2386_v27, %v6667_v23  ;;  %v5311_v50 = vpop.f32.mrb[25].mxu1 }
0x19c8   :  { %6133 = vtanh.f32 %v2390_v49  ;;  %v4614_v20 = vmul.f32 -1.442695, %v2390_v49 }
0x19ce   :  { %v2283_v4 = vpop.f32.mrb[26].mxu0 }
0x19cf   :  { %v2284_v52 = vadd.f32 %v7065_v62, %v2283_v4  ;;  %v5300_v54 = vpop.f32.mrb[27].mxu0 }
0x19d1   :  { %6135 = vtanh.f32 %v2284_v52  ;;  %v4612_v23 = vmul.f32 -1.442695, %v2284_v52 }
0x19d2   :  { %v6134_v53 = vpop.eup %6133  ;;  %6137 = vpow2.f32 %v4614_v20 }
0x19d3   :  { %2400 = vrot.lane.b32.xlu1 %v6134_v53, %s6364_s4  ;;  %6139 = vpow2.f32 %v4612_v23 }
0x19db   :  { %v6136_v29 = vpop.eup %6135 }
0x19dc   :  { %2296 = vrot.lane.b32.xlu0 %v6136_v29, %s6364_s4  ;;  %v6138_v25 = vpop.eup %6137 }
0x19dd   :  { %v2394_v55 = vadd.f32 1.0, %v6138_v25  ;;  %v6140_v9 = vpop.eup %6139 }
0x19de   :  { %v2290_v57 = vadd.f32 1.0, %v6140_v9 }
0x19df   :  { %6141 = vrcp.f32 %v2394_v55 }
0x19e0   :  { %6143 = vrcp.f32 %v2290_v57 }
0x19e9   :  { %v6142_v46 = vpop.eup %6141 }
0x19ea   :  { %v6144_v58 = vpop.eup %6143  ;;  %v2398_v24 = vmul.f32 %v6142_v46, %v6988_v60 }
0x19eb   :  { %v2294_v16 = vmul.f32 %v6144_v58, %v6992_v0 }
0x1a45   :  { %v2401_v17 = vpop.permute.xlu1 %2400 }
0x1a46   :  { %v2403_v59 = vmul.f32 %v6142_v46, %v2401_v17 }
0x1a48   :  { %2405 = vrot.lane.b32.xlu1 %v2403_v59, %s6365_s23 }
0x1a4e   :  { %v2297_v35 = vpop.permute.xlu0 %2296 }
0x1a4f   :  { %v2299_v10 = vmul.f32 %v6144_v58, %v2297_v35 }
0x1a51   :  { %2301 = vrot.lane.b32.xlu0 %v2299_v10, %s6365_s23 }
0x1aba   :  { %v2406_v63 = vpop.permute.xlu1 %2405 }
0x1abb   :  { %v7073_v1 = vadd.f32 %v2406_v63, %v2398_v24 }
0x1abd   :  { %6145 = vtanh.f32 %v7073_v1 }
0x1ac3   :  { %v2302_v2 = vpop.permute.xlu0 %2301 }
0x1ac4   :  { %v7077_v3 = vadd.f32 %v2302_v2, %v2294_v16 }
0x1ac6   :  { %6147 = vtanh.f32 %v7077_v3 }
0x1ac7   :  { %v6146_v6 = vpop.eup %6145 }
0x1ac8   :  { %2411 = vrot.lane.b32.xlu1 %v6146_v6, %s6364_s4 }
0x1ad0   :  { %v6148_v37 = vpop.eup %6147 }
0x1ad1   :  { %2307 = vrot.lane.b32.xlu0 %v6148_v37, %s6364_s4 }
0x1b3a   :  { %v2412_v12 = vpop.permute.xlu1 %2411 }
0x1b3b   :  { %v2414_v60 = vmul.f32 %v6142_v46, %v2412_v12 }
0x1b3d   :  { %2416 = vrot.lane.b32.xlu0 %v2414_v60, %s6365_s23 }
0x1b43   :  { %v2308_v13 = vpop.permute.xlu0 %2307 }
0x1b44   :  { %v7083_v15 = vmul.f32 %v6144_v58, %v2308_v13 }
0x1b46   :  { %2419 = vrot.lane.b32.xlu1 %v7083_v15, %s6364_s4 }
0x1baf   :  { %v2417_v0 = vpop.permute.xlu0 %2416 }
0x1bb0   :  { %5340 = vmatmul.mubr.msk.f32.vlgmr.msra.gmra.mrb[28].mxu0 %vm99_vm0, %v2417_v0 }
0x1bb1   :  { %5819 = vmatpush3.bf16.msra.mxu0 %v7004_v7  ;;  %5358 = vmatprep.mubr.msk.f32.mxu0 %vm6362_vm1, %v6363_v21 }
0x1bb2   :  { %5820 = vmatprep.subr.bf16.mxu0 %v6361_v11 }
0x1bb5   :  { %5822 = vmatpush3.bf16.msra.mxu0 %v7011_v8 }
0x1bb6   :  { %5823 = vmatprep.subr.bf16.mxu0 %v6361_v11 }
0x1bb8   :  { %v2420_v19 = vpop.permute.xlu1 %2419 }
0x1bb9   :  { %5825 = vmatpush3.bf16.msra.mxu0 %v7026_v51  ;;  %v2422_v26 = vsel %vm99_vm0, %v2417_v0, %v2420_v19 }
0x1bba   :  { %5826 = vmatprep.subr.bf16.mxu0 %v6361_v11  ;;  %5329 = vmatmul.mubr.msk.f32.vlgmr.msra.gmra.mrb[26].mxu1 %vm516_vm2, %v2422_v26 }
0x1bbb   :  { %5831 = vmatpush3.bf16.msra.mxu1 %v6954_v18  ;;  %5369 = vmatprep.mubr.msk.f32.mxu1 %vm6362_vm1, %v6363_v21 }
0x1bbc   :  { %5832 = vmatprep.subr.bf16.mxu1 %v6361_v11 }
0x1bbd   :  { %5828 = vmatpush3.bf16.msra.mxu0 %v7032_v30 }
0x1bbe   :  { %5847 = vmatprep.subr.bf16.mxu0 %v6361_v11 }
0x1bbf   :  { %5834 = vmatpush3.bf16.msra.mxu1 %v6958_v31 }
0x1bc0   :  { %5835 = vmatprep.subr.bf16.mxu1 %v6361_v11 }
0x1c83   :  { %v2596_v34 = vpop.f32.mrb[28].mxu0 }
0x1c84   :  { %v2600_v38 = vadd.f32 %v2596_v34, %v6675_v32  ;;  %v5341_v33 = vpop.f32.mrb[29].mxu0 }
0x1c86   :  { %6149 = vtanh.f32 %v2600_v38  ;;  %v4618_v50 = vmul.f32 -1.442695, %v2600_v38 }
0x1c8d   :  { %v2492_v44 = vpop.f32.mrb[26].mxu1 }
0x1c8e   :  { %v2493_v45 = vadd.f32 %v7065_v62, %v2492_v44  ;;  %v5330_v48 = vpop.f32.mrb[27].mxu1 }
0x1c90   :  { %v6150_v27 = vpop.eup %6149  ;;  %6151 = vtanh.f32 %v2493_v45  ;;  %v4616_v4 = vmul.f32 -1.442695, %v2493_v45 }
0x1c91   :  { %2610 = vrot.lane.b32.xlu1 %v6150_v27, %s6364_s4  ;;  %6153 = vpow2.f32 %v4618_v50 }
0x1c92   :  { %6155 = vpow2.f32 %v4616_v4 }
0x1c9a   :  { %v6152_v49 = vpop.eup %6151 }
0x1c9b   :  { %2505 = vrot.lane.b32.xlu0 %v6152_v49, %s6364_s4  ;;  %v6154_v52 = vpop.eup %6153 }
0x1c9c   :  { %v2604_v54 = vadd.f32 1.0, %v6154_v52  ;;  %v6156_v32 = vpop.eup %6155 }
0x1c9d   :  { %v2499_v53 = vadd.f32 1.0, %v6156_v32 }
0x1c9e   :  { %6157 = vrcp.f32 %v2604_v54 }
0x1c9f   :  { %6159 = vrcp.f32 %v2499_v53 }
0x1ca8   :  { %v6158_v29 = vpop.eup %6157 }
0x1ca9   :  { %v6160_v25 = vpop.eup %6159  ;;  %v2608_v57 = vmul.f32 %v6158_v29, %v7073_v1 }
0x1caa   :  { %v2503_v59 = vmul.f32 %v6160_v25, %v7077_v3 }
0x1d03   :  { %v2611_v20 = vpop.permute.xlu1 %2610 }
0x1d04   :  { %v2613_v23 = vmul.f32 %v6158_v29, %v2611_v20 }
0x1d06   :  { %2615 = vrot.lane.b32.xlu1 %v2613_v23, %s6365_s23 }
0x1d0d   :  { %v2506_v55 = vpop.permute.xlu0 %2505 }
0x1d0e   :  { %v2508_v9 = vmul.f32 %v6160_v25, %v2506_v55 }
0x1d10   :  { %2510 = vrot.lane.b32.xlu0 %v2508_v9, %s6365_s23 }
0x1d78   :  { %v2616_v46 = vpop.permute.xlu1 %2615 }
0x1d79   :  { %v7113_v17 = vadd.f32 %v2616_v46, %v2608_v57 }
0x1d7b   :  { %6161 = vtanh.f32 %v7113_v17 }
0x1d82   :  { %v2511_v58 = vpop.permute.xlu0 %2510 }
0x1d83   :  { %v7117_v35 = vadd.f32 %v2511_v58, %v2503_v59 }
0x1d85   :  { %v6162_v10 = vpop.eup %6161  ;;  %6163 = vtanh.f32 %v7117_v35 }
0x1d86   :  { %2621 = vrot.lane.b32.xlu1 %v6162_v10, %s6364_s4 }
0x1d8f   :  { %v6164_v24 = vpop.eup %6163 }
0x1d90   :  { %2516 = vrot.lane.b32.xlu0 %v6164_v24, %s6364_s4 }
0x1df8   :  { %v2622_v63 = vpop.permute.xlu1 %2621 }
0x1df9   :  { %v2624_v1 = vmul.f32 %v6158_v29, %v2622_v63 }
0x1dfb   :  { %2626 = vrot.lane.b32.xlu0 %v2624_v1, %s6365_s23 }
0x1e02   :  { %v2517_v16 = vpop.permute.xlu0 %2516 }
0x1e03   :  { %v7123_v2 = vmul.f32 %v6160_v25, %v2517_v16 }
0x1e05   :  { %2629 = vrot.lane.b32.xlu1 %v7123_v2, %s6364_s4 }
0x1e6d   :  { %v2627_v3 = vpop.permute.xlu0 %2626 }
0x1e6e   :  { %5370 = vmatmul.mubr.msk.f32.vlgmr.msra.gmra.mrb[28].mxu1 %vm99_vm0, %v2627_v3 }
0x1e6f   :  { %5837 = vmatpush3.bf16.msra.mxu1 %v7004_v7  ;;  %5388 = vmatprep.mubr.msk.f32.mxu1 %vm6362_vm1, %v6363_v21 }
0x1e70   :  { %5838 = vmatprep.subr.bf16.mxu1 %v6361_v11 }
0x1e73   :  { %5840 = vmatpush3.bf16.msra.mxu1 %v7011_v8 }
0x1e74   :  { %5841 = vmatprep.subr.bf16.mxu1 %v6361_v11 }
0x1e77   :  { %5843 = vmatpush3.bf16.msra.mxu1 %v7026_v51  ;;  %v2630_v6 = vpop.permute.xlu1 %2629 }
0x1e78   :  { %5844 = vmatprep.subr.bf16.mxu1 %v6361_v11  ;;  %v2632_v37 = vsel %vm99_vm0, %v2627_v3, %v2630_v6 }
0x1e79   :  { %5359 = vmatmul.mubr.msk.f32.vlgmr.msra.gmra.mrb[30].mxu0 %vm516_vm2, %v2632_v37 }
0x1e7a   :  { %5849 = vmatpush3.bf16.msra.mxu0 %v6954_v18  ;;  %5399 = vmatprep.mubr.msk.f32.mxu0 %vm6362_vm1, %v6363_v21 }
0x1e7b   :  { %5850 = vmatprep.subr.bf16.mxu0 %v6361_v11  ;;  %5846 = vmatpush3.bf16.msra.mxu1 %v7032_v30 }
0x1e7c   :  { %5865 = vmatprep.subr.bf16.mxu1 %v6361_v11 }
0x1e7e   :  { %5852 = vmatpush3.bf16.msra.mxu0 %v6958_v31 }
0x1e7f   :  { %5853 = vmatprep.subr.bf16.mxu0 %v6361_v11 }
0x1f41   :  { %v2806_v12 = vpop.f32.mrb[28].mxu1 }
0x1f42   :  { %v2810_v60 = vadd.f32 %v2806_v12, %v6672_v28  ;;  %v5371_v13 = vpop.f32.mrb[29].mxu1 }
0x1f44   :  { %6165 = vtanh.f32 %v2810_v60  ;;  %v4622_v33 = vmul.f32 -1.442695, %v2810_v60 }
0x1f4c   :  { %v2702_v0 = vpop.f32.mrb[30].mxu0 }
0x1f4d   :  { %v2703_v26 = vadd.f32 %v7065_v62, %v2702_v0  ;;  %v5360_v34 = vpop.f32.mrb[31].mxu0 }
0x1f4e   :  { %v6166_v19 = vpop.eup %6165 }
0x1f4f   :  { %2820 = vrot.lane.b32.xlu1 %v6166_v19, %s6364_s4  ;;  %6167 = vtanh.f32 %v2703_v26  ;;  %v4620_v44 = vmul.f32 -1.442695, %v2703_v26 }
0x1f50   :  { %6169 = vpow2.f32 %v4622_v33 }
0x1f51   :  { %6171 = vpow2.f32 %v4620_v44 }
0x1f59   :  { %v6168_v38 = vpop.eup %6167 }
0x1f5a   :  { %2715 = vrot.lane.b32.xlu0 %v6168_v38, %s6364_s4  ;;  %v6170_v45 = vpop.eup %6169 }
0x1f5b   :  { %v2814_v48 = vadd.f32 1.0, %v6170_v45  ;;  %v6172_v28 = vpop.eup %6171 }
0x1f5c   :  { %v2709_v27 = vadd.f32 1.0, %v6172_v28 }
0x1f5d   :  { %6173 = vrcp.f32 %v2814_v48 }
0x1f5e   :  { %6175 = vrcp.f32 %v2709_v27 }
0x1f67   :  { %v6174_v49 = vpop.eup %6173 }
0x1f68   :  { %v6176_v52 = vpop.eup %6175  ;;  %v2818_v53 = vmul.f32 %v6174_v49, %v7113_v17 }
0x1f69   :  { %v2713_v23 = vmul.f32 %v6176_v52, %v7117_v35 }
0x1fc1   :  { %v2821_v50 = vpop.permute.xlu1 %2820 }
0x1fc2   :  { %v2823_v4 = vmul.f32 %v6174_v49, %v2821_v50 }
0x1fc4   :  { %2825 = vrot.lane.b32.xlu1 %v2823_v4, %s6365_s23 }
0x1fcc   :  { %v2716_v54 = vpop.permute.xlu0 %2715 }
0x1fcd   :  { %v2718_v32 = vmul.f32 %v6176_v52, %v2716_v54 }
0x1fcf   :  { %2720 = vrot.lane.b32.xlu0 %v2718_v32, %s6365_s23 }
0x2036   :  { %v2826_v29 = vpop.permute.xlu1 %2825 }
0x2037   :  { %v7153_v20 = vadd.f32 %v2826_v29, %v2818_v53 }
0x2039   :  { %6177 = vtanh.f32 %v7153_v20 }
0x2041   :  { %v2721_v25 = vpop.permute.xlu0 %2720 }
0x2042   :  { %v7157_v9 = vadd.f32 %v2721_v25, %v2713_v23 }
0x2043   :  { %v6178_v55 = vpop.eup %6177 }
0x2044   :  { %2831 = vrot.lane.b32.xlu1 %v6178_v55, %s6364_s4  ;;  %6179 = vtanh.f32 %v7157_v9 }
0x204e   :  { %v6180_v57 = vpop.eup %6179 }
0x204f   :  { %2726 = vrot.lane.b32.xlu0 %v6180_v57, %s6364_s4 }
0x20b6   :  { %v2832_v46 = vpop.permute.xlu1 %2831 }
0x20b7   :  { %v2834_v17 = vmul.f32 %v6174_v49, %v2832_v46 }
0x20b9   :  { %2836 = vrot.lane.b32.xlu0 %v2834_v17, %s6365_s23 }
0x20c1   :  { %v2727_v59 = vpop.permute.xlu0 %2726 }
0x20c2   :  { %v7163_v58 = vmul.f32 %v6176_v52, %v2727_v59 }
0x20c4   :  { %2839 = vrot.lane.b32.xlu1 %v7163_v58, %s6364_s4 }
0x212b   :  { %v2837_v35 = vpop.permute.xlu0 %2836 }
0x212c   :  { %5400 = vmatmul.mubr.msk.f32.vlgmr.msra.gmra.mrb[32].mxu0 %vm99_vm0, %v2837_v35 }
0x212d   :  { %5855 = vmatpush3.bf16.msra.mxu0 %v7004_v7  ;;  %5418 = vmatprep.mubr.msk.f32.mxu0 %vm6362_vm1, %v6363_v21 }
0x212e   :  { %5856 = vmatprep.subr.bf16.mxu0 %v6361_v11 }
0x2131   :  { %5858 = vmatpush3.bf16.msra.mxu0 %v7011_v8 }
0x2132   :  { %5859 = vmatprep.subr.bf16.mxu0 %v6361_v11 }
0x2135   :  { %5861 = vmatpush3.bf16.msra.mxu0 %v7026_v51 }
0x2136   :  { %5862 = vmatprep.subr.bf16.mxu0 %v6361_v11  ;;  %v2840_v10 = vpop.permute.xlu1 %2839 }
0x2137   :  { %v2842_v24 = vsel %vm99_vm0, %v2837_v35, %v2840_v10 }
0x2138   :  { %5389 = vmatmul.mubr.msk.f32.vlgmr.msra.gmra.mrb[30].mxu1 %vm516_vm2, %v2842_v24 }
0x2139   :  { %5864 = vmatpush3.bf16.msra.mxu0 %v7032_v30  ;;  %5867 = vmatpush3.bf16.msra.mxu1 %v6954_v18 }
0x213a   :  { %5429 = vmatprep.mubr.msk.f32.mxu1 %vm6362_vm1, %v6363_v21  ;;  %5868 = vmatprep.subr.bf16.mxu1 %v6361_v11 }
0x213b   :  { %5883 = vmatprep.subr.bf16.mxu0 %v6361_v11 }
0x213d   :  { %5870 = vmatpush3.bf16.msra.mxu1 %v6958_v31 }
0x213e   :  { %5871 = vmatprep.subr.bf16.mxu1 %v6361_v11 }
0x21ff   :  { %v3016_v63 = vpop.f32.mrb[32].mxu0 }
0x2200   :  { %v3020_v1 = vadd.f32 %v3016_v63, %v6681_v39  ;;  %v5401_v16 = vpop.f32.mrb[33].mxu0 }
0x2202   :  { %6181 = vtanh.f32 %v3020_v1  ;;  %v4626_v13 = vmul.f32 -1.442695, %v3020_v1 }
0x220b   :  { %v2912_v6 = vpop.f32.mrb[30].mxu1 }
0x220c   :  { %v6182_v3 = vpop.eup %6181  ;;  %v2913_v37 = vadd.f32 %v7065_v62, %v2912_v6  ;;  %v5390_v12 = vpop.f32.mrb[31].mxu1 }
0x220d   :  { %3030 = vrot.lane.b32.xlu1 %v6182_v3, %s6364_s4 }
0x220e   :  { %6183 = vtanh.f32 %v2913_v37  ;;  %v4624_v0 = vmul.f32 -1.442695, %v2913_v37 }
0x220f   :  { %6185 = vpow2.f32 %v4626_v13 }
0x2210   :  { %6187 = vpow2.f32 %v4624_v0 }
0x2218   :  { %v6184_v60 = vpop.eup %6183 }
0x2219   :  { %2925 = vrot.lane.b32.xlu0 %v6184_v60, %s6364_s4  ;;  %v6186_v19 = vpop.eup %6185 }
0x221a   :  { %v3024_v26 = vadd.f32 1.0, %v6186_v19  ;;  %v6188_v39 = vpop.eup %6187 }
0x221b   :  { %v2919_v34 = vadd.f32 1.0, %v6188_v39 }
0x221c   :  { %6189 = vrcp.f32 %v3024_v26 }
0x221d   :  { %6191 = vrcp.f32 %v2919_v34 }
0x2226   :  { %v6190_v38 = vpop.eup %6189 }
0x2227   :  { %v6192_v45 = vpop.eup %6191  ;;  %v3028_v27 = vmul.f32 %v6190_v38, %v7153_v20 }
0x2228   :  { %v2923_v4 = vmul.f32 %v6192_v45, %v7157_v9 }
0x227f   :  { %v3031_v33 = vpop.permute.xlu1 %3030 }
0x2280   :  { %v3033_v44 = vmul.f32 %v6190_v38, %v3031_v33 }
0x2282   :  { %3035 = vrot.lane.b32.xlu1 %v3033_v44, %s6365_s23 }
0x228b   :  { %v2926_v48 = vpop.permute.xlu0 %2925 }
0x228c   :  { %v2928_v28 = vmul.f32 %v6192_v45, %v2926_v48 }
0x228e   :  { %2930 = vrot.lane.b32.xlu0 %v2928_v28, %s6365_s23 }
0x22f4   :  { %v3036_v49 = vpop.permute.xlu1 %3035 }
0x22f5   :  { %v7193_v50 = vadd.f32 %v3036_v49, %v3028_v27 }
0x22f7   :  { %6193 = vtanh.f32 %v7193_v50 }
0x2300   :  { %v2931_v54 = vpop.permute.xlu0 %2930 }
0x2301   :  { %v6194_v52 = vpop.eup %6193  ;;  %v7197_v32 = vadd.f32 %v2931_v54, %v2923_v4 }
0x2302   :  { %3041 = vrot.lane.b32.xlu1 %v6194_v52, %s6364_s4 }
0x2303   :  { %6195 = vtanh.f32 %v7197_v32 }
0x230d   :  { %v6196_v53 = vpop.eup %6195 }
0x230e   :  { %2936 = vrot.lane.b32.xlu0 %v6196_v53, %s6364_s4 }
0x2374   :  { %v3042_v29 = vpop.permute.xlu1 %3041 }
0x2375   :  { %v3044_v20 = vmul.f32 %v6190_v38, %v3042_v29 }
0x2377   :  { %3046 = vrot.lane.b32.xlu0 %v3044_v20, %s6365_s23 }
0x2380   :  { %v2937_v23 = vpop.permute.xlu0 %2936 }
0x2381   :  { %v7203_v25 = vmul.f32 %v6192_v45, %v2937_v23 }
0x2383   :  { %3049 = vrot.lane.b32.xlu1 %v7203_v25, %s6364_s4 }
0x23e9   :  { %v3047_v55 = vpop.permute.xlu0 %3046 }
0x23ea   :  { %5430 = vmatmul.mubr.msk.f32.vlgmr.msra.gmra.mrb[32].mxu1 %vm99_vm0, %v3047_v55 }
0x23eb   :  { %5873 = vmatpush3.bf16.msra.mxu1 %v7004_v7  ;;  %5448 = vmatprep.mubr.msk.f32.mxu1 %vm6362_vm1, %v6363_v21 }
0x23ec   :  { %5874 = vmatprep.subr.bf16.mxu1 %v6361_v11 }
0x23ef   :  { %5876 = vmatpush3.bf16.msra.mxu1 %v7011_v8 }
0x23f0   :  { %5877 = vmatprep.subr.bf16.mxu1 %v6361_v11 }
0x23f3   :  { %5879 = vmatpush3.bf16.msra.mxu1 %v7026_v51 }
0x23f4   :  { %5880 = vmatprep.subr.bf16.mxu1 %v6361_v11 }
0x23f5   :  { %v3050_v9 = vpop.permute.xlu1 %3049 }
0x23f6   :  { %v3052_v57 = vsel %vm99_vm0, %v3047_v55, %v3050_v9 }
0x23f7   :  { %5882 = vmatpush3.bf16.msra.mxu1 %v7032_v30  ;;  %5419 = vmatmul.mubr.msk.f32.vlgmr.msra.gmra.mrb[34].mxu0 %vm516_vm2, %v3052_v57 }
0x23f8   :  { %5901 = vmatprep.subr.bf16.mxu1 %v6361_v11  ;;  %5885 = vmatpush3.bf16.msra.mxu0 %v6954_v18 }
0x23f9   :  { %5459 = vmatprep.mubr.msk.f32.mxu0 %vm6362_vm1, %v6363_v21  ;;  %5886 = vmatprep.subr.bf16.mxu0 %v6361_v11 }
0x23fc   :  { %5888 = vmatpush3.bf16.msra.mxu0 %v6958_v31 }
0x23fd   :  { %5889 = vmatprep.subr.bf16.mxu0 %v6361_v11 }
0x24bd   :  { %v3226_v46 = vpop.f32.mrb[32].mxu1 }
0x24be   :  { %v3230_v17 = vadd.f32 %v3226_v46, %v6678_v36  ;;  %v5431_v59 = vpop.f32.mrb[33].mxu1 }
0x24c0   :  { %6197 = vtanh.f32 %v3230_v17  ;;  %v4630_v16 = vmul.f32 -1.442695, %v3230_v17 }
0x24ca   :  { %v6198_v35 = vpop.eup %6197  ;;  %v3122_v10 = vpop.f32.mrb[34].mxu0 }
0x24cb   :  { %3240 = vrot.lane.b32.xlu1 %v6198_v35, %s6364_s4  ;;  %v3123_v24 = vadd.f32 %v7065_v62, %v3122_v10  ;;  %v5420_v63 = vpop.f32.mrb[35].mxu0 }
0x24cd   :  { %6199 = vtanh.f32 %v3123_v24  ;;  %v4628_v6 = vmul.f32 -1.442695, %v3123_v24 }
0x24ce   :  { %6201 = vpow2.f32 %v4630_v16 }
0x24cf   :  { %6203 = vpow2.f32 %v4628_v6 }
0x24d7   :  { %v6200_v1 = vpop.eup %6199 }
0x24d8   :  { %3135 = vrot.lane.b32.xlu0 %v6200_v1, %s6364_s4  ;;  %v6202_v3 = vpop.eup %6201 }
0x24d9   :  { %v3234_v37 = vadd.f32 1.0, %v6202_v3  ;;  %v6204_v36 = vpop.eup %6203 }
0x24da   :  { %v3129_v60 = vadd.f32 1.0, %v6204_v36 }
0x24db   :  { %6205 = vrcp.f32 %v3234_v37 }
0x24dc   :  { %6207 = vrcp.f32 %v3129_v60 }
0x24e5   :  { %v6206_v12 = vpop.eup %6205 }
0x24e6   :  { %v6208_v19 = vpop.eup %6207  ;;  %v3238_v34 = vmul.f32 %v6206_v12, %v7193_v50 }
0x24e7   :  { %v3133_v45 = vmul.f32 %v6208_v19, %v7197_v32 }
0x253d   :  { %v3241_v13 = vpop.permute.xlu1 %3240 }
0x253e   :  { %v3243_v0 = vmul.f32 %v6206_v12, %v3241_v13 }
0x2540   :  { %3245 = vrot.lane.b32.xlu1 %v3243_v0, %s6365_s23 }
0x254a   :  { %v3136_v26 = vpop.permute.xlu0 %3135 }
0x254b   :  { %v3138_v39 = vmul.f32 %v6208_v19, %v3136_v26 }
0x254d   :  { %3140 = vrot.lane.b32.xlu0 %v3138_v39, %s6365_s23 }
0x25b2   :  { %v3246_v38 = vpop.permute.xlu1 %3245 }
0x25b3   :  { %v7233_v33 = vadd.f32 %v3246_v38, %v3238_v34 }
0x25b5   :  { %6209 = vtanh.f32 %v7233_v33 }
0x25bf   :  { %v6210_v44 = vpop.eup %6209  ;;  %v3141_v48 = vpop.permute.xlu0 %3140 }
0x25c0   :  { %3251 = vrot.lane.b32.xlu1 %v6210_v44, %s6364_s4  ;;  %v7238_v28 = vadd.f32 %v3141_v48, %v3133_v45 }
0x25c2   :  { %6211 = vtanh.f32 %v7238_v28 }
0x25cc   :  { %v6212_v27 = vpop.eup %6211 }
0x25cd   :  { %3146 = vrot.lane.b32.xlu0 %v6212_v27, %s6364_s4 }
0x2632   :  { %v3252_v49 = vpop.permute.xlu1 %3251 }
0x2633   :  { %v3254_v50 = vmul.f32 %v6206_v12, %v3252_v49 }
0x2635   :  { %3256 = vrot.lane.b32.xlu0 %v3254_v50, %s6365_s23 }
0x263f   :  { %v3147_v4 = vpop.permute.xlu0 %3146 }
0x2640   :  { %v7243_v52 = vmul.f32 %v6208_v19, %v3147_v4 }
0x2642   :  { %3259 = vrot.lane.b32.xlu1 %v7243_v52, %s6364_s4 }
0x26a7   :  { %v3257_v54 = vpop.permute.xlu0 %3256 }
0x26a8   :  { %5460 = vmatmul.mubr.msk.f32.vlgmr.msra.gmra.mrb[36].mxu0 %vm99_vm0, %v3257_v54 }
0x26a9   :  { %5891 = vmatpush3.bf16.msra.mxu0 %v7004_v7  ;;  %5478 = vmatprep.mubr.msk.f32.mxu0 %vm6362_vm1, %v6363_v21 }
0x26aa   :  { %5892 = vmatprep.subr.bf16.mxu0 %v6361_v11 }
0x26ad   :  { %5894 = vmatpush3.bf16.msra.mxu0 %v7011_v8 }
0x26ae   :  { %5895 = vmatprep.subr.bf16.mxu0 %v6361_v11 }
0x26b1   :  { %5897 = vmatpush3.bf16.msra.mxu0 %v7026_v51 }
0x26b2   :  { %5898 = vmatprep.subr.bf16.mxu0 %v6361_v11 }
0x26b4   :  { %v3260_v32 = vpop.permute.xlu1 %3259 }
0x26b5   :  { %5900 = vmatpush3.bf16.msra.mxu0 %v7032_v30  ;;  %v3262_v53 = vsel %vm99_vm0, %v3257_v54, %v3260_v32 }
0x26b6   :  { %5449 = vmatmul.mubr.msk.f32.vlgmr.msra.gmra.mrb[34].mxu1 %vm516_vm2, %v3262_v53 }
0x26b7   :  { %5903 = vmatpush3.bf16.msra.mxu1 %v6954_v18  ;;  %5489 = vmatprep.mubr.msk.f32.mxu1 %vm6362_vm1, %v6363_v21 }
0x26b8   :  { %5904 = vmatprep.subr.bf16.mxu1 %v6361_v11 }
0x26bb   :  { %5906 = vmatpush3.bf16.msra.mxu1 %v6958_v31 }
0x26bc   :  { %5907 = vmatprep.subr.bf16.mxu1 %v6361_v11 }
0x277b   :  { %v3436_v29 = vpop.f32.mrb[36].mxu0 }
0x277c   :  { %v3440_v20 = vadd.f32 %v3436_v29, %v6687_v43  ;;  %v5461_v23 = vpop.f32.mrb[37].mxu0 }
0x277e   :  { %6213 = vtanh.f32 %v3440_v20  ;;  %v4634_v17 = vmul.f32 -1.442695, %v3440_v20 }
0x2788   :  { %v6214_v55 = vpop.eup %6213 }
0x2789   :  { %3450 = vrot.lane.b32.xlu1 %v6214_v55, %s6364_s4  ;;  %v3332_v9 = vpop.f32.mrb[34].mxu1 }
0x278a   :  { %v3333_v18 = vadd.f32 %v7065_v62, %v3332_v9  ;;  %v5450_v57 = vpop.f32.mrb[35].mxu1 }
0x278c   :  { %6215 = vtanh.f32 %v3333_v18  ;;  %v4632_v59 = vmul.f32 -1.442695, %v3333_v18 }
0x278d   :  { %6217 = vpow2.f32 %v4634_v17 }
0x278e   :  { %6219 = vpow2.f32 %v4632_v59 }
0x2796   :  { %v6216_v46 = vpop.eup %6215 }
0x2797   :  { %3345 = vrot.lane.b32.xlu0 %v6216_v46, %s6364_s4  ;;  %v6218_v31 = vpop.eup %6217 }
0x2798   :  { %v3444_v35 = vadd.f32 1.0, %v6218_v31  ;;  %v6220_v43 = vpop.eup %6219 }
0x2799   :  { %v3339_v1 = vadd.f32 1.0, %v6220_v43 }
0x279a   :  { %6221 = vrcp.f32 %v3444_v35 }
0x279b   :  { %6223 = vrcp.f32 %v3339_v1 }
0x27a4   :  { %v6222_v10 = vpop.eup %6221 }
0x27a5   :  { %v6224_v16 = vpop.eup %6223  ;;  %v3448_v37 = vmul.f32 %v6222_v10, %v7233_v33 }
0x27a6   :  { %v3343_v13 = vmul.f32 %v6224_v16, %v7238_v28 }
0x27fb   :  { %v3451_v24 = vpop.permute.xlu1 %3450 }
0x27fc   :  { %v3453_v63 = vmul.f32 %v6222_v10, %v3451_v24 }
0x27fe   :  { %3455 = vrot.lane.b32.xlu1 %v3453_v63, %s6365_s23 }
0x2809   :  { %v3346_v3 = vpop.permute.xlu0 %3345 }
0x280a   :  { %v3348_v6 = vmul.f32 %v6224_v16, %v3346_v3 }
0x280c   :  { %3350 = vrot.lane.b32.xlu0 %v3348_v6, %s6365_s23 }
0x2870   :  { %v3456_v36 = vpop.permute.xlu1 %3455 }
0x2871   :  { %v3458_v12 = vadd.f32 %v3456_v36, %v3448_v37 }
0x2873   :  { %6225 = vtanh.f32 %v3458_v12 }
0x287d   :  { %v6226_v60 = vpop.eup %6225 }
0x287e   :  { %3461 = vrot.lane.b32.xlu1 %v6226_v60, %s6364_s4  ;;  %v3351_v0 = vpop.permute.xlu0 %3350 }
0x287f   :  { %v3353_v19 = vadd.f32 %v3351_v0, %v3343_v13 }
0x2881   :  { %6227 = vtanh.f32 %v3353_v19 }
0x288b   :  { %v6228_v26 = vpop.eup %6227 }
0x288c   :  { %3356 = vrot.lane.b32.xlu0 %v6228_v26, %s6364_s4 }
0x28f0   :  { %v3462_v39 = vpop.permute.xlu1 %3461 }
0x28f1   :  { %v3464_v34 = vmul.f32 %v6222_v10, %v3462_v39 }
0x28f3   :  { %3466 = vrot.lane.b32.xlu0 %v3464_v34, %s6365_s23 }
0x28fe   :  { %v3357_v38 = vpop.permute.xlu0 %3356 }
0x28ff   :  { %v7276_v33 = vmul.f32 %v6224_v16, %v3357_v38 }
0x2901   :  { %3469 = vrot.lane.b32.xlu1 %v7276_v33, %s6364_s4 }
0x2965   :  { %v3467_v44 = vpop.permute.xlu0 %3466 }
0x2966   :  { %5490 = vmatmul.mubr.msk.f32.vlgmr.msra.gmra.mrb[36].mxu1 %vm99_vm0, %v3467_v44 }
0x2967   :  { %5909 = vmatpush3.bf16.msra.mxu1 %v7004_v7  ;;  %5508 = vmatprep.mubr.msk.f32.mxu1 %vm6362_vm1, %v6363_v21 }
0x2968   :  { %5910 = vmatprep.subr.bf16.mxu1 %v6361_v11 }
0x296b   :  { %5912 = vmatpush3.bf16.msra.mxu1 %v7011_v8 }
0x296c   :  { %5913 = vmatprep.subr.bf16.mxu1 %v6361_v11 }
0x296f   :  { %5915 = vmatpush3.bf16.msra.mxu1 %v7026_v51 }
0x2970   :  { %5916 = vmatprep.subr.bf16.mxu1 %v6361_v11 }
0x2973   :  { %5918 = vmatpush3.bf16.msra.mxu1 %v7032_v30  ;;  %v3470_v45 = vpop.permute.xlu1 %3469 }
0x2974   :  { %v3472_v48 = vsel %vm99_vm0, %v3467_v44, %v3470_v45 }
0x2975   :  { %5479 = vmatmul.mubr.msk.f32.vlgmr.msra.gmra.mrb[38].mxu0 %vm516_vm2, %v3472_v48 }
0x2a39   :  { %v3646_v7 = vpop.f32.mrb[36].mxu1 }
0x2a3a   :  { %v3650_v21 = vadd.f32 %v3646_v7, %v6684_v41  ;;  %v5491_v28 = vpop.f32.mrb[37].mxu1 }
0x2a3c   :  { %6229 = vtanh.f32 %v3650_v21  ;;  %v4638_v30 = vmul.f32 -1.442695, %v3650_v21 }
0x2a46   :  { %v6230_v27 = vpop.eup %6229 }
0x2a47   :  { %3660 = vrot.lane.b32.xlu1 %v6230_v27, %s6364_s4 }
0x2a48   :  { %v3542_v8 = vpop.f32.mrb[38].mxu0 }
0x2a49   :  { %v3543_v51 = vadd.f32 %v7065_v62, %v3542_v8  ;;  %v5480_v49 = vpop.f32.mrb[39].mxu0 }
0x2a4b   :  { %6231 = vtanh.f32 %v3543_v51  ;;  %v4636_v54 = vmul.f32 -1.442695, %v3543_v51 }
0x2a4c   :  { %6233 = vpow2.f32 %v4638_v30 }
0x2a55   :  { %v6232_v11 = vpop.eup %6231 }
0x2a56   :  { %3555 = vrot.lane.b32.xlu0 %v6232_v11, %s6364_s4  ;;  %v6234_v50 = vpop.eup %6233 }
0x2a57   :  { %v3654_v4 = vadd.f32 1.0, %v6234_v50 }
0x2a59   :  { %6235 = vrcp.f32 %v3654_v4 }
0x2a5a   :  { %6237 = vpow2.f32 %v4636_v54 }
0x2a63   :  { %v6236_v41 = vpop.eup %6235 }
0x2a64   :  { %v6238_v32 = vpop.eup %6237  ;;  %v3658_v18 = vmul.f32 %v6236_v41, %v3458_v12 }
0x2a65   :  { %v3549_v20 = vadd.f32 1.0, %v6238_v32 }
0x2a67   :  { %6239 = vrcp.f32 %v3549_v20 }
0x2a71   :  { %v6240_v23 = vpop.eup %6239 }
0x2a72   :  { %v3553_v31 = vmul.f32 %v6240_v23, %v3353_v19 }
0x2ab9   :  { %v3661_v53 = vpop.permute.xlu1 %3660 }
0x2aba   :  { %v3663_v29 = vmul.f32 %v6236_v41, %v3661_v53 }
0x2abc   :  { %3665 = vrot.lane.b32.xlu1 %v3663_v29, %s6365_s23 }
0x2ac8   :  { %v3556_v55 = vpop.permute.xlu0 %3555 }
0x2ac9   :  { %v3558_v9 = vmul.f32 %v6240_v23, %v3556_v55 }
0x2acb   :  { %3560 = vrot.lane.b32.xlu0 %v3558_v9, %s6365_s23 }
0x2b2e   :  { %v3666_v57 = vpop.permute.xlu1 %3665 }
0x2b2f   :  { %v3668_v46 = vadd.f32 %v3666_v57, %v3658_v18 }
0x2b31   :  { %6241 = vtanh.f32 %v3668_v46 }
0x2b3b   :  { %v6242_v17 = vpop.eup %6241 }
0x2b3c   :  { %3671 = vrot.lane.b32.xlu1 %v6242_v17, %s6364_s4 }
0x2b3d   :  { %v3561_v59 = vpop.permute.xlu0 %3560 }
0x2b3e   :  { %v3563_v35 = vadd.f32 %v3561_v59, %v3553_v31  ;;  %v3955_v31 = vlaneseq }
0x2b40   :  { %6243 = vtanh.f32 %v3563_v35  ;;  %v3956_v59 = vshrl.u32 %v3955_v31, 7 }
0x2b4a   :  { %v6244_v43 = vpop.eup %6243 }
0x2b4b   :  { %3566 = vrot.lane.b32.xlu0 %v6244_v43, %s6364_s4  ;;  %v3973_v43 = vand.u32 127, %v3955_v31 }
0x2bae   :  { %v3672_v10 = vpop.permute.xlu1 %3671 }
0x2baf   :  { %v3674_v24 = vmul.f32 %v6236_v41, %v3672_v10 }
0x2bb1   :  { %3676 = vrot.lane.b32.xlu0 %v3674_v24, %s6365_s23  ;;  %v3974_v24 = vand.u32 7, %v3973_v43 }
0x2bbd   :  { %v3567_v63 = vpop.permute.xlu0 %3566 }
0x2bbe   :  { %v3569_v1 = vmul.f32 %v6240_v23, %v3567_v63  ;;  %v3959_v63 = vadd.s32 24, %v3956_v59 }
0x2bc0   :  { %3679 = vrot.lane.b32.xlu1 %v3569_v1, %s6364_s4 }
0x2c23   :  { %v3677_v16 = vpop.permute.xlu0 %3676 }
0x2c32   :  { %v3680_v3 = vpop.permute.xlu1 %3679 }
0x2c33   :  { %v3682_v6 = vsel %vm99_vm0, %v3677_v16, %v3680_v3  ;;  %v3958_v16 = vadd.s32 16, %v3956_v59 }
0x2c34   :  { %5509 = vmatmul.mubr.msk.f32.vlgmr.msra.gmra.mrb[38].mxu1 %vm516_vm2, %v3682_v6  ;;  %v3967_v6 = vand.u32 7, %v3959_v63 }
0x2c36   :  { %vm7421_vm6 = vcmp.eq.s32.totalorder %v3967_v6, %v3974_v24 }
0x2d07   :  { %v3752_v37 = vpop.f32.mrb[38].mxu1 }
0x2d08   :  { %v3753_v36 = vadd.f32 %v7065_v62, %v3752_v37  ;;  %v5510_v12 = vpop.f32.mrb[39].mxu1  ;;  %v3961_v37 = vadd.s32 40, %v3956_v59 }
0x2d09   :  { %v3966_v12 = vand.u32 7, %v3958_v16 }
0x2d0a   :  { %6245 = vtanh.f32 %v3753_v36  ;;  %v4640_v13 = vmul.f32 -1.442695, %v3753_v36 }
0x2d0b   :  { %vm7426_vm7 = vcmp.eq.s32.totalorder %v3966_v12, %v3974_v24 }
0x2d0c   :  { %6247 = vpow2.f32 %v4640_v13 }
0x2d14   :  { %v6246_v60 = vpop.eup %6245 }
0x2d15   :  { %3765 = vrot.lane.b32.xlu0 %v6246_v60, %s6364_s4  ;;  %v3960_v60 = vadd.s32 32, %v3956_v59 }
0x2d16   :  { %v6248_v0 = vpop.eup %6247 }
0x2d17   :  { %v3759_v19 = vadd.f32 1.0, %v6248_v0 }
0x2d19   :  { %6249 = vrcp.f32 %v3759_v19 }
0x2d23   :  { %v6250_v26 = vpop.eup %6249 }
0x2d87   :  { %v3766_v39 = vpop.permute.xlu0 %3765 }
0x2d88   :  { %v3768_v34 = vmul.f32 %v6250_v26, %v3766_v39 }
0x2d8a   :  { %3770 = vrot.lane.b32.xlu1 %v3768_v34, %s6365_s23 }
0x2d8e   :  { %615 = vrot.lane.b32.xlu1 %v6728_v22, %s6365_s23  ;;  %v3763_v22 = vmul.f32 %v6250_v26, %v3563_v35  ;;  %v3957_v35 = vadd.s32 8, %v3956_v59 }
0x2d90   :  { %v3965_v10 = vand.u32 7, %v3957_v35 }
0x2d92   :  { %1034 = vrot.lane.b32.xlu1 %v6809_v5, %s6365_s23  ;;  %vm7408_vm4 = vcmp.eq.s32.totalorder %v3965_v10, %v3974_v24 }
0x2d96   :  { %1454 = vrot.lane.b32.xlu1 %v6889_v56, %s6365_s23 }
0x2d9a   :  { %1874 = vrot.lane.b32.xlu1 %v6965_v40, %s6365_s23 }
0x2d9e   :  { %2312 = vrot.lane.b32.xlu1 %v7083_v15, %s6365_s23 }
0x2da2   :  { %2731 = vrot.lane.b32.xlu1 %v7163_v58, %s6365_s23 }
0x2da6   :  { %3151 = vrot.lane.b32.xlu1 %v7243_v52, %s6365_s23 }
0x2daa   :  { %3571 = vrot.lane.b32.xlu1 %v3569_v1, %s6365_s23  ;;  %v3964_v1 = vand.u32 7, %v3956_v59 }
0x2dac   :  { %vm7412_vm5 = vcmp.eq.s32.totalorder %v3964_v1, %v3974_v24 }
0x2dfc   :  { %v3771_v62 = vpop.permute.xlu1 %3770 }
0x2dfd   :  { %v3773_v5 = vadd.f32 %v3771_v62, %v3763_v22  ;;  %v3969_v22 = vand.u32 7, %v3961_v37 }
0x2dff   :  { %6251 = vtanh.f32 %v3773_v5  ;;  %vm7435_vm8 = vcmp.eq.s32.totalorder %v3969_v22, %v3974_v24 }
0x2e00   :  { %v616_v38 = vpop.permute.xlu1 %615 }
0x2e01   :  { %618 = vst.msk [vmem:[#allocation4] sm:$0xff] %vm99_vm0, %v616_v38  ;;  %v3968_v38 = vand.u32 7, %v3960_v60 }
0x2e03   :  { %vm7440_vm9 = vcmp.eq.s32.totalorder %v3968_v38, %v3974_v24 }
0x2e04   :  { %v1035_v56 = vpop.permute.xlu1 %1034 }
0x2e05   :  { %1038 = vst.msk [vmem:[#allocation4 + $0x10] sm:$0xff] %vm99_vm0, %v1035_v56 }
0x2e08   :  { %v1455_v40 = vpop.permute.xlu1 %1454  ;;  %v3786_v28 = vld [vmem:[#allocation4] sm:$0xff] }
0x2e09   :  { %v6252_v15 = vpop.eup %6251  ;;  %1458 = vst.msk [vmem:[#allocation4 + $0x20] sm:$0xff] %vm99_vm0, %v1455_v40 }
0x2e0a   :  { %3776 = vrot.lane.b32.xlu0 %v6252_v15, %s6364_s4  ;;  %s6366_s4 = smov [#allocation11]  }
0x2e0c   :  { %v1875_v58 = vpop.permute.xlu1 %1874  ;;  %v3788_v8 = vld [vmem:[#allocation4 + $0x10] sm:$0xff] }
0x2e0d   :  { %1878 = vst.msk [vmem:[#allocation4 + $0x30] sm:$0xff] %vm99_vm0, %v1875_v58 }
0x2e0e   :  { %824 = vrot.lane.b32.xlu0 %v6769_v14, %s6365_s23 }
0x2e10   :  { %v2313_v52 = vpop.permute.xlu1 %2312  ;;  %v3790_v30 = vld [vmem:[#allocation4 + $0x20] sm:$0xff] }
0x2e11   :  { %2315 = vst.msk [vmem:[#allocation5] sm:$0xff] %vm99_vm0, %v2313_v52 }
0x2e12   :  { %1244 = vrot.lane.b32.xlu0 %v6849_v61, %s6365_s23 }
0x2e14   :  { %v2732_v44 = vpop.permute.xlu1 %2731  ;;  %v3792_v41 = vld [vmem:[#allocation4 + $0x30] sm:$0xff] }
0x2e15   :  { %2735 = vst.msk [vmem:[#allocation5 + $0x10] sm:$0xff] %vm99_vm0, %v2732_v44 }
0x2e16   :  { %1664 = vrot.lane.b32.xlu0 %v6923_v47, %s6365_s23 }
0x2e18   :  { %v3152_v45 = vpop.permute.xlu1 %3151  ;;  %v7335_v48 = vld [vmem:[#allocation5] sm:$0xff] }
0x2e19   :  { %3155 = vst.msk [vmem:[#allocation5 + $0x20] sm:$0xff] %vm99_vm0, %v3152_v45  ;;  %5527 = vmatprep.mubr.msk.f32.mxu0 %vm99_vm0, %v7335_v48 }
0x2e1a   :  { %2084 = vrot.lane.b32.xlu0 %v7038_v42, %s6365_s23 }
0x2e1c   :  { %v3572_v14 = vpop.permute.xlu1 %3571  ;;  %v7383_v23 = vld [vmem:[#allocation5 + $0x10] sm:$0xff] }
0x2e1d   :  { %3575 = vst.msk [vmem:[#allocation5 + $0x30] sm:$0xff] %vm99_vm0, %v3572_v14 }
0x2e1e   :  { %2521 = vrot.lane.b32.xlu0 %v7123_v2, %s6365_s23  ;;  %v3962_v2 = vadd.s32 48, %v3956_v59 }
0x2e20   :  { %v7391_v9 = vld [vmem:[#allocation5 + $0x20] sm:$0xff] }
0x2e22   :  { %2941 = vrot.lane.b32.xlu0 %v7203_v25, %s6365_s23 }
0x2e24   :  { %v7399_v57 = vld [vmem:[#allocation5 + $0x30] sm:$0xff] }
0x2e26   :  { %3361 = vrot.lane.b32.xlu0 %v7276_v33, %s6365_s23 }
0x2e7c   :  { %v3777_v61 = vpop.permute.xlu0 %3776 }
0x2e7d   :  { %v3779_v47 = vmul.f32 %v6250_v26, %v3777_v61 }
0x2e7f   :  { %3781 = vrot.lane.b32.xlu0 %v3779_v47, %s6365_s23 }
0x2e80   :  { %v825_v7 = vpop.permute.xlu0 %824 }
0x2e81   :  { %828 = vst.msk [vmem:[#allocation4 + $0x8] sm:$0xff] %vm99_vm0, %v825_v7 }
0x2e84   :  { %v1245_v42 = vpop.permute.xlu0 %1244 }
0x2e85   :  { %1248 = vst.msk [vmem:[#allocation4 + $0x18] sm:$0xff] %vm99_vm0, %v1245_v42 }
0x2e88   :  { %v1665_v21 = vpop.permute.xlu0 %1664  ;;  %v3787_v27 = vld [vmem:[#allocation4 + $0x8] sm:$0xff] }
0x2e89   :  { %1668 = vst.msk [vmem:[#allocation4 + $0x28] sm:$0xff] %vm99_vm0, %v1665_v21  ;;  %v5919_v25 = vpack.c.bf16 %v3787_v27, %v3786_v28  ;;  %v3963_v27 = vadd.s32 56, %v3956_v59 }
0x2e8b   :  { %5921 = vmatprep.subr.msk.bf16.mxu0 %vm7354_vm3, %v5919_v25  ;;  %5944 = vmatprep.subr.bf16.mxu1 %v5919_v25 }
0x2e8c   :  { %5924 = vmatpush3.bf16.xpose.msk.msra.mxu0 %vm7354_vm3, %v5919_v25  ;;  %5946 = vmatpush3.bf16.msra.mxu1 %v5919_v25  ;;  %v2085_v33 = vpop.permute.xlu0 %2084  ;;  %v3789_v51 = vld [vmem:[#allocation4 + $0x18] sm:$0xff]  ;;  %v3971_v25 = vand.u32 7, %v3963_v27 }
0x2e8d   :  { %2088 = vst.msk [vmem:[#allocation4 + $0x38] sm:$0xff] %vm99_vm0, %v2085_v33  ;;  %v5925_v49 = vpack.c.bf16 %v3789_v51, %v3788_v8  ;;  %v3970_v33 = vand.u32 7, %v3962_v2  ;;  %v4248_v8 = vld [vmem:[%s7637_s12] sm:$0xff] }
0x2e8e   :  { %vm7450_vm10 = vcmp.eq.s32.totalorder %v3971_v25, %v3974_v24 }
0x2e8f   :  { %5927 = vmatprep.subr.msk.bf16.mxu0 %vm7354_vm3, %v5925_v49  ;;  %5948 = vmatprep.subr.bf16.mxu1 %v5925_v49  ;;  %vm7454_vm11 = vcmp.eq.s32.totalorder %v3970_v33, %v3974_v24 }
0x2e90   :  { %5950 = vmatpush3.bf16.msra.mxu1 %v5925_v49  ;;  %v2522_v11 = vpop.permute.xlu0 %2521  ;;  %v3791_v50 = vld [vmem:[#allocation4 + $0x28] sm:$0xff] }
0x2e91   :  { %2525 = vst.msk [vmem:[#allocation5 + $0x8] sm:$0xff] %vm99_vm0, %v2522_v11  ;;  %v5931_v4 = vpack.c.bf16 %v3791_v50, %v3790_v30 }
0x2e93   :  { %5952 = vmatprep.subr.bf16.mxu1 %v5931_v4 }
0x2e94   :  { %5930 = vmatpush3.bf16.xpose.msk.msra.mxu0 %vm7354_vm3, %v5925_v49  ;;  %5954 = vmatpush3.bf16.msra.mxu1 %v5931_v4  ;;  %v2942_v54 = vpop.permute.xlu0 %2941  ;;  %v3793_v32 = vld [vmem:[#allocation4 + $0x38] sm:$0xff] }
0x2e95   :  { %2945 = vst.msk [vmem:[#allocation5 + $0x18] sm:$0xff] %vm99_vm0, %v2942_v54  ;;  %5933 = vmatprep.subr.msk.bf16.mxu0 %vm7354_vm3, %v5931_v4  ;;  %v5937_v53 = vpack.c.bf16 %v3793_v32, %v3792_v41 }
0x2e97   :  { %5956 = vmatprep.subr.bf16.mxu1 %v5937_v53 }
0x2e98   :  { %5958 = vmatpush3.bf16.msra.mxu1 %v5937_v53  ;;  %v3362_v29 = vpop.permute.xlu0 %3361  ;;  %v7379_v20 = vld [vmem:[#allocation5 + $0x8] sm:$0xff] }
0x2e99   :  { %3365 = vst.msk [vmem:[#allocation5 + $0x28] sm:$0xff] %vm99_vm0, %v3362_v29 }
0x2e9c   :  { %5936 = vmatpush3.bf16.xpose.msk.msra.mxu0 %vm7354_vm3, %v5931_v4  ;;  %v7387_v55 = vld [vmem:[#allocation5 + $0x18] sm:$0xff] }
0x2e9d   :  { %5939 = vmatprep.subr.msk.bf16.mxu0 %vm7354_vm3, %v5937_v53 }
0x2ea0   :  { %v7395_v18 = vld [vmem:[#allocation5 + $0x28] sm:$0xff] }
0x2ea4   :  { %5942 = vmatpush3.bf16.xpose.msk.msra.mxu0 %vm7354_vm3, %v5937_v53 }
0x2eab   :  { %5528 = vmatmul.mubr.msk.f32.vlgmr.msra.gmra.mrb[40].mxu0 %vm99_vm0, %v7379_v20 }
0x2eac   :  { %5530 = vmatprep.mubr.msk.f32.mxu0 %vm99_vm0, %v7383_v23 }
0x2eaf   :  { %5531 = vmatmul.mubr.msk.f32.gmra.mrb[42].mxu0 %vm99_vm0, %v7387_v55 }
0x2eb0   :  { %5533 = vmatprep.mubr.msk.f32.mxu0 %vm99_vm0, %v7391_v9 }
0x2eb3   :  { %5534 = vmatmul.mubr.msk.f32.gmra.mrb[44].mxu0 %vm99_vm0, %v7395_v18 }
0x2eb4   :  { %5536 = vmatprep.mubr.msk.f32.mxu0 %vm99_vm0, %v7399_v57 }
0x2ef1   :  { %v3782_v46 = vpop.permute.xlu0 %3781 }
0x2ef2   :  { %3785 = vst.msk [vmem:[#allocation5 + $0x38] sm:$0xff] %vm99_vm0, %v3782_v46 }
0x2ef9   :  { %v7404_v17 = vld [vmem:[#allocation5 + $0x38] sm:$0xff] }
0x2efa   :  { %5537 = vmatmul.mubr.msk.f32.gmra.mrb[46].mxu0 %vm99_vm0, %v7404_v17 }
0x2f7e   :  { %v5529_v13 = vpop.f32.mrb[40].mxu0 }
0x2f7f   :  { %v3984_v0 = vsel %vm7408_vm4, %v5529_v13, -1e+30  ;;  %v3916_v19 = vpop.f32.mrb[41].mxu0 }
0x2f80   :  { %v3994_v26 = vsel %vm516_vm2, %v3984_v0, -inf  ;;  %v3983_v39 = vsel %vm7412_vm5, %v3916_v19, -1e+30 }
0x2f81   :  { %v3991_v62 = vsel %vm516_vm2, %v3983_v39, -inf  ;;  %3995 = vmax.xlane.f32.xlu0 %v3994_v26 }
0x2f82   :  { %3992 = vmax.xlane.f32.xlu1 %v3991_v62  ;;  %v5532_v56 = vpop.f32.mrb[42].mxu0 }
0x2f83   :  { %v3986_v40 = vsel %vm7421_vm6, %v5532_v56, -1e+30  ;;  %v3926_v15 = vpop.f32.mrb[43].mxu0 }
0x2f84   :  { %v4000_v58 = vsel %vm516_vm2, %v3986_v40, -inf  ;;  %v3985_v52 = vsel %vm7426_vm7, %v3926_v15, -1e+30 }
0x2f85   :  { %v3997_v45 = vsel %vm516_vm2, %v3985_v52, -inf }
0x2f86   :  { %4001 = vmax.xlane.f32.xlu1 %v4000_v58  ;;  %3998 = vmax.xlane.f32.xlu0 %v3997_v45  ;;  %v5535_v61 = vpop.f32.mrb[44].mxu0 }
0x2f87   :  { %v3988_v47 = vsel %vm7435_vm8, %v5535_v61, -1e+30  ;;  %v3936_v7 = vpop.f32.mrb[45].mxu0 }
0x2f88   :  { %v4006_v42 = vsel %vm516_vm2, %v3988_v47, -inf  ;;  %v3987_v21 = vsel %vm7440_vm9, %v3936_v7, -1e+30 }
0x2f89   :  { %v4003_v28 = vsel %vm516_vm2, %v3987_v21, -inf }
0x2f8a   :  { %4007 = vmax.xlane.f32.xlu1 %v4006_v42  ;;  %4004 = vmax.xlane.f32.xlu0 %v4003_v28 }
0x2fcd   :  { %v5538_v49 = vpop.f32.mrb[46].mxu0 }
0x2fce   :  { %v3990_v11 = vsel %vm7450_vm10, %v5538_v49, -1e+30  ;;  %v3946_v30 = vpop.f32.mrb[47].mxu0 }
0x2fcf   :  { %v4012_v50 = vsel %vm516_vm2, %v3990_v11, -inf  ;;  %v3989_v4 = vsel %vm7454_vm11, %v3946_v30, -1e+30 }
0x2fd0   :  { %v4009_v54 = vsel %vm516_vm2, %v3989_v4, -inf  ;;  %4013 = vmax.xlane.f32.xlu1 %v4012_v50 }
0x2fd1   :  { %4010 = vmax.xlane.f32.xlu0 %v4009_v54 }
0x300e   :  { %v3996_v41 = vpop.xlane.xlu0 %3995 }
0x300f   :  { %v4016_v32 = vsub.f32 %v3984_v0, %v3996_v41  ;;  %v3993_v53 = vpop.xlane.xlu1 %3992 }
0x3010   :  { %v4015_v29 = vsub.f32 %v3983_v39, %v3993_v53  ;;  %v4253_v53 = vld [vmem:[%s7637_s12 + $0x28] sm:$0xff] }
0x3011   :  { %v4025_v46 = vmul.f32 1.442695, %v4016_v32  ;;  %v4252_v32 = vld [vmem:[%s7637_s12 + $0x20] sm:$0xff] }
0x3012   :  { %v4023_v31 = vmul.f32 1.442695, %v4015_v29 }
0x3013   :  { %6253 = vpow2.f32 %v4025_v46  ;;  %v4002_v59 = vpop.xlane.xlu1 %4001  ;;  %v3999_v35 = vpop.xlane.xlu0 %3998 }
0x3014   :  { %6255 = vpow2.f32 %v4023_v31  ;;  %v4018_v43 = vsub.f32 %v3986_v40, %v4002_v59  ;;  %v4017_v10 = vsub.f32 %v3985_v52, %v3999_v35  ;;  %v5967_v59 = vpack.c.bf16 %v4253_v53, %v4252_v32 }
0x3016   :  { %v4029_v24 = vmul.f32 1.442695, %v4018_v43  ;;  %v4027_v63 = vmul.f32 1.442695, %v4017_v10 }
0x3017   :  { %v4008_v1 = vpop.xlane.xlu1 %4007  ;;  %v4005_v16 = vpop.xlane.xlu0 %4004 }
0x3018   :  { %6257 = vpow2.f32 %v4029_v24  ;;  %v4020_v6 = vsub.f32 %v3988_v47, %v4008_v1  ;;  %v4019_v37 = vsub.f32 %v3987_v21, %v4005_v16 }
0x3019   :  { %6259 = vpow2.f32 %v4027_v63 }
0x301a   :  { %v4033_v12 = vmul.f32 1.442695, %v4020_v6  ;;  %v4031_v60 = vmul.f32 1.442695, %v4019_v37 }
0x301c   :  { %6261 = vpow2.f32 %v4033_v12 }
0x301d   :  { %v6254_v13 = vpop.eup %6253  ;;  %6263 = vpow2.f32 %v4031_v60  ;;  %v4254_v60 = vld [vmem:[%s7637_s12 + $0x30] sm:$0xff] }
0x301e   :  { %v6256_v0 = vpop.eup %6255  ;;  %v7466_v19 = vsel %vm7408_vm4, %v6254_v13, 0.0  ;;  %v4255_v13 = vld [vmem:[%s7637_s12 + $0x38] sm:$0xff] }
0x301f   :  { %v4050_v26 = vsel %vm516_vm2, %v7466_v19, 0.0  ;;  %v7472_v39 = vsel %vm7412_vm5, %v6256_v0, 0.0  ;;  %v5971_v0 = vpack.c.bf16 %v4255_v13, %v4254_v60 }
0x3020   :  { %4051 = vadd.xlane.f32.xlu1 %v4050_v26  ;;  %v4047_v22 = vsel %vm516_vm2, %v7472_v39, 0.0  ;;  %v4393_v26 = vld [vmem:[%s7639_s14 + $0x8] sm:$0xff] }
0x3021   :  { %4048 = vadd.xlane.f32.xlu0 %v4047_v22 }
0x3022   :  { %v6258_v62 = vpop.eup %6257 }
0x3023   :  { %v6260_v38 = vpop.eup %6259  ;;  %v7478_v56 = vsel %vm7421_vm6, %v6258_v62, 0.0 }
0x3024   :  { %v4056_v3 = vsel %vm516_vm2, %v7478_v56, 0.0  ;;  %v7484_v40 = vsel %vm7426_vm7, %v6260_v38, 0.0 }
0x3025   :  { %4057 = vadd.xlane.f32.xlu1 %v4056_v3  ;;  %v4053_v36 = vsel %vm516_vm2, %v7484_v40, 0.0 }
0x3026   :  { %v6262_v15 = vpop.eup %6261  ;;  %4054 = vadd.xlane.f32.xlu0 %v4053_v36 }
0x3027   :  { %v6264_v58 = vpop.eup %6263  ;;  %v7490_v52 = vsel %vm7435_vm8, %v6262_v15, 0.0 }
0x3028   :  { %v4062_v34 = vsel %vm516_vm2, %v7490_v52, 0.0  ;;  %v7496_v45 = vsel %vm7440_vm9, %v6264_v58, 0.0 }
0x3029   :  { %4063 = vadd.xlane.f32.xlu1 %v4062_v34  ;;  %v4059_v5 = vsel %vm516_vm2, %v7496_v45, 0.0 }
0x302a   :  { %4060 = vadd.xlane.f32.xlu0 %v4059_v5 }
0x305d   :  { %v4014_v61 = vpop.xlane.xlu1 %4013 }
0x305e   :  { %v4022_v47 = vsub.f32 %v3990_v11, %v4014_v61  ;;  %v4011_v7 = vpop.xlane.xlu0 %4010 }
0x305f   :  { %v4021_v42 = vsub.f32 %v3989_v4, %v4011_v7 }
0x3060   :  { %v4037_v21 = vmul.f32 1.442695, %v4022_v47 }
0x3061   :  { %v4035_v44 = vmul.f32 1.442695, %v4021_v42 }
0x3062   :  { %6265 = vpow2.f32 %v4037_v21 }
0x3063   :  { %6267 = vpow2.f32 %v4035_v44 }
0x306c   :  { %v6266_v28 = vpop.eup %6265 }
0x306d   :  { %v6268_v27 = vpop.eup %6267  ;;  %v7502_v14 = vsel %vm7450_vm10, %v6266_v28, 0.0 }
0x306e   :  { %v4068_v2 = vsel %vm516_vm2, %v7502_v14, 0.0  ;;  %v7508_v25 = vsel %vm7454_vm11, %v6268_v27, 0.0 }
0x306f   :  { %4069 = vadd.xlane.f32.xlu1 %v4068_v2  ;;  %v4065_v33 = vsel %vm516_vm2, %v7508_v25, 0.0 }
0x3070   :  { %4066 = vadd.xlane.f32.xlu0 %v4065_v33  ;;  %v4394_v33 = vld [vmem:[%s7639_s14 + $0x10] sm:$0xff] }
0x3080   :  { %4218 = vrot.lane.b32.xlu1 %v7379_v20, %s6365_s23  ;;  %v4249_v20 = vld [vmem:[%s7637_s12 + $0x8] sm:$0xff] }
0x3084   :  { %4220 = vrot.lane.b32.xlu1 %v7383_v23, %s6365_s23 }
0x3086   :  { %4216 = vrot.lane.b32.xlu0 %v7335_v48, %s6365_s23  ;;  %v5959_v48 = vpack.c.bf16 %v4249_v20, %v4248_v8  ;;  %v4395_v8 = vld [vmem:[%s7639_s14 + $0x18] sm:$0xff] }
0x3087   :  { %v5979_v20 = vpack.c.bf16 %v4395_v8, %v4394_v33 }
0x3088   :  { %4224 = vrot.lane.b32.xlu1 %v7391_v9, %s6365_s23  ;;  %5960 = vmatprep.subr.bf16.mxu1 %v5959_v48 }
0x308a   :  { %4222 = vrot.lane.b32.xlu0 %v7387_v55, %s6365_s23 }
0x308c   :  { %4228 = vrot.lane.b32.xlu1 %v7399_v57, %s6365_s23 }
0x308e   :  { %4226 = vrot.lane.b32.xlu0 %v7395_v18, %s6365_s23  ;;  %v4250_v18 = vld [vmem:[%s7637_s12 + $0x10] sm:$0xff] }
0x3092   :  { %4230 = vrot.lane.b32.xlu0 %v7404_v17, %s6365_s23  ;;  %v4251_v17 = vld [vmem:[%s7637_s12 + $0x18] sm:$0xff] }
0x3093   :  { %v5963_v54 = vpack.c.bf16 %v4251_v17, %v4250_v18 }
0x30ad   :  { %v4052_v23 = vpop.xlane.xlu1 %4051 }
0x30ae   :  { %6269 = vrcp.f32 %v4052_v23  ;;  %v4049_v55 = vpop.xlane.xlu0 %4048 }
0x30af   :  { %6271 = vrcp.f32 %v4049_v55 }
0x30b2   :  { %v4058_v9 = vpop.xlane.xlu1 %4057 }
0x30b3   :  { %6273 = vrcp.f32 %v4058_v9  ;;  %v4055_v57 = vpop.xlane.xlu0 %4054 }
0x30b4   :  { %6275 = vrcp.f32 %v4055_v57 }
0x30b6   :  { %v4064_v51 = vpop.xlane.xlu1 %4063 }
0x30b7   :  { %6277 = vrcp.f32 %v4064_v51  ;;  %v4061_v49 = vpop.xlane.xlu0 %4060 }
0x30b8   :  { %v6270_v11 = vpop.eup %6269  ;;  %6279 = vrcp.f32 %v4061_v49 }
0x30b9   :  { %v6272_v30 = vpop.eup %6271  ;;  %v4080_v4 = vmul.f32 %v6270_v11, %v7466_v19  ;;  %v4392_v19 = vld [vmem:[%s7639_s14] sm:$0xff] }
0x30ba   :  { %v4079_v50 = vmul.f32 %v6272_v30, %v7472_v39  ;;  %v5975_v39 = vpack.c.bf16 %v4393_v26, %v4392_v19 }
0x30bc   :  { %5555 = vmatprep.mubr.msk.f32.mxu1 %vm516_vm2, %v4079_v50  ;;  %5976 = vmatprep.subr.bf16.mxu0 %v5975_v39 }
0x30bd   :  { %v6274_v41 = vpop.eup %6273  ;;  %5556 = vmatmul.mubr.msk.f32.vlgmr.msra.gmra.mrb[40].mxu1 %vm516_vm2, %v4080_v4  ;;  %5978 = vmatpush3.bf16.msra.mxu0 %v5975_v39 }
0x30be   :  { %v6276_v29 = vpop.eup %6275  ;;  %v4082_v46 = vmul.f32 %v6274_v41, %v7478_v56  ;;  %5962 = vmatpush3.bf16.msra.mxu1 %v5959_v48  ;;  %5980 = vmatprep.subr.bf16.mxu0 %v5979_v20  ;;  %v4665_v48 = vld [vmem:[%s7638_s13] ss:$0 sm:$0xff] }
0x30bf   :  { %v4081_v31 = vmul.f32 %v6276_v29, %v7484_v40  ;;  %5964 = vmatprep.subr.bf16.mxu1 %v5963_v54  ;;  %v4674_v29 = vld [vmem:[%s7640_s15] ss:$0 sm:$0xff]  ;;  %s4545_s15 = sshll.u32 %s6366_s4, 4  ;;  %s4546_s15 = int_to_ptr.vmem [resolvable:$true] %s4545_s15 }
0x30c0   :  { %s6329_s21 = scalar_lea.vmem %s4546_s15, 1024  ;;  %p6334_p3 = scmp.lt.s32.totalorder %s4546_s15, %s4546_s15 }
0x30c1   :  { %v6278_v35 = vpop.eup %6277  ;;  %5558 = vmatprep.mubr.msk.f32.mxu1 %vm516_vm2, %v4081_v31  ;;  %5982 = vmatpush3.bf16.msra.mxu0 %v5979_v20  ;;  %p6330_p2 = scmp.ne.s32.totalorder %s4546_s15, %s6329_s21  ;;  %p6335_p4 = scmp.lt.s32.totalorder %s6329_s21, %s6329_s21 }
0x30c2   :  { %v6280_v43 = vpop.eup %6279  ;;  %5559 = vmatmul.mubr.msk.f32.gmra.mrb[42].mxu1 %vm516_vm2, %v4082_v46  ;;  %v4084_v10 = vmul.f32 %v6278_v35, %v7490_v52 }
0x30c3   :  { %v4083_v24 = vmul.f32 %v6280_v43, %v7496_v45  ;;  %5966 = vmatpush3.bf16.msra.mxu1 %v5963_v54  ;;  %p6336_p5 = por %p6335_p4, %p6334_p3 }
0x30c4   :  { %5968 = vmatprep.subr.bf16.mxu1 %v5967_v59 }
0x30c5   :  { %5561 = vmatprep.mubr.msk.f32.mxu1 %vm516_vm2, %v4083_v24  ;;  %p6337_p6 = pnand %p6336_p5, %p6330_p2 }
0x30c6   :  { %5562 = vmatmul.mubr.msk.f32.gmra.mrb[44].mxu1 %vm516_vm2, %v4084_v10 }
0x30c7   :  { %5970 = vmatpush3.bf16.msra.mxu1 %v5967_v59 }
0x30c8   :  { %5972 = vmatprep.subr.bf16.mxu1 %v5971_v0 }
0x30cb   :  { %5974 = vmatpush3.bf16.msra.mxu1 %v5971_v0 }
0x30cc   :  { %5983 = vmatprep.subr.bf16.mxu1 %v5975_v39 }
0x30fc   :  { %v4070_v63 = vpop.xlane.xlu1 %4069 }
0x30fd   :  { %6281 = vrcp.f32 %v4070_v63  ;;  %v4067_v1 = vpop.xlane.xlu0 %4066 }
0x30fe   :  { %6283 = vrcp.f32 %v4067_v1 }
0x3100   :  { %v4219_v22 = vpop.permute.xlu1 %4218 }
0x3101   :  { %v4217_v62 = vpop.permute.xlu0 %4216 }
0x3104   :  { %v4221_v36 = vpop.permute.xlu1 %4220 }
0x3105   :  { %v4223_v15 = vpop.permute.xlu0 %4222 }
0x3107   :  { %v6282_v16 = vpop.eup %6281 }
0x3108   :  { %v6284_v6 = vpop.eup %6283  ;;  %v4086_v12 = vmul.f32 %v6282_v16, %v7502_v14  ;;  %v4225_v61 = vpop.permute.xlu1 %4224 }
0x3109   :  { %v4085_v37 = vmul.f32 %v6284_v6, %v7508_v25  ;;  %v4227_v7 = vpop.permute.xlu0 %4226 }
0x310b   :  { %5564 = vmatprep.mubr.msk.f32.mxu1 %vm516_vm2, %v4085_v37 }
0x310c   :  { %5565 = vmatmul.mubr.msk.f32.gmra.mrb[46].mxu1 %vm516_vm2, %v4086_v12  ;;  %v4229_v28 = vpop.permute.xlu1 %4228 }
0x310d   :  { %v4231_v14 = vpop.permute.xlu0 %4230 }
0x3190   :  { %v5557_v38 = vpop.f32.mrb[40].mxu1 }
0x3191   :  { %v4177_v56 = vpop.f32.mrb[41].mxu1  ;;  %v4241_v40 = vsel %vm99_vm0, %v5557_v38, %v4219_v22 }
0x3192   :  { %v4240_v3 = vsel %vm99_vm0, %v4177_v56, %v4217_v62 }
0x3193   :  { %5583 = vmatprep.mubr.msk.f32.mxu1 %vm516_vm2, %v4240_v3 }
0x3194   :  { %5584 = vmatmul.mubr.msk.f32.vlgmr.msra.gmra.mrb[48].mxu1 %vm516_vm2, %v4241_v40 }
0x3195   :  { %v5560_v58 = vpop.f32.mrb[42].mxu1  ;;  %5985 = vmatpush3.bf16.msra.mxu1 %v5975_v39 }
0x3196   :  { %v4187_v52 = vpop.f32.mrb[43].mxu1  ;;  %v4243_v45 = vsel %vm99_vm0, %v5560_v58, %v4223_v15  ;;  %5984 = vmatprep.subr.bf16.mxu1 %v5979_v20 }
0x3197   :  { %v4242_v34 = vsel %vm99_vm0, %v4187_v52, %v4221_v36 }
0x3198   :  { %5586 = vmatprep.mubr.msk.f32.mxu1 %vm516_vm2, %v4242_v34 }
0x3199   :  { %v5563_v5 = vpop.f32.mrb[44].mxu1  ;;  %5587 = vmatmul.mubr.msk.f32.gmra.mrb[50].mxu1 %vm516_vm2, %v4243_v45 }
0x319a   :  { %v4197_v47 = vpop.f32.mrb[45].mxu1  ;;  %v4245_v21 = vsel %vm99_vm0, %v5563_v5, %v4227_v7  ;;  %5986 = vmatpush3.bf16.msra.mxu1 %v5979_v20 }
0x319b   :  { %v4244_v42 = vsel %vm99_vm0, %v4197_v47, %v4225_v61 }
0x319c   :  { %5589 = vmatprep.mubr.msk.f32.mxu1 %vm516_vm2, %v4244_v42 }
0x319d   :  { %5590 = vmatmul.mubr.msk.f32.gmra.mrb[52].mxu1 %vm516_vm2, %v4245_v21 }
0x31df   :  { %v5566_v44 = vpop.f32.mrb[46].mxu1 }
0x31e0   :  { %v4207_v27 = vpop.f32.mrb[47].mxu1  ;;  %v4247_v25 = vsel %vm99_vm0, %v5566_v44, %v4231_v14 }
0x31e1   :  { %v4246_v2 = vsel %vm99_vm0, %v4207_v27, %v4229_v28 }
0x31e2   :  { %5592 = vmatprep.mubr.msk.f32.mxu1 %vm516_vm2, %v4246_v2 }
0x31e3   :  { %5593 = vmatmul.mubr.msk.f32.gmra.mrb[54].mxu1 %vm516_vm2, %v4247_v25 }
0x3267   :  { %v5585_v23 = vpop.f32.mrb[48].mxu1 }
0x3268   :  { %v4353_v55 = vpop.f32.mrb[49].mxu1  ;;  %v4359_v57 = vadd.f32 %v5585_v23, %v4665_v48 }
0x3269   :  { %v4354_v9 = vadd.f32 %v4665_v48, %v4353_v55 }
0x326b   :  { %5603 = vmatprep.mubr.msk.f32.mxu0 %vm99_vm0, %v4354_v9 }
0x326c   :  { %v5588_v51 = vpop.f32.mrb[50].mxu1  ;;  %5604 = vmatmul.mubr.msk.f32.vlgmr.msra.gmra.mrb[48].mxu0 %vm99_vm0, %v4359_v57 }
0x326d   :  { %v4363_v49 = vpop.f32.mrb[51].mxu1  ;;  %v4369_v18 = vadd.f32 %v5588_v51, %v4665_v48 }
0x326e   :  { %v4364_v11 = vadd.f32 %v4665_v48, %v4363_v49 }
0x3270   :  { %v5591_v17 = vpop.f32.mrb[52].mxu1  ;;  %5606 = vmatprep.mubr.msk.f32.mxu0 %vm99_vm0, %v4364_v11 }
0x3271   :  { %v4373_v30 = vpop.f32.mrb[53].mxu1  ;;  %5607 = vmatmul.mubr.msk.f32.gmra.mrb[50].mxu0 %vm99_vm0, %v4369_v18  ;;  %v4379_v4 = vadd.f32 %v5591_v17, %v4665_v48 }
0x3272   :  { %v4374_v50 = vadd.f32 %v4665_v48, %v4373_v30 }
0x3274   :  { %5609 = vmatprep.mubr.msk.f32.mxu0 %vm99_vm0, %v4374_v50 }
0x3275   :  { %5610 = vmatmul.mubr.msk.f32.gmra.mrb[52].mxu0 %vm99_vm0, %v4379_v4 }
0x32b6   :  { %v5594_v54 = vpop.f32.mrb[54].mxu1 }
0x32b7   :  { %v4383_v41 = vpop.f32.mrb[55].mxu1  ;;  %v4389_v53 = vadd.f32 %v5594_v54, %v4665_v48 }
0x32b8   :  { %v4384_v32 = vadd.f32 %v4665_v48, %v4383_v41 }
0x32ba   :  { %5612 = vmatprep.mubr.msk.f32.mxu1 %vm99_vm0, %v4384_v32 }
0x32bb   :  { %5613 = vmatmul.mubr.msk.f32.vlgmr.msra.gmra.mrb[56].mxu1 %vm99_vm0, %v4389_v53 }
0x333f   :  { %v5605_v46 = vpop.f32.mrb[48].mxu0 }
0x3340   :  { %v4499_v31 = vadd.f32 %v5605_v46, %v4674_v29  ;;  %v4493_v59 = vpop.f32.mrb[49].mxu0 }
0x3341   :  { %v4494_v35 = vadd.f32 %v4674_v29, %v4493_v59 }
0x3342   :  { %4533 = vst [vmem:[#allocation11 + $0x8] sm:$0xff] %v4499_v31 }
0x3343   :  { %4532 = vst [vmem:[#allocation11] sm:$0xff] %v4494_v35 }
0x3344   :  { %v5608_v43 = vpop.f32.mrb[50].mxu0 }
0x3345   :  { %v4509_v10 = vadd.f32 %v5608_v43, %v4674_v29  ;;  %v4503_v24 = vpop.f32.mrb[51].mxu0 }
0x3346   :  { %v4504_v63 = vadd.f32 %v4674_v29, %v4503_v24 }
0x3347   :  { %4535 = vst [vmem:[#allocation11 + $0x18] sm:$0xff] %v4509_v10 }
0x3348   :  { %4534 = vst [vmem:[#allocation11 + $0x10] sm:$0xff] %v4504_v63  ;;  %v5611_v1 = vpop.f32.mrb[52].mxu0 }
0x3349   :  { %v4519_v16 = vadd.f32 %v5611_v1, %v4674_v29  ;;  %v4513_v6 = vpop.f32.mrb[53].mxu0 }
0x334a   :  { %v4514_v37 = vadd.f32 %v4674_v29, %v4513_v6 }
0x334b   :  { %4537 = vst [vmem:[#allocation11 + $0x28] sm:$0xff] %v4519_v16 }
0x334c   :  { %4536 = vst [vmem:[#allocation11 + $0x20] sm:$0xff] %v4514_v37 }
0x338e   :  { %v5614_v12 = vpop.f32.mrb[56].mxu1 }
0x338f   :  { %v4529_v60 = vadd.f32 %v5614_v12, %v4674_v29  ;;  %v4523_v13 = vpop.f32.mrb[57].mxu1 }
0x3390   :  { %v4524_v0 = vadd.f32 %v4674_v29, %v4523_v13 }
0x3391   :  { %4539 = vst [vmem:[#allocation11 + $0x38] sm:$0xff] %v4529_v60 }
0x3392   :  { %4538 = vst [vmem:[#allocation11 + $0x30] sm:$0xff] %v4524_v0 }
0x3393   :  { %6340 = shalt.err (!%p6337_p6)
}
0x3394   :  { %s6341_s6 = scalar_lea.hbm %s7641_s16, 1024 }
0x3395   :  { %p6342_p7 = scmp.ne.s32.totalorder %s7641_s16, %s6341_s6  ;;  %p6345_p8 = scmp.lt.u32.totalorder %s6341_s6, %s7641_s16 }
0x3397   :  { %p6347_p9 = pnand %p6345_p8, %p6342_p7 }
0x3399   :  { %6350 = shalt.err (!%p6347_p9)
}
0x339a   :  { %4551 = dma.vmem_to_hbm [thread:$0]  %s4546_s15, 1024, %s7641_s16, [#allocation8], %s6358_s0, %s6358_s0, %s6359_s17  }
0x339b   :  { %6355 = dma.done.wait [#allocation8], 1024  }
0x339c   :  { %6356 = vsyncadd [#allocation8], 4294966272 }
0x339d   :  { %4555 = vsyncpa [#allocation7], 1 }
0x339e   :  { %4556 = vsyncpa [#allocation10], 1 }
0x339f   :  { %4557 = vsyncpa [#allocation8], 1 }

</bundles_post_ra>
